<compile_context>
chip_gen: v7x
topology: tpu7x:2x2x1
jax: 0.10.0
libtpu: 0.0.40
codegen_flags: <defaults>
</compile_context>

<pallas_src>
import math

import jax
import jax.numpy as jnp
from jax import lax
from jax.experimental import pallas as pl
from jax.experimental.pallas import tpu as pltpu

EPS = 1e-5  # torch.nn.LayerNorm default eps


# =========================================================================================
# Adjacency conv kernel: one (weight set, batch element) per grid step.
# =========================================================================================
def adj_conv_kernel(adj_ref, w1k_ref, b1_ref, w2k_ref, b2_ref, o_ref, lhs1_ref, lhs2_ref):
    L = adj_ref.shape[1]
    c4l = b1_ref.shape[2]                      # 4*L  (conv1 channels stacked along lanes)
    a = adj_ref[0]                             # [L, L]

    # conv1 wide-K LHS: column block u holds A shifted vertically by (u-3), zero border rows
    # (conv1's 3-pixel zero padding folded here -- no wrapper-side jnp.pad).
    lhs1_ref[...] = jnp.zeros_like(lhs1_ref)
    for u in range(7):
        sh = u - 3
        if sh <= 0:
            lhs1_ref[-sh:L, u * L:(u + 1) * L] = a[0:L + sh, :]
        else:
            lhs1_ref[0:L - sh, u * L:(u + 1) * L] = a[sh:L, :]
    # one wide-K MXU matmul for conv1 (all 7 vertical taps x 4 channels at once)
    y1 = jnp.dot(lhs1_ref[...], w1k_ref[0], preferred_element_type=jnp.float32) + b1_ref[0]

    # conv2 wide-K LHS: column block u holds y1 shifted vertically by (u-8), zero border rows
    # (conv2's 8-pixel zero padding of the conv1 output folded here -- exact).
    lhs2_ref[...] = jnp.zeros_like(lhs2_ref)
    for u in range(17):
        sh = u - 8
        if sh <= 0:
            lhs2_ref[-sh:L, u * c4l:(u + 1) * c4l] = y1[0:L + sh, :]
        else:
            lhs2_ref[0:L - sh, u * c4l:(u + 1) * c4l] = y1[sh:L, :]
    # one wide-K MXU matmul for conv2 with the output-channel mean folded into the weights
    o_ref[0, 0] = jnp.dot(lhs2_ref[...], w2k_ref[0],
                          preferred_element_type=jnp.float32) + b2_ref[0]


def adj_conv_op(adj, w1k, b1row, w2k, b2row):
    B, L, _ = adj.shape
    S = w1k.shape[0]
    return pl.pallas_call(
        adj_conv_kernel,
        out_shape=jax.ShapeDtypeStruct((B, S, L, L), jnp.float32),
        grid=(S, B),                                   # weights on the outer axis: fewer re-DMAs
        in_specs=[
            pl.BlockSpec((1, L, L), lambda s, b: (b, 0, 0)),
            pl.BlockSpec((1, 7 * L, 4 * L), lambda s, b: (s, 0, 0)),
            pl.BlockSpec((1, 1, 4 * L), lambda s, b: (s, 0, 0)),
            pl.BlockSpec((1, 17 * 4 * L, L), lambda s, b: (s, 0, 0)),
            pl.BlockSpec((1, 1, L), lambda s, b: (s, 0, 0)),
        ],
        out_specs=pl.BlockSpec((1, 1, L, L), lambda s, b: (b, s, 0, 0)),
        scratch_shapes=[pltpu.VMEM((L, 7 * L), jnp.float32),
                        pltpu.VMEM((L, 17 * 4 * L), jnp.float32)],
        compiler_params=pltpu.CompilerParams(
            dimension_semantics=("parallel", "parallel"),
            vmem_limit_bytes=48 * 1024 * 1024),        # above v5e 16MiB default, < v7x physical
    )(adj, w1k, b1row, w2k, b2row)


# =========================================================================================
# Fused network kernel: input_fc + 3 NeighborAttnStages + output_fc1/output_fc2.
# grid=(B, 3 stages); the running activation h ([L, M] per batch element) lives in VMEM
# scratch and is carried across the (inner, "arbitrary") stage axis.
# aux rows: 0 br_bp1, 1 br_seq1, 2 br_bp2, 3 br_seq2, 4/5 ln bp1 g/b, 6/7 ln seq1 g/b,
#           8/9 ln graph g/b, 10/11 ln bp2 g/b, 12/13 ln seq2 g/b.
# =========================================================================================
def network_kernel(x_ref, abp_ref, aseq_ref, pe_ref, win_ref, bin_ref,
                   wn1_ref, bn1_ref, wn2_ref, bn2_ref, wr_ref, aux_ref,
                   wf1_ref, bf1_ref, wf2_ref, bf2_ref, o_ref, h_ref):
    t = pl.program_id(1)
    M = pe_ref.shape[1]

    @pl.when(t == 0)
    def _():
        # input_fc + tanh (dropout = identity)
        h_ref[...] = jnp.tanh(
            jnp.dot(x_ref[0], win_ref[...], preferred_element_type=jnp.float32)
            + bin_ref[...])

    x_in = h_ref[...]                           # [L, M]   (stage input, carried across stages)
    pe = pe_ref[...]                            # [L, M]

    def ln(h, g, b):
        mu = jnp.mean(h, axis=-1, keepdims=True)
        var = jnp.mean((h - mu) ** 2, axis=-1, keepdims=True)
        return (h - mu) * lax.rsqrt(var + EPS) * g + b

    def arow(r):
        return aux_ref[0, r]                    # [1, M] clean single-row slab

    # ---- half 1: base_pair_block1 / sequence_block1 / graph_block (all read x_in) ----
    ne1 = jnp.tanh(jnp.dot(x_in, wn1_ref[0], preferred_element_type=jnp.float32)
                   + bn1_ref[0])                # [L, 3M]: bp1 | seq1 | graph projections
    ns_bp1 = jnp.dot(abp_ref[0, 0], ne1[:, 0:M], preferred_element_type=jnp.float32)
    ns_seq1 = jnp.dot(aseq_ref[0, 0], ne1[:, M:2 * M], preferred_element_type=jnp.float32)
    g_emb = jnp.mean(ne1[:, 2 * M:3 * M], axis=0, keepdims=True)     # graph emb (mean over L)

    h_bp1 = jnp.tanh(jnp.dot(x_in + ns_bp1, wr_ref[0, 0],
                             preferred_element_type=jnp.float32) + arow(0))
    h_seq1 = jnp.tanh(jnp.dot(x_in + ns_seq1, wr_ref[0, 1],
                              preferred_element_type=jnp.float32) + arow(1))
    x_mid = (ln(x_in + pe + g_emb, arow(8), arow(9))
             + ln(h_bp1, arow(4), arow(5))
             + ln(h_seq1, arow(6), arow(7)))

    # ---- half 2: base_pair_block2 / sequence_block2 (read x_mid) ----
    ne2 = jnp.tanh(jnp.dot(x_mid, wn2_ref[0], preferred_element_type=jnp.float32)
                   + bn2_ref[0])                # [L, 2M]
    ns_bp2 = jnp.dot(abp_ref[0, 1], ne2[:, 0:M], preferred_element_type=jnp.float32)
    ns_seq2 = jnp.dot(aseq_ref[0, 1], ne2[:, M:2 * M], preferred_element_type=jnp.float32)
    h_bp2 = jnp.tanh(jnp.dot(x_mid + ns_bp2, wr_ref[0, 2],
                             preferred_element_type=jnp.float32) + arow(2))
    h_seq2 = jnp.tanh(jnp.dot(x_mid + ns_seq2, wr_ref[0, 3],
                              preferred_element_type=jnp.float32) + arow(3))
    stage_out = ln(h_bp2, arow(10), arow(11)) + ln(h_seq2, arow(12), arow(13)) + x_in
    h_ref[...] = stage_out

    @pl.when(t == pl.num_programs(1) - 1)
    def _():
        # output_fc1 + tanh, then output_fc2
        hf = jnp.tanh(jnp.dot(stage_out, wf1_ref[...], preferred_element_type=jnp.float32)
                      + bf1_ref[...])
        o_ref[0] = jnp.dot(hf, wf2_ref[...], preferred_element_type=jnp.float32) + bf2_ref[...]


def network_op(x, bp_proc, seq_proc, p):
    B, L, Din = x.shape
    M = p['in_w'].shape[1]
    T = p['wn1'].shape[0]                       # 3 stages
    return pl.pallas_call(
        network_kernel,
        out_shape=jax.ShapeDtypeStruct((B, L, 3), jnp.float32),
        grid=(B, T),
        in_specs=[
            pl.BlockSpec((1, L, Din), lambda b, t: (b, 0, 0)),
            pl.BlockSpec((1, 2, L, L), lambda b, t: (b, t, 0, 0)),     # [block1 | block2] slabs
            pl.BlockSpec((1, 2, L, L), lambda b, t: (b, t, 0, 0)),
            pl.BlockSpec((L, M), lambda b, t: (0, 0)),
            pl.BlockSpec((Din, M), lambda b, t: (0, 0)),
            pl.BlockSpec((1, M), lambda b, t: (0, 0)),
            pl.BlockSpec((1, M, 3 * M), lambda b, t: (t, 0, 0)),
            pl.BlockSpec((1, 1, 3 * M), lambda b, t: (t, 0, 0)),
            pl.BlockSpec((1, M, 2 * M), lambda b, t: (t, 0, 0)),
            pl.BlockSpec((1, 1, 2 * M), lambda b, t: (t, 0, 0)),
            pl.BlockSpec((1, 4, M, M), lambda b, t: (t, 0, 0, 0)),
            pl.BlockSpec((1, 14, 1, M), lambda b, t: (t, 0, 0, 0)),
            pl.BlockSpec((M, M), lambda b, t: (0, 0)),
            pl.BlockSpec((1, M), lambda b, t: (0, 0)),
            pl.BlockSpec((M, 3), lambda b, t: (0, 0)),
            pl.BlockSpec((1, 3), lambda b, t: (0, 0)),
        ],
        out_specs=pl.BlockSpec((1, L, 3), lambda b, t: (b, 0, 0)),
        scratch_shapes=[pltpu.VMEM((L, M), jnp.float32)],
        compiler_params=pltpu.CompilerParams(
            dimension_semantics=("parallel", "arbitrary")),
    )(x, bp_proc, seq_proc, p['pe_l'], p['in_w'], p['in_b'],
      p['wn1'], p['bn1'], p['wn2'], p['bn2'], p['wr'], p['aux'],
      p['fc1_w'], p['fc1_b'], p['fc2_w'], p['fc2_b'])


# =========================================================================================
# One-time weight packing (hoisted out of the forward).
# =========================================================================================
def _build_wide_k_weights(w1, b1, w2, b2, L):
    """Exact wide-K banded weights for conv1(k=7,p=3) -> conv2(k=17,p=8) -> channel mean.

      w1: [S, 4, 7, 7]       conv1 weights (single input channel squeezed), b1: [S, 4]
      w2: [S, 4, 4, 17, 17]  conv2 weights [out, in, kh, kw],               b2: [S, 4]
    Returns:
      w1k:   [S, 7L, 4L]     rows (u1, q), cols (c, j):  w1[s,c,u1, q-j+3]  (masked)
      b1row: [S, 1, 4L]
      w2k:   [S, 17*4L, L]   rows (u2, c, k), cols (j):  mean_out(w2)[s,c,u2, k-j+8]  (masked)
      b2row: [S, 1, L]
    Built with gathers/masks only (bit-exact weight re-layout; horizontal padding/cropping
    of both convs is encoded in the masks).
    """
    S = w1.shape[0]
    q = jnp.arange(L)[:, None]
    j = jnp.arange(L)[None, :]

    d1 = q - j + 3
    m1 = ((d1 >= 0) & (d1 < 7)).astype(jnp.float32)
    band1 = jnp.transpose(w1, (0, 2, 1, 3))[:, :, :, jnp.clip(d1, 0, 6)] * m1   # [S,7,4,L,L]
    w1k = jnp.transpose(band1, (0, 1, 3, 2, 4)).reshape(S, 7 * L, 4 * L)
    b1row = jnp.repeat(b1, L, axis=1).reshape(S, 1, 4 * L)

    w2m = jnp.mean(w2, axis=1)                                                   # [S,4,17,17]
    d2 = q - j + 8
    m2 = ((d2 >= 0) & (d2 < 17)).astype(jnp.float32)
    band2 = jnp.transpose(w2m, (0, 2, 1, 3))[:, :, :, jnp.clip(d2, 0, 16)] * m2  # [S,17,4,L,L]
    w2k = band2.reshape(S, 17 * 4 * L, L)
    b2row = jnp.broadcast_to(jnp.mean(b2, axis=1)[:, None, None], (S, 1, L))
    return w1k, b1row, w2k, b2row


def prepare_model(params, L):
    """Pack all weights into kernel-ready layouts ONCE (not per forward)."""
    prep = {
        'pe_l': params['pe'][:L],
        'in_w': params['in_w'], 'in_b': params['in_b'],
        'fc1_w': params['fc1_w'], 'fc1_b': params['fc1_b'],
        'fc2_w': params['fc2_w'], 'fc2_b': params['fc2_b'],
    }
    # 6 adjacency-conv weight sets per source, ordered [st0.blk1, st0.blk2, st1.blk1, ...]
    for src, keys in (('bp', ('bp1', 'bp2')), ('seq', ('seq1', 'seq2'))):
        blocks = [params[f'stage{i}'][k] for i in range(3) for k in keys]
        w1 = jnp.stack([blk['w1'][:, 0] for blk in blocks])        # [6, 4, 7, 7]
        b1 = jnp.stack([blk['b1'] for blk in blocks])              # [6, 4]
        w2 = jnp.stack([blk['w2'] for blk in blocks])              # [6, 4, 4, 17, 17]
        b2 = jnp.stack([blk['b2'] for blk in blocks])              # [6, 4]
        w1k, b1row, w2k, b2row = _build_wide_k_weights(w1, b1, w2, b2, L)
        prep[f'{src}_w1k'], prep[f'{src}_b1'] = w1k, b1row
        prep[f'{src}_w2k'], prep[f'{src}_b2'] = w2k, b2row
    # per-stage dense weights, stacked along a leading stage axis
    wn1, bn1, wn2, bn2, wr, aux = [], [], [], [], [], []
    for i in range(3):
        p = params[f'stage{i}']
        bp1, seq1, bp2, seq2, gr = p['bp1'], p['seq1'], p['bp2'], p['seq2'], p['graph']
        wn1.append(jnp.concatenate([bp1['wn'], seq1['wn'], gr['wg']], axis=1))   # [M, 3M]
        bn1.append(jnp.concatenate([bp1['bn'], seq1['bn'], gr['bg']], axis=1))   # [1, 3M]
        wn2.append(jnp.concatenate([bp2['wn'], seq2['wn']], axis=1))             # [M, 2M]
        bn2.append(jnp.concatenate([bp2['bn'], seq2['bn']], axis=1))             # [1, 2M]
        wr.append(jnp.stack([bp1['wr'], seq1['wr'], bp2['wr'], seq2['wr']]))     # [4, M, M]
        aux.append(jnp.stack([                                                   # [14, 1, M]
            bp1['br'], seq1['br'], bp2['br'], seq2['br'],
            bp1['ln_g'], bp1['ln_b'], seq1['ln_g'], seq1['ln_b'],
            gr['ln_g'], gr['ln_b'],
            bp2['ln_g'], bp2['ln_b'], seq2['ln_g'], seq2['ln_b'],
        ]))
    prep['wn1'] = jnp.stack(wn1)
    prep['bn1'] = jnp.stack(bn1)
    prep['wn2'] = jnp.stack(wn2)
    prep['bn2'] = jnp.stack(bn2)
    prep['wr'] = jnp.stack(wr)
    prep['aux'] = jnp.stack(aux)
    return prep


# =========================================================================================
# Parameter initialization (deterministic, PyTorch-like uniform fan-in init)
# =========================================================================================
def _uniform(key, shape, bound):
    return jax.random.uniform(key, shape, jnp.float32, -bound, bound)


def linear_params(key, din, dout):
    k1, k2 = jax.random.split(key)
    bound = 1.0 / math.sqrt(din)
    return _uniform(k1, (din, dout), bound), _uniform(k2, (1, dout), bound)


def conv_block_params(key, m):
    ks = jax.random.split(key, 6)
    wn, bn = linear_params(ks[0], m, m)
    wr, br = linear_params(ks[1], m, m)
    b1w = 1.0 / math.sqrt(1 * 7 * 7)
    b2w = 1.0 / math.sqrt(4 * 17 * 17)
    return {
        'wn': wn, 'bn': bn, 'wr': wr, 'br': br,
        'ln_g': jnp.ones((1, m), jnp.float32), 'ln_b': jnp.zeros((1, m), jnp.float32),
        'w1': _uniform(ks[2], (4, 1, 7, 7), b1w), 'b1': _uniform(ks[3], (4,), b1w),
        'w2': _uniform(ks[4], (4, 4, 17, 17), b2w), 'b2': _uniform(ks[5], (4,), b2w),
    }


def positional_encoding(d_model, max_len=300):
    position = jnp.arange(max_len, dtype=jnp.float32)[:, None]
    div_term = jnp.exp(jnp.arange(0, d_model, 2, dtype=jnp.float32)
                       * (-math.log(10000.0) / d_model))
    pe = jnp.zeros((max_len, d_model), jnp.float32)
    pe = pe.at[:, 0::2].set(jnp.sin(position * div_term))
    pe = pe.at[:, 1::2].set(jnp.cos(position * div_term))
    return pe


def graph_params(key, m):
    wg, bg = linear_params(key, m, m)
    return {'wg': wg, 'bg': bg,
            'ln_g': jnp.ones((1, m), jnp.float32), 'ln_b': jnp.zeros((1, m), jnp.float32)}


def stage_params(key, m):
    ks = jax.random.split(key, 5)
    return {'graph': graph_params(ks[0], m), 'bp1': conv_block_params(ks[1], m),
            'bp2': conv_block_params(ks[2], m), 'seq1': conv_block_params(ks[3], m),
            'seq2': conv_block_params(ks[4], m)}


def init_params(key, m):
    ks = jax.random.split(key, 6)
    params = {'pe': positional_encoding(m)}
    params['in_w'], params['in_b'] = linear_params(ks[0], 14, m)
    params['fc1_w'], params['fc1_b'] = linear_params(ks[1], m, m)
    params['fc2_w'], params['fc2_b'] = linear_params(ks[2], m, 3)
    for i in range(3):
        params[f'stage{i}'] = stage_params(ks[3 + i], m)
    return params


# =========================================================================================
# Model forward: 3 pallas_calls, no per-forward weight packing.
# =========================================================================================
def model_apply(prep, x, seq_adj, bp_adj):
    # TODO(synk): nn.Dropout layers are identity here (inference-mode semantics).
    bp_proc = adj_conv_op(bp_adj, prep['bp_w1k'], prep['bp_b1'],
                          prep['bp_w2k'], prep['bp_b2'])           # [B, 6, L, L]
    seq_proc = adj_conv_op(seq_adj, prep['seq_w1k'], prep['seq_b1'],
                           prep['seq_w2k'], prep['seq_b2'])        # [B, 6, L, L]
    return network_op(x, bp_proc, seq_proc, prep)                  # [B, L, 3]


if __name__ == "__main__":
    B, L, M = 2, 16, 32
    key = jax.random.PRNGKey(0)
    kp, kx, ks, kb = jax.random.split(key, 4)

    params = init_params(kp, M)
    prepared = prepare_model(params, L)      # one-time weight packing (hoisted out of forward)

    x = jax.random.normal(kx, (B, L, 14), jnp.float32)
    seq_adj = jax.random.normal(ks, (B, L, L), jnp.float32)
    bp_adj = jax.random.normal(kb, (B, L, L), jnp.float32)

    out = jax.jit(model_apply)(prepared, x, seq_adj, bp_adj)
    out = jax.block_until_ready(out)
    assert out.shape == (B, L, 3) and out.dtype == jnp.float32
    print("KERNEL_OK")
</pallas_src>

<mosaic_0001>
module attributes {stable_mosaic.version = 11 : i64} {
  func.func @adj_conv_kernel(%arg0: i32, %arg1: i32, %arg2: memref<1x16x16xf32, #tpu.memory_space<vmem>>, %arg3: memref<1x112x64xf32, #tpu.memory_space<vmem>>, %arg4: memref<1x1x64xf32, #tpu.memory_space<vmem>>, %arg5: memref<1x1088x16xf32, #tpu.memory_space<vmem>>, %arg6: memref<1x1x16xf32, #tpu.memory_space<vmem>>, %arg7: memref<1x1x16x16xf32, #tpu.memory_space<vmem>>, %arg8: memref<16x112xf32, #tpu.memory_space<vmem>>, %arg9: memref<16x1088xf32, #tpu.memory_space<vmem>>) attributes {dimension_semantics = [#tpu.dimension_semantics<parallel>, #tpu.dimension_semantics<parallel>], iteration_bounds = array<i64: 6, 2>, scalar_prefetch = 0 : i64, scratch_operands = 2 : i64, tpu.core_type = #tpu.core_type<tc>, window_params = [{transform_indices = @transform_0, window_bounds = array<i64: 1, 16, 16>}, {transform_indices = @transform_1, window_bounds = array<i64: 1, 112, 64>}, {transform_indices = @transform_2, window_bounds = array<i64: 1, 1, 64>}, {transform_indices = @transform_3, window_bounds = array<i64: 1, 1088, 16>}, {transform_indices = @transform_4, window_bounds = array<i64: 1, 1, 16>}, {transform_indices = @transform_5, window_bounds = array<i64: 1, 1, 16, 16>}]} {
    %c0 = arith.constant 0 : index
    %c0_0 = arith.constant 0 : index
    %c0_1 = arith.constant 0 : index
    %0 = vector.load %arg2[%c0, %c0_0, %c0_1] : memref<1x16x16xf32, #tpu.memory_space<vmem>>, vector<1x16x16xf32>
    %1 = vector.shape_cast %0 : vector<1x16x16xf32> to vector<16x16xf32>
    %cst = arith.constant 0.000000e+00 : f32
    %2 = vector.broadcast %cst : f32 to vector<16x112xf32>
    %c0_2 = arith.constant 0 : index
    %c0_3 = arith.constant 0 : index
    %3 = vector.load %arg8[%c0_2, %c0_3] : memref<16x112xf32, #tpu.memory_space<vmem>>, vector<16x112xf32>
    tpu.vector_store %arg8[%c0_2, %c0_3], %2 {strides = array<i32>} : memref<16x112xf32, #tpu.memory_space<vmem>>, vector<16x112xf32>,
    %4 = vector.extract_strided_slice %1 {offsets = [0, 0], sizes = [13, 16], strides = [1, 1]} : vector<16x16xf32> to vector<13x16xf32>
    %c3 = arith.constant 3 : index
    %c0_4 = arith.constant 0 : index
    %5 = vector.load %arg8[%c3, %c0_4] : memref<16x112xf32, #tpu.memory_space<vmem>>, vector<13x16xf32>
    tpu.vector_store %arg8[%c3, %c0_4], %4 {strides = array<i32>} : memref<16x112xf32, #tpu.memory_space<vmem>>, vector<13x16xf32>,
    %6 = vector.extract_strided_slice %1 {offsets = [0, 0], sizes = [14, 16], strides = [1, 1]} : vector<16x16xf32> to vector<14x16xf32>
    %c2 = arith.constant 2 : index
    %c16 = arith.constant 16 : index
    %7 = vector.load %arg8[%c2, %c16] : memref<16x112xf32, #tpu.memory_space<vmem>>, vector<14x16xf32>
    tpu.vector_store %arg8[%c2, %c16], %6 {strides = array<i32>} : memref<16x112xf32, #tpu.memory_space<vmem>>, vector<14x16xf32>,
    %8 = vector.extract_strided_slice %1 {offsets = [0, 0], sizes = [15, 16], strides = [1, 1]} : vector<16x16xf32> to vector<15x16xf32>
    %c1 = arith.constant 1 : index
    %c32 = arith.constant 32 : index
    %9 = vector.load %arg8[%c1, %c32] : memref<16x112xf32, #tpu.memory_space<vmem>>, vector<15x16xf32>
    tpu.vector_store %arg8[%c1, %c32], %8 {strides = array<i32>} : memref<16x112xf32, #tpu.memory_space<vmem>>, vector<15x16xf32>,
    %c0_5 = arith.constant 0 : index
    %c48 = arith.constant 48 : index
    %10 = vector.load %arg8[%c0_5, %c48] : memref<16x112xf32, #tpu.memory_space<vmem>>, vector<16x16xf32>
    tpu.vector_store %arg8[%c0_5, %c48], %1 {strides = array<i32>} : memref<16x112xf32, #tpu.memory_space<vmem>>, vector<16x16xf32>,
    %11 = vector.extract_strided_slice %1 {offsets = [1, 0], sizes = [15, 16], strides = [1, 1]} : vector<16x16xf32> to vector<15x16xf32>
    %c0_6 = arith.constant 0 : index
    %c64 = arith.constant 64 : index
    %12 = vector.load %arg8[%c0_6, %c64] : memref<16x112xf32, #tpu.memory_space<vmem>>, vector<15x16xf32>
    tpu.vector_store %arg8[%c0_6, %c64], %11 {strides = array<i32>} : memref<16x112xf32, #tpu.memory_space<vmem>>, vector<15x16xf32>,
    %13 = vector.extract_strided_slice %1 {offsets = [2, 0], sizes = [14, 16], strides = [1, 1]} : vector<16x16xf32> to vector<14x16xf32>
    %c0_7 = arith.constant 0 : index
    %c80 = arith.constant 80 : index
    %14 = vector.load %arg8[%c0_7, %c80] : memref<16x112xf32, #tpu.memory_space<vmem>>, vector<14x16xf32>
    tpu.vector_store %arg8[%c0_7, %c80], %13 {strides = array<i32>} : memref<16x112xf32, #tpu.memory_space<vmem>>, vector<14x16xf32>,
    %15 = vector.extract_strided_slice %1 {offsets = [3, 0], sizes = [13, 16], strides = [1, 1]} : vector<16x16xf32> to vector<13x16xf32>
    %c0_8 = arith.constant 0 : index
    %c96 = arith.constant 96 : index
    %16 = vector.load %arg8[%c0_8, %c96] : memref<16x112xf32, #tpu.memory_space<vmem>>, vector<13x16xf32>
    tpu.vector_store %arg8[%c0_8, %c96], %15 {strides = array<i32>} : memref<16x112xf32, #tpu.memory_space<vmem>>, vector<13x16xf32>,
    %c0_9 = arith.constant 0 : index
    %c0_10 = arith.constant 0 : index
    %17 = vector.load %arg8[%c0_9, %c0_10] : memref<16x112xf32, #tpu.memory_space<vmem>>, vector<16x112xf32>
    %c0_11 = arith.constant 0 : index
    %c0_12 = arith.constant 0 : index
    %c0_13 = arith.constant 0 : index
    %18 = vector.load %arg3[%c0_11, %c0_12, %c0_13] : memref<1x112x64xf32, #tpu.memory_space<vmem>>, vector<1x112x64xf32>
    %19 = vector.shape_cast %18 : vector<1x112x64xf32> to vector<112x64xf32>
    %cst_14 = arith.constant dense<0.000000e+00> : vector<16x64xf32>
    %20 = tpu.matmul %17, %19, %cst_14 {dimension_numbers = #tpu.dot_dimension_numbers<[1], [0], [0], [1], [0, 0, 1, 1], [], []>} : vector<16x112xf32>, vector<112x64xf32>, vector<16x64xf32> -> vector<16x64xf32>
    %c0_15 = arith.constant 0 : index
    %c0_16 = arith.constant 0 : index
    %c0_17 = arith.constant 0 : index
    %21 = vector.load %arg4[%c0_15, %c0_16, %c0_17] : memref<1x1x64xf32, #tpu.memory_space<vmem>>, vector<1x1x64xf32>
    %22 = vector.shape_cast %21 : vector<1x1x64xf32> to vector<1x64xf32>
    %23 = vector.broadcast %22 : vector<1x64xf32> to vector<16x64xf32>
    %24 = arith.addf %20, %23 : vector<16x64xf32>
    %cst_18 = arith.constant 0.000000e+00 : f32
    %25 = vector.broadcast %cst_18 : f32 to vector<16x1088xf32>
    %c0_19 = arith.constant 0 : index
    %c0_20 = arith.constant 0 : index
    %26 = vector.load %arg9[%c0_19, %c0_20] : memref<16x1088xf32, #tpu.memory_space<vmem>>, vector<16x1088xf32>
    tpu.vector_store %arg9[%c0_19, %c0_20], %25 {strides = array<i32>} : memref<16x1088xf32, #tpu.memory_space<vmem>>, vector<16x1088xf32>,
    %27 = vector.extract_strided_slice %24 {offsets = [0, 0], sizes = [8, 64], strides = [1, 1]} : vector<16x64xf32> to vector<8x64xf32>
    %c8 = arith.constant 8 : index
    %c0_21 = arith.constant 0 : index
    %28 = vector.load %arg9[%c8, %c0_21] : memref<16x1088xf32, #tpu.memory_space<vmem>>, vector<8x64xf32>
    tpu.vector_store %arg9[%c8, %c0_21], %27 {strides = array<i32>} : memref<16x1088xf32, #tpu.memory_space<vmem>>, vector<8x64xf32>,
    %29 = vector.extract_strided_slice %24 {offsets = [0, 0], sizes = [9, 64], strides = [1, 1]} : vector<16x64xf32> to vector<9x64xf32>
    %c7 = arith.constant 7 : index
    %c64_22 = arith.constant 64 : index
    %30 = vector.load %arg9[%c7, %c64_22] : memref<16x1088xf32, #tpu.memory_space<vmem>>, vector<9x64xf32>
    tpu.vector_store %arg9[%c7, %c64_22], %29 {strides = array<i32>} : memref<16x1088xf32, #tpu.memory_space<vmem>>, vector<9x64xf32>,
    %31 = vector.extract_strided_slice %24 {offsets = [0, 0], sizes = [10, 64], strides = [1, 1]} : vector<16x64xf32> to vector<10x64xf32>
    %c6 = arith.constant 6 : index
    %c128 = arith.constant 128 : index
    %32 = vector.load %arg9[%c6, %c128] : memref<16x1088xf32, #tpu.memory_space<vmem>>, vector<10x64xf32>
    tpu.vector_store %arg9[%c6, %c128], %31 {strides = array<i32>} : memref<16x1088xf32, #tpu.memory_space<vmem>>, vector<10x64xf32>,
    %33 = vector.extract_strided_slice %24 {offsets = [0, 0], sizes = [11, 64], strides = [1, 1]} : vector<16x64xf32> to vector<11x64xf32>
    %c5 = arith.constant 5 : index
    %c192 = arith.constant 192 : index
    %34 = vector.load %arg9[%c5, %c192] : memref<16x1088xf32, #tpu.memory_space<vmem>>, vector<11x64xf32>
    tpu.vector_store %arg9[%c5, %c192], %33 {strides = array<i32>} : memref<16x1088xf32, #tpu.memory_space<vmem>>, vector<11x64xf32>,
    %35 = vector.extract_strided_slice %24 {offsets = [0, 0], sizes = [12, 64], strides = [1, 1]} : vector<16x64xf32> to vector<12x64xf32>
    %c4 = arith.constant 4 : index
    %c256 = arith.constant 256 : index
    %36 = vector.load %arg9[%c4, %c256] : memref<16x1088xf32, #tpu.memory_space<vmem>>, vector<12x64xf32>
    tpu.vector_store %arg9[%c4, %c256], %35 {strides = array<i32>} : memref<16x1088xf32, #tpu.memory_space<vmem>>, vector<12x64xf32>,
    %37 = vector.extract_strided_slice %24 {offsets = [0, 0], sizes = [13, 64], strides = [1, 1]} : vector<16x64xf32> to vector<13x64xf32>
    %c3_23 = arith.constant 3 : index
    %c320 = arith.constant 320 : index
    %38 = vector.load %arg9[%c3_23, %c320] : memref<16x1088xf32, #tpu.memory_space<vmem>>, vector<13x64xf32>
    tpu.vector_store %arg9[%c3_23, %c320], %37 {strides = array<i32>} : memref<16x1088xf32, #tpu.memory_space<vmem>>, vector<13x64xf32>,
    %39 = vector.extract_strided_slice %24 {offsets = [0, 0], sizes = [14, 64], strides = [1, 1]} : vector<16x64xf32> to vector<14x64xf32>
    %c2_24 = arith.constant 2 : index
    %c384 = arith.constant 384 : index
    %40 = vector.load %arg9[%c2_24, %c384] : memref<16x1088xf32, #tpu.memory_space<vmem>>, vector<14x64xf32>
    tpu.vector_store %arg9[%c2_24, %c384], %39 {strides = array<i32>} : memref<16x1088xf32, #tpu.memory_space<vmem>>, vector<14x64xf32>,
    %41 = vector.extract_strided_slice %24 {offsets = [0, 0], sizes = [15, 64], strides = [1, 1]} : vector<16x64xf32> to vector<15x64xf32>
    %c1_25 = arith.constant 1 : index
    %c448 = arith.constant 448 : index
    %42 = vector.load %arg9[%c1_25, %c448] : memref<16x1088xf32, #tpu.memory_space<vmem>>, vector<15x64xf32>
    tpu.vector_store %arg9[%c1_25, %c448], %41 {strides = array<i32>} : memref<16x1088xf32, #tpu.memory_space<vmem>>, vector<15x64xf32>,
    %c0_26 = arith.constant 0 : index
    %c512 = arith.constant 512 : index
    %43 = vector.load %arg9[%c0_26, %c512] : memref<16x1088xf32, #tpu.memory_space<vmem>>, vector<16x64xf32>
    tpu.vector_store %arg9[%c0_26, %c512], %24 {strides = array<i32>} : memref<16x1088xf32, #tpu.memory_space<vmem>>, vector<16x64xf32>,
    %44 = vector.extract_strided_slice %24 {offsets = [1, 0], sizes = [15, 64], strides = [1, 1]} : vector<16x64xf32> to vector<15x64xf32>
    %c0_27 = arith.constant 0 : index
    %c576 = arith.constant 576 : index
    %45 = vector.load %arg9[%c0_27, %c576] : memref<16x1088xf32, #tpu.memory_space<vmem>>, vector<15x64xf32>
    tpu.vector_store %arg9[%c0_27, %c576], %44 {strides = array<i32>} : memref<16x1088xf32, #tpu.memory_space<vmem>>, vector<15x64xf32>,
    %46 = vector.extract_strided_slice %24 {offsets = [2, 0], sizes = [14, 64], strides = [1, 1]} : vector<16x64xf32> to vector<14x64xf32>
    %c0_28 = arith.constant 0 : index
    %c640 = arith.constant 640 : index
    %47 = vector.load %arg9[%c0_28, %c640] : memref<16x1088xf32, #tpu.memory_space<vmem>>, vector<14x64xf32>
    tpu.vector_store %arg9[%c0_28, %c640], %46 {strides = array<i32>} : memref<16x1088xf32, #tpu.memory_space<vmem>>, vector<14x64xf32>,
    %48 = vector.extract_strided_slice %24 {offsets = [3, 0], sizes = [13, 64], strides = [1, 1]} : vector<16x64xf32> to vector<13x64xf32>
    %c0_29 = arith.constant 0 : index
    %c704 = arith.constant 704 : index
    %49 = vector.load %arg9[%c0_29, %c704] : memref<16x1088xf32, #tpu.memory_space<vmem>>, vector<13x64xf32>
    tpu.vector_store %arg9[%c0_29, %c704], %48 {strides = array<i32>} : memref<16x1088xf32, #tpu.memory_space<vmem>>, vector<13x64xf32>,
    %50 = vector.extract_strided_slice %24 {offsets = [4, 0], sizes = [12, 64], strides = [1, 1]} : vector<16x64xf32> to vector<12x64xf32>
    %c0_30 = arith.constant 0 : index
    %c768 = arith.constant 768 : index
    %51 = vector.load %arg9[%c0_30, %c768] : memref<16x1088xf32, #tpu.memory_space<vmem>>, vector<12x64xf32>
    tpu.vector_store %arg9[%c0_30, %c768], %50 {strides = array<i32>} : memref<16x1088xf32, #tpu.memory_space<vmem>>, vector<12x64xf32>,
    %52 = vector.extract_strided_slice %24 {offsets = [5, 0], sizes = [11, 64], strides = [1, 1]} : vector<16x64xf32> to vector<11x64xf32>
    %c0_31 = arith.constant 0 : index
    %c832 = arith.constant 832 : index
    %53 = vector.load %arg9[%c0_31, %c832] : memref<16x1088xf32, #tpu.memory_space<vmem>>, vector<11x64xf32>
    tpu.vector_store %arg9[%c0_31, %c832], %52 {strides = array<i32>} : memref<16x1088xf32, #tpu.memory_space<vmem>>, vector<11x64xf32>,
    %54 = vector.extract_strided_slice %24 {offsets = [6, 0], sizes = [10, 64], strides = [1, 1]} : vector<16x64xf32> to vector<10x64xf32>
    %c0_32 = arith.constant 0 : index
    %c896 = arith.constant 896 : index
    %55 = vector.load %arg9[%c0_32, %c896] : memref<16x1088xf32, #tpu.memory_space<vmem>>, vector<10x64xf32>
    tpu.vector_store %arg9[%c0_32, %c896], %54 {strides = array<i32>} : memref<16x1088xf32, #tpu.memory_space<vmem>>, vector<10x64xf32>,
    %56 = vector.extract_strided_slice %24 {offsets = [7, 0], sizes = [9, 64], strides = [1, 1]} : vector<16x64xf32> to vector<9x64xf32>
    %c0_33 = arith.constant 0 : index
    %c960 = arith.constant 960 : index
    %57 = vector.load %arg9[%c0_33, %c960] : memref<16x1088xf32, #tpu.memory_space<vmem>>, vector<9x64xf32>
    tpu.vector_store %arg9[%c0_33, %c960], %56 {strides = array<i32>} : memref<16x1088xf32, #tpu.memory_space<vmem>>, vector<9x64xf32>,
    %58 = vector.extract_strided_slice %24 {offsets = [8, 0], sizes = [8, 64], strides = [1, 1]} : vector<16x64xf32> to vector<8x64xf32>
    %c0_34 = arith.constant 0 : index
    %c1024 = arith.constant 1024 : index
    %59 = vector.load %arg9[%c0_34, %c1024] : memref<16x1088xf32, #tpu.memory_space<vmem>>, vector<8x64xf32>
    tpu.vector_store %arg9[%c0_34, %c1024], %58 {strides = array<i32>} : memref<16x1088xf32, #tpu.memory_space<vmem>>, vector<8x64xf32>,
    %c0_35 = arith.constant 0 : index
    %c0_36 = arith.constant 0 : index
    %60 = vector.load %arg9[%c0_35, %c0_36] : memref<16x1088xf32, #tpu.memory_space<vmem>>, vector<16x1088xf32>
    %c0_37 = arith.constant 0 : index
    %c0_38 = arith.constant 0 : index
    %c0_39 = arith.constant 0 : index
    %61 = vector.load %arg5[%c0_37, %c0_38, %c0_39] : memref<1x1088x16xf32, #tpu.memory_space<vmem>>, vector<1x1088x16xf32>
    %62 = vector.shape_cast %61 : vector<1x1088x16xf32> to vector<1088x16xf32>
    %cst_40 = arith.constant dense<0.000000e+00> : vector<16x16xf32>
    %63 = tpu.matmul %60, %62, %cst_40 {dimension_numbers = #tpu.dot_dimension_numbers<[1], [0], [0], [1], [0, 0, 1, 1], [], []>} : vector<16x1088xf32>, vector<1088x16xf32>, vector<16x16xf32> -> vector<16x16xf32>
    %c0_41 = arith.constant 0 : index
    %c0_42 = arith.constant 0 : index
    %c0_43 = arith.constant 0 : index
    %64 = vector.load %arg6[%c0_41, %c0_42, %c0_43] : memref<1x1x16xf32, #tpu.memory_space<vmem>>, vector<1x1x16xf32>
    %65 = vector.shape_cast %64 : vector<1x1x16xf32> to vector<1x16xf32>
    %66 = vector.broadcast %65 : vector<1x16xf32> to vector<16x16xf32>
    %67 = arith.addf %63, %66 : vector<16x16xf32>
    %c0_44 = arith.constant 0 : index
    %c0_45 = arith.constant 0 : index
    %c0_46 = arith.constant 0 : index
    %c0_47 = arith.constant 0 : index
    %68 = vector.load %arg7[%c0_44, %c0_45, %c0_46, %c0_47] : memref<1x1x16x16xf32, #tpu.memory_space<vmem>>, vector<1x1x16x16xf32>
    %69 = vector.shape_cast %68 : vector<1x1x16x16xf32> to vector<16x16xf32>
    %70 = vector.shape_cast %67 : vector<16x16xf32> to vector<1x1x16x16xf32>
    tpu.vector_store %arg7[%c0_44, %c0_45, %c0_46, %c0_47], %70 {strides = array<i32>} : memref<1x1x16x16xf32, #tpu.memory_space<vmem>>, vector<1x1x16x16xf32>,
    return
  }
  func.func @transform_0(%arg0: i32, %arg1: i32) -> (i32, i32, i32) {
    %c0_i32 = arith.constant 0 : i32
    %c0_i32_0 = arith.constant 0 : i32
    %c0_i32_1 = arith.constant 0 : i32
    return %arg1, %c0_i32, %c0_i32_0 : i32, i32, i32
  }
  func.func @transform_1(%arg0: i32, %arg1: i32) -> (i32, i32, i32) {
    %c0_i32 = arith.constant 0 : i32
    %c0_i32_0 = arith.constant 0 : i32
    %c0_i32_1 = arith.constant 0 : i32
    return %arg0, %c0_i32, %c0_i32_0 : i32, i32, i32
  }
  func.func @transform_2(%arg0: i32, %arg1: i32) -> (i32, i32, i32) {
    %c0_i32 = arith.constant 0 : i32
    %c0_i32_0 = arith.constant 0 : i32
    %c0_i32_1 = arith.constant 0 : i32
    return %arg0, %c0_i32, %c0_i32_0 : i32, i32, i32
  }
  func.func @transform_3(%arg0: i32, %arg1: i32) -> (i32, i32, i32) {
    %c0_i32 = arith.constant 0 : i32
    %c0_i32_0 = arith.constant 0 : i32
    %c0_i32_1 = arith.constant 0 : i32
    return %arg0, %c0_i32, %c0_i32_0 : i32, i32, i32
  }
  func.func @transform_4(%arg0: i32, %arg1: i32) -> (i32, i32, i32) {
    %c0_i32 = arith.constant 0 : i32
    %c0_i32_0 = arith.constant 0 : i32
    %c0_i32_1 = arith.constant 0 : i32
    return %arg0, %c0_i32, %c0_i32_0 : i32, i32, i32
  }
  func.func @transform_5(%arg0: i32, %arg1: i32) -> (i32, i32, i32, i32) {
    %c0_i32 = arith.constant 0 : i32
    %c0_i32_0 = arith.constant 0 : i32
    %c0_i32_1 = arith.constant 0 : i32
    return %arg1, %arg0, %c0_i32, %c0_i32_0 : i32, i32, i32, i32
  }
}

module attributes {stable_mosaic.version = 11 : i64} {
  func.func @network_kernel(%arg0: i32, %arg1: i32, %arg2: memref<1x16x14xf32, #tpu.memory_space<vmem>>, %arg3: memref<1x2x16x16xf32, #tpu.memory_space<vmem>>, %arg4: memref<1x2x16x16xf32, #tpu.memory_space<vmem>>, %arg5: memref<16x32xf32, #tpu.memory_space<vmem>>, %arg6: memref<14x32xf32, #tpu.memory_space<vmem>>, %arg7: memref<1x32xf32, #tpu.memory_space<vmem>>, %arg8: memref<1x32x96xf32, #tpu.memory_space<vmem>>, %arg9: memref<1x1x96xf32, #tpu.memory_space<vmem>>, %arg10: memref<1x32x64xf32, #tpu.memory_space<vmem>>, %arg11: memref<1x1x64xf32, #tpu.memory_space<vmem>>, %arg12: memref<1x4x32x32xf32, #tpu.memory_space<vmem>>, %arg13: memref<1x14x1x32xf32, #tpu.memory_space<vmem>>, %arg14: memref<32x32xf32, #tpu.memory_space<vmem>>, %arg15: memref<1x32xf32, #tpu.memory_space<vmem>>, %arg16: memref<32x3xf32, #tpu.memory_space<vmem>>, %arg17: memref<1x3xf32, #tpu.memory_space<vmem>>, %arg18: memref<1x16x3xf32, #tpu.memory_space<vmem>>, %arg19: memref<16x32xf32, #tpu.memory_space<vmem>>) attributes {dimension_semantics = [#tpu.dimension_semantics<parallel>, #tpu.dimension_semantics<arbitrary>], iteration_bounds = array<i64: 2, 3>, scalar_prefetch = 0 : i64, scratch_operands = 1 : i64, tpu.core_type = #tpu.core_type<tc>, window_params = [{transform_indices = @transform_0, window_bounds = array<i64: 1, 16, 14>}, {transform_indices = @transform_1, window_bounds = array<i64: 1, 2, 16, 16>}, {transform_indices = @transform_2, window_bounds = array<i64: 1, 2, 16, 16>}, {pipeline_mode = #tpu.pipeline_mode<synchronous>, transform_indices = @transform_3, window_bounds = array<i64: 16, 32>}, {pipeline_mode = #tpu.pipeline_mode<synchronous>, transform_indices = @transform_4, window_bounds = array<i64: 14, 32>}, {pipeline_mode = #tpu.pipeline_mode<synchronous>, transform_indices = @transform_5, window_bounds = array<i64: 1, 32>}, {transform_indices = @transform_6, window_bounds = array<i64: 1, 32, 96>}, {transform_indices = @transform_7, window_bounds = array<i64: 1, 1, 96>}, {transform_indices = @transform_8, window_bounds = array<i64: 1, 32, 64>}, {transform_indices = @transform_9, window_bounds = array<i64: 1, 1, 64>}, {transform_indices = @transform_10, window_bounds = array<i64: 1, 4, 32, 32>}, {transform_indices = @transform_11, window_bounds = array<i64: 1, 14, 1, 32>}, {pipeline_mode = #tpu.pipeline_mode<synchronous>, transform_indices = @transform_12, window_bounds = array<i64: 32, 32>}, {pipeline_mode = #tpu.pipeline_mode<synchronous>, transform_indices = @transform_13, window_bounds = array<i64: 1, 32>}, {pipeline_mode = #tpu.pipeline_mode<synchronous>, transform_indices = @transform_14, window_bounds = array<i64: 32, 3>}, {pipeline_mode = #tpu.pipeline_mode<synchronous>, transform_indices = @transform_15, window_bounds = array<i64: 1, 3>}, {transform_indices = @transform_16, window_bounds = array<i64: 1, 16, 3>}]} {
    %c0_i32 = arith.constant 0 : i32
    %0 = arith.cmpi eq, %arg1, %c0_i32 : i32
    %1 = arith.extui %0 : i1 to i32
    %c0_i32_0 = arith.constant 0 : i32
    %2 = arith.cmpi ne, %1, %c0_i32_0 : i32
    scf.if %2 {
      %c0_130 = arith.constant 0 : index
      %c0_131 = arith.constant 0 : index
      %c0_132 = arith.constant 0 : index
      %219 = vector.load %arg2[%c0_130, %c0_131, %c0_132] : memref<1x16x14xf32, #tpu.memory_space<vmem>>, vector<1x16x14xf32>
      %220 = vector.shape_cast %219 : vector<1x16x14xf32> to vector<16x14xf32>
      %c0_133 = arith.constant 0 : index
      %c0_134 = arith.constant 0 : index
      %221 = vector.load %arg6[%c0_133, %c0_134] : memref<14x32xf32, #tpu.memory_space<vmem>>, vector<14x32xf32>
      %cst_135 = arith.constant dense<0.000000e+00> : vector<16x32xf32>
      %222 = tpu.matmul %220, %221, %cst_135 {dimension_numbers = #tpu.dot_dimension_numbers<[1], [0], [0], [1], [0, 0, 1, 1], [], []>} : vector<16x14xf32>, vector<14x32xf32>, vector<16x32xf32> -> vector<16x32xf32>
      %c0_136 = arith.constant 0 : index
      %c0_137 = arith.constant 0 : index
      %223 = vector.load %arg7[%c0_136, %c0_137] : memref<1x32xf32, #tpu.memory_space<vmem>>, vector<1x32xf32>
      %224 = vector.broadcast %223 : vector<1x32xf32> to vector<16x32xf32>
      %225 = arith.addf %222, %224 : vector<16x32xf32>
      %226 = math.tanh %225 : vector<16x32xf32>
      %c0_138 = arith.constant 0 : index
      %c0_139 = arith.constant 0 : index
      %227 = vector.load %arg19[%c0_138, %c0_139] : memref<16x32xf32, #tpu.memory_space<vmem>>, vector<16x32xf32>
      tpu.vector_store %arg19[%c0_138, %c0_139], %226 {strides = array<i32>} : memref<16x32xf32, #tpu.memory_space<vmem>>, vector<16x32xf32>,
    } else {
    }
    %c0 = arith.constant 0 : index
    %c0_1 = arith.constant 0 : index
    %3 = vector.load %arg19[%c0, %c0_1] : memref<16x32xf32, #tpu.memory_space<vmem>>, vector<16x32xf32>
    %c0_2 = arith.constant 0 : index
    %c0_3 = arith.constant 0 : index
    %4 = vector.load %arg5[%c0_2, %c0_3] : memref<16x32xf32, #tpu.memory_space<vmem>>, vector<16x32xf32>
    %c0_4 = arith.constant 0 : index
    %c0_5 = arith.constant 0 : index
    %c0_6 = arith.constant 0 : index
    %5 = vector.load %arg8[%c0_4, %c0_5, %c0_6] : memref<1x32x96xf32, #tpu.memory_space<vmem>>, vector<1x32x96xf32>
    %6 = vector.shape_cast %5 : vector<1x32x96xf32> to vector<32x96xf32>
    %cst = arith.constant dense<0.000000e+00> : vector<16x96xf32>
    %7 = tpu.matmul %3, %6, %cst {dimension_numbers = #tpu.dot_dimension_numbers<[1], [0], [0], [1], [0, 0, 1, 1], [], []>} : vector<16x32xf32>, vector<32x96xf32>, vector<16x96xf32> -> vector<16x96xf32>
    %c0_7 = arith.constant 0 : index
    %c0_8 = arith.constant 0 : index
    %c0_9 = arith.constant 0 : index
    %8 = vector.load %arg9[%c0_7, %c0_8, %c0_9] : memref<1x1x96xf32, #tpu.memory_space<vmem>>, vector<1x1x96xf32>
    %9 = vector.shape_cast %8 : vector<1x1x96xf32> to vector<1x96xf32>
    %10 = vector.broadcast %9 : vector<1x96xf32> to vector<16x96xf32>
    %11 = arith.addf %7, %10 : vector<16x96xf32>
    %12 = math.tanh %11 : vector<16x96xf32>
    %c0_10 = arith.constant 0 : index
    %c0_11 = arith.constant 0 : index
    %c0_12 = arith.constant 0 : index
    %c0_13 = arith.constant 0 : index
    %13 = vector.load %arg3[%c0_10, %c0_11, %c0_12, %c0_13] : memref<1x2x16x16xf32, #tpu.memory_space<vmem>>, vector<1x1x16x16xf32>
    %14 = vector.shape_cast %13 : vector<1x1x16x16xf32> to vector<16x16xf32>
    %15 = vector.extract_strided_slice %12 {offsets = [0, 0], sizes = [16, 32], strides = [1, 1]} : vector<16x96xf32> to vector<16x32xf32>
    %cst_14 = arith.constant dense<0.000000e+00> : vector<16x32xf32>
    %16 = tpu.matmul %14, %15, %cst_14 {dimension_numbers = #tpu.dot_dimension_numbers<[1], [0], [0], [1], [0, 0, 1, 1], [], []>} : vector<16x16xf32>, vector<16x32xf32>, vector<16x32xf32> -> vector<16x32xf32>
    %c0_15 = arith.constant 0 : index
    %c0_16 = arith.constant 0 : index
    %c0_17 = arith.constant 0 : index
    %c0_18 = arith.constant 0 : index
    %17 = vector.load %arg4[%c0_15, %c0_16, %c0_17, %c0_18] : memref<1x2x16x16xf32, #tpu.memory_space<vmem>>, vector<1x1x16x16xf32>
    %18 = vector.shape_cast %17 : vector<1x1x16x16xf32> to vector<16x16xf32>
    %19 = vector.extract_strided_slice %12 {offsets = [0, 32], sizes = [16, 32], strides = [1, 1]} : vector<16x96xf32> to vector<16x32xf32>
    %cst_19 = arith.constant dense<0.000000e+00> : vector<16x32xf32>
    %20 = tpu.matmul %18, %19, %cst_19 {dimension_numbers = #tpu.dot_dimension_numbers<[1], [0], [0], [1], [0, 0, 1, 1], [], []>} : vector<16x16xf32>, vector<16x32xf32>, vector<16x32xf32> -> vector<16x32xf32>
    %21 = vector.extract_strided_slice %12 {offsets = [0, 64], sizes = [16, 32], strides = [1, 1]} : vector<16x96xf32> to vector<16x32xf32>
    %cst_20 = arith.constant dense<0.000000e+00> : vector<32xf32>
    %22 = vector.multi_reduction <add>, %21, %cst_20 [0] : vector<16x32xf32> to vector<32xf32>
    %23 = vector.shape_cast %22 : vector<32xf32> to vector<1x32xf32>
    %cst_21 = arith.constant 1.600000e+01 : f32
    %24 = vector.broadcast %cst_21 : f32 to vector<1x32xf32>
    %25 = arith.divf %23, %24 : vector<1x32xf32>
    %26 = arith.addf %3, %16 : vector<16x32xf32>
    %c0_22 = arith.constant 0 : index
    %c0_23 = arith.constant 0 : index
    %c0_24 = arith.constant 0 : index
    %c0_25 = arith.constant 0 : index
    %27 = vector.load %arg12[%c0_22, %c0_23, %c0_24, %c0_25] : memref<1x4x32x32xf32, #tpu.memory_space<vmem>>, vector<1x1x32x32xf32>
    %28 = vector.shape_cast %27 : vector<1x1x32x32xf32> to vector<32x32xf32>
    %cst_26 = arith.constant dense<0.000000e+00> : vector<16x32xf32>
    %29 = tpu.matmul %26, %28, %cst_26 {dimension_numbers = #tpu.dot_dimension_numbers<[1], [0], [0], [1], [0, 0, 1, 1], [], []>} : vector<16x32xf32>, vector<32x32xf32>, vector<16x32xf32> -> vector<16x32xf32>
    %c0_27 = arith.constant 0 : index
    %c0_28 = arith.constant 0 : index
    %c0_29 = arith.constant 0 : index
    %c0_30 = arith.constant 0 : index
    %30 = vector.load %arg13[%c0_27, %c0_28, %c0_29, %c0_30] : memref<1x14x1x32xf32, #tpu.memory_space<vmem>>, vector<1x1x1x32xf32>
    %31 = vector.shape_cast %30 : vector<1x1x1x32xf32> to vector<1x32xf32>
    %32 = vector.broadcast %31 : vector<1x32xf32> to vector<16x32xf32>
    %33 = arith.addf %29, %32 : vector<16x32xf32>
    %34 = math.tanh %33 : vector<16x32xf32>
    %35 = arith.addf %3, %20 : vector<16x32xf32>
    %c0_31 = arith.constant 0 : index
    %c1 = arith.constant 1 : index
    %c0_32 = arith.constant 0 : index
    %c0_33 = arith.constant 0 : index
    %36 = vector.load %arg12[%c0_31, %c1, %c0_32, %c0_33] : memref<1x4x32x32xf32, #tpu.memory_space<vmem>>, vector<1x1x32x32xf32>
    %37 = vector.shape_cast %36 : vector<1x1x32x32xf32> to vector<32x32xf32>
    %cst_34 = arith.constant dense<0.000000e+00> : vector<16x32xf32>
    %38 = tpu.matmul %35, %37, %cst_34 {dimension_numbers = #tpu.dot_dimension_numbers<[1], [0], [0], [1], [0, 0, 1, 1], [], []>} : vector<16x32xf32>, vector<32x32xf32>, vector<16x32xf32> -> vector<16x32xf32>
    %c0_35 = arith.constant 0 : index
    %c1_36 = arith.constant 1 : index
    %c0_37 = arith.constant 0 : index
    %c0_38 = arith.constant 0 : index
    %39 = vector.load %arg13[%c0_35, %c1_36, %c0_37, %c0_38] : memref<1x14x1x32xf32, #tpu.memory_space<vmem>>, vector<1x1x1x32xf32>
    %40 = vector.shape_cast %39 : vector<1x1x1x32xf32> to vector<1x32xf32>
    %41 = vector.broadcast %40 : vector<1x32xf32> to vector<16x32xf32>
    %42 = arith.addf %38, %41 : vector<16x32xf32>
    %43 = math.tanh %42 : vector<16x32xf32>
    %44 = arith.addf %3, %4 : vector<16x32xf32>
    %45 = vector.broadcast %25 : vector<1x32xf32> to vector<16x32xf32>
    %46 = arith.addf %44, %45 : vector<16x32xf32>
    %c0_39 = arith.constant 0 : index
    %c8 = arith.constant 8 : index
    %c0_40 = arith.constant 0 : index
    %c0_41 = arith.constant 0 : index
    %47 = vector.load %arg13[%c0_39, %c8, %c0_40, %c0_41] : memref<1x14x1x32xf32, #tpu.memory_space<vmem>>, vector<1x1x1x32xf32>
    %48 = vector.shape_cast %47 : vector<1x1x1x32xf32> to vector<1x32xf32>
    %c0_42 = arith.constant 0 : index
    %c9 = arith.constant 9 : index
    %c0_43 = arith.constant 0 : index
    %c0_44 = arith.constant 0 : index
    %49 = vector.load %arg13[%c0_42, %c9, %c0_43, %c0_44] : memref<1x14x1x32xf32, #tpu.memory_space<vmem>>, vector<1x1x1x32xf32>
    %50 = vector.shape_cast %49 : vector<1x1x1x32xf32> to vector<1x32xf32>
    %cst_45 = arith.constant dense<0.000000e+00> : vector<16xf32>
    %51 = vector.multi_reduction <add>, %46, %cst_45 [1] : vector<16x32xf32> to vector<16xf32>
    %52 = vector.shape_cast %51 : vector<16xf32> to vector<16x1xf32>
    %cst_46 = arith.constant 3.200000e+01 : f32
    %53 = vector.broadcast %cst_46 : f32 to vector<16x1xf32>
    %54 = arith.divf %52, %53 : vector<16x1xf32>
    %55 = vector.broadcast %54 : vector<16x1xf32> to vector<16x32xf32>
    %56 = arith.subf %46, %55 : vector<16x32xf32>
    %57 = arith.mulf %56, %56 : vector<16x32xf32>
    %cst_47 = arith.constant dense<0.000000e+00> : vector<16xf32>
    %58 = vector.multi_reduction <add>, %57, %cst_47 [1] : vector<16x32xf32> to vector<16xf32>
    %59 = vector.shape_cast %58 : vector<16xf32> to vector<16x1xf32>
    %cst_48 = arith.constant 3.200000e+01 : f32
    %60 = vector.broadcast %cst_48 : f32 to vector<16x1xf32>
    %61 = arith.divf %59, %60 : vector<16x1xf32>
    %62 = vector.broadcast %54 : vector<16x1xf32> to vector<16x32xf32>
    %63 = arith.subf %46, %62 : vector<16x32xf32>
    %cst_49 = arith.constant 9.99999974E-6 : f32
    %64 = vector.broadcast %cst_49 : f32 to vector<16x1xf32>
    %65 = arith.addf %61, %64 : vector<16x1xf32>
    %66 = math.rsqrt %65 : vector<16x1xf32>
    %67 = vector.broadcast %66 : vector<16x1xf32> to vector<16x32xf32>
    %68 = arith.mulf %63, %67 : vector<16x32xf32>
    %69 = vector.broadcast %48 : vector<1x32xf32> to vector<16x32xf32>
    %70 = arith.mulf %68, %69 : vector<16x32xf32>
    %71 = vector.broadcast %50 : vector<1x32xf32> to vector<16x32xf32>
    %72 = arith.addf %70, %71 : vector<16x32xf32>
    %c0_50 = arith.constant 0 : index
    %c4 = arith.constant 4 : index
    %c0_51 = arith.constant 0 : index
    %c0_52 = arith.constant 0 : index
    %73 = vector.load %arg13[%c0_50, %c4, %c0_51, %c0_52] : memref<1x14x1x32xf32, #tpu.memory_space<vmem>>, vector<1x1x1x32xf32>
    %74 = vector.shape_cast %73 : vector<1x1x1x32xf32> to vector<1x32xf32>
    %c0_53 = arith.constant 0 : index
    %c5 = arith.constant 5 : index
    %c0_54 = arith.constant 0 : index
    %c0_55 = arith.constant 0 : index
    %75 = vector.load %arg13[%c0_53, %c5, %c0_54, %c0_55] : memref<1x14x1x32xf32, #tpu.memory_space<vmem>>, vector<1x1x1x32xf32>
    %76 = vector.shape_cast %75 : vector<1x1x1x32xf32> to vector<1x32xf32>
    %cst_56 = arith.constant dense<0.000000e+00> : vector<16xf32>
    %77 = vector.multi_reduction <add>, %34, %cst_56 [1] : vector<16x32xf32> to vector<16xf32>
    %78 = vector.shape_cast %77 : vector<16xf32> to vector<16x1xf32>
    %cst_57 = arith.constant 3.200000e+01 : f32
    %79 = vector.broadcast %cst_57 : f32 to vector<16x1xf32>
    %80 = arith.divf %78, %79 : vector<16x1xf32>
    %81 = vector.broadcast %80 : vector<16x1xf32> to vector<16x32xf32>
    %82 = arith.subf %34, %81 : vector<16x32xf32>
    %83 = arith.mulf %82, %82 : vector<16x32xf32>
    %cst_58 = arith.constant dense<0.000000e+00> : vector<16xf32>
    %84 = vector.multi_reduction <add>, %83, %cst_58 [1] : vector<16x32xf32> to vector<16xf32>
    %85 = vector.shape_cast %84 : vector<16xf32> to vector<16x1xf32>
    %cst_59 = arith.constant 3.200000e+01 : f32
    %86 = vector.broadcast %cst_59 : f32 to vector<16x1xf32>
    %87 = arith.divf %85, %86 : vector<16x1xf32>
    %88 = vector.broadcast %80 : vector<16x1xf32> to vector<16x32xf32>
    %89 = arith.subf %34, %88 : vector<16x32xf32>
    %cst_60 = arith.constant 9.99999974E-6 : f32
    %90 = vector.broadcast %cst_60 : f32 to vector<16x1xf32>
    %91 = arith.addf %87, %90 : vector<16x1xf32>
    %92 = math.rsqrt %91 : vector<16x1xf32>
    %93 = vector.broadcast %92 : vector<16x1xf32> to vector<16x32xf32>
    %94 = arith.mulf %89, %93 : vector<16x32xf32>
    %95 = vector.broadcast %74 : vector<1x32xf32> to vector<16x32xf32>
    %96 = arith.mulf %94, %95 : vector<16x32xf32>
    %97 = vector.broadcast %76 : vector<1x32xf32> to vector<16x32xf32>
    %98 = arith.addf %96, %97 : vector<16x32xf32>
    %99 = arith.addf %72, %98 : vector<16x32xf32>
    %c0_61 = arith.constant 0 : index
    %c6 = arith.constant 6 : index
    %c0_62 = arith.constant 0 : index
    %c0_63 = arith.constant 0 : index
    %100 = vector.load %arg13[%c0_61, %c6, %c0_62, %c0_63] : memref<1x14x1x32xf32, #tpu.memory_space<vmem>>, vector<1x1x1x32xf32>
    %101 = vector.shape_cast %100 : vector<1x1x1x32xf32> to vector<1x32xf32>
    %c0_64 = arith.constant 0 : index
    %c7 = arith.constant 7 : index
    %c0_65 = arith.constant 0 : index
    %c0_66 = arith.constant 0 : index
    %102 = vector.load %arg13[%c0_64, %c7, %c0_65, %c0_66] : memref<1x14x1x32xf32, #tpu.memory_space<vmem>>, vector<1x1x1x32xf32>
    %103 = vector.shape_cast %102 : vector<1x1x1x32xf32> to vector<1x32xf32>
    %cst_67 = arith.constant dense<0.000000e+00> : vector<16xf32>
    %104 = vector.multi_reduction <add>, %43, %cst_67 [1] : vector<16x32xf32> to vector<16xf32>
    %105 = vector.shape_cast %104 : vector<16xf32> to vector<16x1xf32>
    %cst_68 = arith.constant 3.200000e+01 : f32
    %106 = vector.broadcast %cst_68 : f32 to vector<16x1xf32>
    %107 = arith.divf %105, %106 : vector<16x1xf32>
    %108 = vector.broadcast %107 : vector<16x1xf32> to vector<16x32xf32>
    %109 = arith.subf %43, %108 : vector<16x32xf32>
    %110 = arith.mulf %109, %109 : vector<16x32xf32>
    %cst_69 = arith.constant dense<0.000000e+00> : vector<16xf32>
    %111 = vector.multi_reduction <add>, %110, %cst_69 [1] : vector<16x32xf32> to vector<16xf32>
    %112 = vector.shape_cast %111 : vector<16xf32> to vector<16x1xf32>
    %cst_70 = arith.constant 3.200000e+01 : f32
    %113 = vector.broadcast %cst_70 : f32 to vector<16x1xf32>
    %114 = arith.divf %112, %113 : vector<16x1xf32>
    %115 = vector.broadcast %107 : vector<16x1xf32> to vector<16x32xf32>
    %116 = arith.subf %43, %115 : vector<16x32xf32>
    %cst_71 = arith.constant 9.99999974E-6 : f32
    %117 = vector.broadcast %cst_71 : f32 to vector<16x1xf32>
    %118 = arith.addf %114, %117 : vector<16x1xf32>
    %119 = math.rsqrt %118 : vector<16x1xf32>
    %120 = vector.broadcast %119 : vector<16x1xf32> to vector<16x32xf32>
    %121 = arith.mulf %116, %120 : vector<16x32xf32>
    %122 = vector.broadcast %101 : vector<1x32xf32> to vector<16x32xf32>
    %123 = arith.mulf %121, %122 : vector<16x32xf32>
    %124 = vector.broadcast %103 : vector<1x32xf32> to vector<16x32xf32>
    %125 = arith.addf %123, %124 : vector<16x32xf32>
    %126 = arith.addf %99, %125 : vector<16x32xf32>
    %c0_72 = arith.constant 0 : index
    %c0_73 = arith.constant 0 : index
    %c0_74 = arith.constant 0 : index
    %127 = vector.load %arg10[%c0_72, %c0_73, %c0_74] : memref<1x32x64xf32, #tpu.memory_space<vmem>>, vector<1x32x64xf32>
    %128 = vector.shape_cast %127 : vector<1x32x64xf32> to vector<32x64xf32>
    %cst_75 = arith.constant dense<0.000000e+00> : vector<16x64xf32>
    %129 = tpu.matmul %126, %128, %cst_75 {dimension_numbers = #tpu.dot_dimension_numbers<[1], [0], [0], [1], [0, 0, 1, 1], [], []>} : vector<16x32xf32>, vector<32x64xf32>, vector<16x64xf32> -> vector<16x64xf32>
    %c0_76 = arith.constant 0 : index
    %c0_77 = arith.constant 0 : index
    %c0_78 = arith.constant 0 : index
    %130 = vector.load %arg11[%c0_76, %c0_77, %c0_78] : memref<1x1x64xf32, #tpu.memory_space<vmem>>, vector<1x1x64xf32>
    %131 = vector.shape_cast %130 : vector<1x1x64xf32> to vector<1x64xf32>
    %132 = vector.broadcast %131 : vector<1x64xf32> to vector<16x64xf32>
    %133 = arith.addf %129, %132 : vector<16x64xf32>
    %134 = math.tanh %133 : vector<16x64xf32>
    %c0_79 = arith.constant 0 : index
    %c1_80 = arith.constant 1 : index
    %c0_81 = arith.constant 0 : index
    %c0_82 = arith.constant 0 : index
    %135 = vector.load %arg3[%c0_79, %c1_80, %c0_81, %c0_82] : memref<1x2x16x16xf32, #tpu.memory_space<vmem>>, vector<1x1x16x16xf32>
    %136 = vector.shape_cast %135 : vector<1x1x16x16xf32> to vector<16x16xf32>
    %137 = vector.extract_strided_slice %134 {offsets = [0, 0], sizes = [16, 32], strides = [1, 1]} : vector<16x64xf32> to vector<16x32xf32>
    %cst_83 = arith.constant dense<0.000000e+00> : vector<16x32xf32>
    %138 = tpu.matmul %136, %137, %cst_83 {dimension_numbers = #tpu.dot_dimension_numbers<[1], [0], [0], [1], [0, 0, 1, 1], [], []>} : vector<16x16xf32>, vector<16x32xf32>, vector<16x32xf32> -> vector<16x32xf32>
    %c0_84 = arith.constant 0 : index
    %c1_85 = arith.constant 1 : index
    %c0_86 = arith.constant 0 : index
    %c0_87 = arith.constant 0 : index
    %139 = vector.load %arg4[%c0_84, %c1_85, %c0_86, %c0_87] : memref<1x2x16x16xf32, #tpu.memory_space<vmem>>, vector<1x1x16x16xf32>
    %140 = vector.shape_cast %139 : vector<1x1x16x16xf32> to vector<16x16xf32>
    %141 = vector.extract_strided_slice %134 {offsets = [0, 32], sizes = [16, 32], strides = [1, 1]} : vector<16x64xf32> to vector<16x32xf32>
    %cst_88 = arith.constant dense<0.000000e+00> : vector<16x32xf32>
    %142 = tpu.matmul %140, %141, %cst_88 {dimension_numbers = #tpu.dot_dimension_numbers<[1], [0], [0], [1], [0, 0, 1, 1], [], []>} : vector<16x16xf32>, vector<16x32xf32>, vector<16x32xf32> -> vector<16x32xf32>
    %143 = arith.addf %126, %138 : vector<16x32xf32>
    %c0_89 = arith.constant 0 : index
    %c2 = arith.constant 2 : index
    %c0_90 = arith.constant 0 : index
    %c0_91 = arith.constant 0 : index
    %144 = vector.load %arg12[%c0_89, %c2, %c0_90, %c0_91] : memref<1x4x32x32xf32, #tpu.memory_space<vmem>>, vector<1x1x32x32xf32>
    %145 = vector.shape_cast %144 : vector<1x1x32x32xf32> to vector<32x32xf32>
    %cst_92 = arith.constant dense<0.000000e+00> : vector<16x32xf32>
    %146 = tpu.matmul %143, %145, %cst_92 {dimension_numbers = #tpu.dot_dimension_numbers<[1], [0], [0], [1], [0, 0, 1, 1], [], []>} : vector<16x32xf32>, vector<32x32xf32>, vector<16x32xf32> -> vector<16x32xf32>
    %c0_93 = arith.constant 0 : index
    %c2_94 = arith.constant 2 : index
    %c0_95 = arith.constant 0 : index
    %c0_96 = arith.constant 0 : index
    %147 = vector.load %arg13[%c0_93, %c2_94, %c0_95, %c0_96] : memref<1x14x1x32xf32, #tpu.memory_space<vmem>>, vector<1x1x1x32xf32>
    %148 = vector.shape_cast %147 : vector<1x1x1x32xf32> to vector<1x32xf32>
    %149 = vector.broadcast %148 : vector<1x32xf32> to vector<16x32xf32>
    %150 = arith.addf %146, %149 : vector<16x32xf32>
    %151 = math.tanh %150 : vector<16x32xf32>
    %152 = arith.addf %126, %142 : vector<16x32xf32>
    %c0_97 = arith.constant 0 : index
    %c3 = arith.constant 3 : index
    %c0_98 = arith.constant 0 : index
    %c0_99 = arith.constant 0 : index
    %153 = vector.load %arg12[%c0_97, %c3, %c0_98, %c0_99] : memref<1x4x32x32xf32, #tpu.memory_space<vmem>>, vector<1x1x32x32xf32>
    %154 = vector.shape_cast %153 : vector<1x1x32x32xf32> to vector<32x32xf32>
    %cst_100 = arith.constant dense<0.000000e+00> : vector<16x32xf32>
    %155 = tpu.matmul %152, %154, %cst_100 {dimension_numbers = #tpu.dot_dimension_numbers<[1], [0], [0], [1], [0, 0, 1, 1], [], []>} : vector<16x32xf32>, vector<32x32xf32>, vector<16x32xf32> -> vector<16x32xf32>
    %c0_101 = arith.constant 0 : index
    %c3_102 = arith.constant 3 : index
    %c0_103 = arith.constant 0 : index
    %c0_104 = arith.constant 0 : index
    %156 = vector.load %arg13[%c0_101, %c3_102, %c0_103, %c0_104] : memref<1x14x1x32xf32, #tpu.memory_space<vmem>>, vector<1x1x1x32xf32>
    %157 = vector.shape_cast %156 : vector<1x1x1x32xf32> to vector<1x32xf32>
    %158 = vector.broadcast %157 : vector<1x32xf32> to vector<16x32xf32>
    %159 = arith.addf %155, %158 : vector<16x32xf32>
    %160 = math.tanh %159 : vector<16x32xf32>
    %c0_105 = arith.constant 0 : index
    %c10 = arith.constant 10 : index
    %c0_106 = arith.constant 0 : index
    %c0_107 = arith.constant 0 : index
    %161 = vector.load %arg13[%c0_105, %c10, %c0_106, %c0_107] : memref<1x14x1x32xf32, #tpu.memory_space<vmem>>, vector<1x1x1x32xf32>
    %162 = vector.shape_cast %161 : vector<1x1x1x32xf32> to vector<1x32xf32>
    %c0_108 = arith.constant 0 : index
    %c11 = arith.constant 11 : index
    %c0_109 = arith.constant 0 : index
    %c0_110 = arith.constant 0 : index
    %163 = vector.load %arg13[%c0_108, %c11, %c0_109, %c0_110] : memref<1x14x1x32xf32, #tpu.memory_space<vmem>>, vector<1x1x1x32xf32>
    %164 = vector.shape_cast %163 : vector<1x1x1x32xf32> to vector<1x32xf32>
    %cst_111 = arith.constant dense<0.000000e+00> : vector<16xf32>
    %165 = vector.multi_reduction <add>, %151, %cst_111 [1] : vector<16x32xf32> to vector<16xf32>
    %166 = vector.shape_cast %165 : vector<16xf32> to vector<16x1xf32>
    %cst_112 = arith.constant 3.200000e+01 : f32
    %167 = vector.broadcast %cst_112 : f32 to vector<16x1xf32>
    %168 = arith.divf %166, %167 : vector<16x1xf32>
    %169 = vector.broadcast %168 : vector<16x1xf32> to vector<16x32xf32>
    %170 = arith.subf %151, %169 : vector<16x32xf32>
    %171 = arith.mulf %170, %170 : vector<16x32xf32>
    %cst_113 = arith.constant dense<0.000000e+00> : vector<16xf32>
    %172 = vector.multi_reduction <add>, %171, %cst_113 [1] : vector<16x32xf32> to vector<16xf32>
    %173 = vector.shape_cast %172 : vector<16xf32> to vector<16x1xf32>
    %cst_114 = arith.constant 3.200000e+01 : f32
    %174 = vector.broadcast %cst_114 : f32 to vector<16x1xf32>
    %175 = arith.divf %173, %174 : vector<16x1xf32>
    %176 = vector.broadcast %168 : vector<16x1xf32> to vector<16x32xf32>
    %177 = arith.subf %151, %176 : vector<16x32xf32>
    %cst_115 = arith.constant 9.99999974E-6 : f32
    %178 = vector.broadcast %cst_115 : f32 to vector<16x1xf32>
    %179 = arith.addf %175, %178 : vector<16x1xf32>
    %180 = math.rsqrt %179 : vector<16x1xf32>
    %181 = vector.broadcast %180 : vector<16x1xf32> to vector<16x32xf32>
    %182 = arith.mulf %177, %181 : vector<16x32xf32>
    %183 = vector.broadcast %162 : vector<1x32xf32> to vector<16x32xf32>
    %184 = arith.mulf %182, %183 : vector<16x32xf32>
    %185 = vector.broadcast %164 : vector<1x32xf32> to vector<16x32xf32>
    %186 = arith.addf %184, %185 : vector<16x32xf32>
    %c0_116 = arith.constant 0 : index
    %c12 = arith.constant 12 : index
    %c0_117 = arith.constant 0 : index
    %c0_118 = arith.constant 0 : index
    %187 = vector.load %arg13[%c0_116, %c12, %c0_117, %c0_118] : memref<1x14x1x32xf32, #tpu.memory_space<vmem>>, vector<1x1x1x32xf32>
    %188 = vector.shape_cast %187 : vector<1x1x1x32xf32> to vector<1x32xf32>
    %c0_119 = arith.constant 0 : index
    %c13 = arith.constant 13 : index
    %c0_120 = arith.constant 0 : index
    %c0_121 = arith.constant 0 : index
    %189 = vector.load %arg13[%c0_119, %c13, %c0_120, %c0_121] : memref<1x14x1x32xf32, #tpu.memory_space<vmem>>, vector<1x1x1x32xf32>
    %190 = vector.shape_cast %189 : vector<1x1x1x32xf32> to vector<1x32xf32>
    %cst_122 = arith.constant dense<0.000000e+00> : vector<16xf32>
    %191 = vector.multi_reduction <add>, %160, %cst_122 [1] : vector<16x32xf32> to vector<16xf32>
    %192 = vector.shape_cast %191 : vector<16xf32> to vector<16x1xf32>
    %cst_123 = arith.constant 3.200000e+01 : f32
    %193 = vector.broadcast %cst_123 : f32 to vector<16x1xf32>
    %194 = arith.divf %192, %193 : vector<16x1xf32>
    %195 = vector.broadcast %194 : vector<16x1xf32> to vector<16x32xf32>
    %196 = arith.subf %160, %195 : vector<16x32xf32>
    %197 = arith.mulf %196, %196 : vector<16x32xf32>
    %cst_124 = arith.constant dense<0.000000e+00> : vector<16xf32>
    %198 = vector.multi_reduction <add>, %197, %cst_124 [1] : vector<16x32xf32> to vector<16xf32>
    %199 = vector.shape_cast %198 : vector<16xf32> to vector<16x1xf32>
    %cst_125 = arith.constant 3.200000e+01 : f32
    %200 = vector.broadcast %cst_125 : f32 to vector<16x1xf32>
    %201 = arith.divf %199, %200 : vector<16x1xf32>
    %202 = vector.broadcast %194 : vector<16x1xf32> to vector<16x32xf32>
    %203 = arith.subf %160, %202 : vector<16x32xf32>
    %cst_126 = arith.constant 9.99999974E-6 : f32
    %204 = vector.broadcast %cst_126 : f32 to vector<16x1xf32>
    %205 = arith.addf %201, %204 : vector<16x1xf32>
    %206 = math.rsqrt %205 : vector<16x1xf32>
    %207 = vector.broadcast %206 : vector<16x1xf32> to vector<16x32xf32>
    %208 = arith.mulf %203, %207 : vector<16x32xf32>
    %209 = vector.broadcast %188 : vector<1x32xf32> to vector<16x32xf32>
    %210 = arith.mulf %208, %209 : vector<16x32xf32>
    %211 = vector.broadcast %190 : vector<1x32xf32> to vector<16x32xf32>
    %212 = arith.addf %210, %211 : vector<16x32xf32>
    %213 = arith.addf %186, %212 : vector<16x32xf32>
    %214 = arith.addf %213, %3 : vector<16x32xf32>
    %c0_127 = arith.constant 0 : index
    %c0_128 = arith.constant 0 : index
    %215 = vector.load %arg19[%c0_127, %c0_128] : memref<16x32xf32, #tpu.memory_space<vmem>>, vector<16x32xf32>
    tpu.vector_store %arg19[%c0_127, %c0_128], %214 {strides = array<i32>} : memref<16x32xf32, #tpu.memory_space<vmem>>, vector<16x32xf32>,
    %c2_i32 = arith.constant 2 : i32
    %216 = arith.cmpi eq, %arg1, %c2_i32 : i32
    %217 = arith.extui %216 : i1 to i32
    %c0_i32_129 = arith.constant 0 : i32
    %218 = arith.cmpi ne, %217, %c0_i32_129 : i32
    scf.if %218 {
      %c0_130 = arith.constant 0 : index
      %c0_131 = arith.constant 0 : index
      %219 = vector.load %arg14[%c0_130, %c0_131] : memref<32x32xf32, #tpu.memory_space<vmem>>, vector<32x32xf32>
      %cst_132 = arith.constant dense<0.000000e+00> : vector<16x32xf32>
      %220 = tpu.matmul %214, %219, %cst_132 {dimension_numbers = #tpu.dot_dimension_numbers<[1], [0], [0], [1], [0, 0, 1, 1], [], []>} : vector<16x32xf32>, vector<32x32xf32>, vector<16x32xf32> -> vector<16x32xf32>
      %c0_133 = arith.constant 0 : index
      %c0_134 = arith.constant 0 : index
      %221 = vector.load %arg15[%c0_133, %c0_134] : memref<1x32xf32, #tpu.memory_space<vmem>>, vector<1x32xf32>
      %222 = vector.broadcast %221 : vector<1x32xf32> to vector<16x32xf32>
      %223 = arith.addf %220, %222 : vector<16x32xf32>
      %224 = math.tanh %223 : vector<16x32xf32>
      %c0_135 = arith.constant 0 : index
      %c0_136 = arith.constant 0 : index
      %225 = vector.load %arg16[%c0_135, %c0_136] : memref<32x3xf32, #tpu.memory_space<vmem>>, vector<32x3xf32>
      %cst_137 = arith.constant dense<0.000000e+00> : vector<16x3xf32>
      %226 = tpu.matmul %224, %225, %cst_137 {dimension_numbers = #tpu.dot_dimension_numbers<[1], [0], [0], [1], [0, 0, 1, 1], [], []>} : vector<16x32xf32>, vector<32x3xf32>, vector<16x3xf32> -> vector<16x3xf32>
      %c0_138 = arith.constant 0 : index
      %c0_139 = arith.constant 0 : index
      %227 = vector.load %arg17[%c0_138, %c0_139] : memref<1x3xf32, #tpu.memory_space<vmem>>, vector<1x3xf32>
      %228 = vector.broadcast %227 : vector<1x3xf32> to vector<16x3xf32>
      %229 = arith.addf %226, %228 : vector<16x3xf32>
      %c0_140 = arith.constant 0 : index
      %c0_141 = arith.constant 0 : index
      %c0_142 = arith.constant 0 : index
      %230 = vector.load %arg18[%c0_140, %c0_141, %c0_142] : memref<1x16x3xf32, #tpu.memory_space<vmem>>, vector<1x16x3xf32>
      %231 = vector.shape_cast %230 : vector<1x16x3xf32> to vector<16x3xf32>
      %232 = vector.shape_cast %229 : vector<16x3xf32> to vector<1x16x3xf32>
      tpu.vector_store %arg18[%c0_140, %c0_141, %c0_142], %232 {strides = array<i32>} : memref<1x16x3xf32, #tpu.memory_space<vmem>>, vector<1x16x3xf32>,
    } else {
    }
    return
  }
  func.func @transform_0(%arg0: i32, %arg1: i32) -> (i32, i32, i32) {
    %c0_i32 = arith.constant 0 : i32
    %c0_i32_0 = arith.constant 0 : i32
    %c0_i32_1 = arith.constant 0 : i32
    return %arg0, %c0_i32, %c0_i32_0 : i32, i32, i32
  }
  func.func @transform_1(%arg0: i32, %arg1: i32) -> (i32, i32, i32, i32) {
    %c0_i32 = arith.constant 0 : i32
    %c0_i32_0 = arith.constant 0 : i32
    %c0_i32_1 = arith.constant 0 : i32
    return %arg0, %arg1, %c0_i32, %c0_i32_0 : i32, i32, i32, i32
  }
  func.func @transform_2(%arg0: i32, %arg1: i32) -> (i32, i32, i32, i32) {
    %c0_i32 = arith.constant 0 : i32
    %c0_i32_0 = arith.constant 0 : i32
    %c0_i32_1 = arith.constant 0 : i32
    return %arg0, %arg1, %c0_i32, %c0_i32_0 : i32, i32, i32, i32
  }
  func.func @transform_3(%arg0: i32, %arg1: i32) -> (i32, i32) {
    %c0_i32 = arith.constant 0 : i32
    %c0_i32_0 = arith.constant 0 : i32
    %c0_i32_1 = arith.constant 0 : i32
    return %c0_i32, %c0_i32_0 : i32, i32
  }
  func.func @transform_4(%arg0: i32, %arg1: i32) -> (i32, i32) {
    %c0_i32 = arith.constant 0 : i32
    %c0_i32_0 = arith.constant 0 : i32
    %c0_i32_1 = arith.constant 0 : i32
    return %c0_i32, %c0_i32_0 : i32, i32
  }
  func.func @transform_5(%arg0: i32, %arg1: i32) -> (i32, i32) {
    %c0_i32 = arith.constant 0 : i32
    %c0_i32_0 = arith.constant 0 : i32
    %c0_i32_1 = arith.constant 0 : i32
    return %c0_i32, %c0_i32_0 : i32, i32
  }
  func.func @transform_6(%arg0: i32, %arg1: i32) -> (i32, i32, i32) {
    %c0_i32 = arith.constant 0 : i32
    %c0_i32_0 = arith.constant 0 : i32
    %c0_i32_1 = arith.constant 0 : i32
    return %arg1, %c0_i32, %c0_i32_0 : i32, i32, i32
  }
  func.func @transform_7(%arg0: i32, %arg1: i32) -> (i32, i32, i32) {
    %c0_i32 = arith.constant 0 : i32
    %c0_i32_0 = arith.constant 0 : i32
    %c0_i32_1 = arith.constant 0 : i32
    return %arg1, %c0_i32, %c0_i32_0 : i32, i32, i32
  }
  func.func @transform_8(%arg0: i32, %arg1: i32) -> (i32, i32, i32) {
    %c0_i32 = arith.constant 0 : i32
    %c0_i32_0 = arith.constant 0 : i32
    %c0_i32_1 = arith.constant 0 : i32
    return %arg1, %c0_i32, %c0_i32_0 : i32, i32, i32
  }
  func.func @transform_9(%arg0: i32, %arg1: i32) -> (i32, i32, i32) {
    %c0_i32 = arith.constant 0 : i32
    %c0_i32_0 = arith.constant 0 : i32
    %c0_i32_1 = arith.constant 0 : i32
    return %arg1, %c0_i32, %c0_i32_0 : i32, i32, i32
  }
  func.func @transform_10(%arg0: i32, %arg1: i32) -> (i32, i32, i32, i32) {
    %c0_i32 = arith.constant 0 : i32
    %c0_i32_0 = arith.constant 0 : i32
    %c0_i32_1 = arith.constant 0 : i32
    %c0_i32_2 = arith.constant 0 : i32
    return %arg1, %c0_i32, %c0_i32_0, %c0_i32_1 : i32, i32, i32, i32
  }
  func.func @transform_11(%arg0: i32, %arg1: i32) -> (i32, i32, i32, i32) {
    %c0_i32 = arith.constant 0 : i32
    %c0_i32_0 = arith.constant 0 : i32
    %c0_i32_1 = arith.constant 0 : i32
    %c0_i32_2 = arith.constant 0 : i32
    return %arg1, %c0_i32, %c0_i32_0, %c0_i32_1 : i32, i32, i32, i32
  }
  func.func @transform_12(%arg0: i32, %arg1: i32) -> (i32, i32) {
    %c0_i32 = arith.constant 0 : i32
    %c0_i32_0 = arith.constant 0 : i32
    %c0_i32_1 = arith.constant 0 : i32
    return %c0_i32, %c0_i32_0 : i32, i32
  }
  func.func @transform_13(%arg0: i32, %arg1: i32) -> (i32, i32) {
    %c0_i32 = arith.constant 0 : i32
    %c0_i32_0 = arith.constant 0 : i32
    %c0_i32_1 = arith.constant 0 : i32
    return %c0_i32, %c0_i32_0 : i32, i32
  }
  func.func @transform_14(%arg0: i32, %arg1: i32) -> (i32, i32) {
    %c0_i32 = arith.constant 0 : i32
    %c0_i32_0 = arith.constant 0 : i32
    %c0_i32_1 = arith.constant 0 : i32
    return %c0_i32, %c0_i32_0 : i32, i32
  }
  func.func @transform_15(%arg0: i32, %arg1: i32) -> (i32, i32) {
    %c0_i32 = arith.constant 0 : i32
    %c0_i32_0 = arith.constant 0 : i32
    %c0_i32_1 = arith.constant 0 : i32
    return %c0_i32, %c0_i32_0 : i32, i32
  }
  func.func @transform_16(%arg0: i32, %arg1: i32) -> (i32, i32, i32) {
    %c0_i32 = arith.constant 0 : i32
    %c0_i32_0 = arith.constant 0 : i32
    %c0_i32_1 = arith.constant 0 : i32
    return %arg0, %c0_i32, %c0_i32_0 : i32, i32, i32
  }
}

</mosaic_0001>

<bundles_post_ra>
// kernel: model_apply.3
= control target key start
LH: loop header
LB: loop body
LE: loop exit
PB: predicated region body
PF: predicated region fallthrough
CT: control target
= control target key end

     0   :  { %s1849_s18 = smov 0   ;;  %s1851_s19 = smov 0   ;;  %s2178_s0 = inlined_call_operand.vmem [shape: f32[2,16,16], index: 0, kind: input, shape index: {}]   ;;  %s2179_s1 = inlined_call_operand.vmem [shape: f32[6,112,64], index: 1, kind: input, shape index: {}]   ;;  %s2180_s2 = inlined_call_operand.vmem [shape: f32[6,1,64], index: 2, kind: input, shape index: {}]   ;;  %s2181_s3 = inlined_call_operand.vmem [shape: f32[6,1088,16], index: 3, kind: input, shape index: {}]   ;;  %s2182_s4 = inlined_call_operand.vmem [shape: f32[6,1,16], index: 4, kind: input, shape index: {}]   ;;  %s2183_s5 = inlined_call_operand.vmem [shape: f32[2,6,16,16], index: 5, kind: output, shape index: {}]  }
   0x1   :  { %s1853_s20 = smov 0   ;;  %s1855_s21 = smov 0  }
   0x2   :  { %s1857_s22 = smov 0  }
   0x3 LB: > { %s24_s23 = sadd.s32 1, %s1802_s20  ;;  %s27_s24 = sadd.s32 1, %s1806_s21  ;;  %s1810_s22 = sphi %s1857_s22, %s15_s22   ;;  %s1806_s21 = sphi %s1855_s21, %s2187_s21   ;;  %s1802_s20 = sphi %s1853_s20, %s2186_s20   ;;  %s1798_s19 = sphi %s1851_s19, %s2185_s19   ;;  %s1794_s18 = sphi %s1849_s18, %s2184_s18  }
   0x4   : > { %p25_p0 = scmp.ge.s32.totalorder %s24_s23, 2  ;;  %p1306_p1 = scmp.ge.s32.totalorder %s1810_s22, 1 }
   0x5   : > { %p237_p2 = scmp.lt.s32.totalorder %s1810_s22, 13 }
   0x6   : > { %s2189_s23 = smov (%p25_p0, %s24_s23), 0  ;;  %s2191_s24 = smov (!%p25_p0, %s27_s24), %s1806_s21 }
   0x7   : > { %p238_p3 = pnand %p1306_p1, %p237_p2  ;;  %p29_p4 = scmp.ge.s32.totalorder %s2191_s24, 6 }
   0x8   : > { %p285_p5 = scmp.lt.s32.totalorder (!%p238_p3), %s1794_s18, 1  ;;  %vm317_vm0 = vcmask (!%p238_p3), 916480   ;;  %v1812_v0 = vmov (!%p238_p3), 0.0   ;;  %vm320_vm1 = vcmask (!%p238_p3), 130048   ;;  %vm322_vm2 = vcmask (!%p238_p3), 126976   ;;  %p290_p6 = scmp.lt.s32.totalorder (!%p238_p3), %s1798_s19, 5 }
   0x9   : > { %s2193_s24 = smov (%p29_p4, %s2191_s24), 0  ;;  %241 = sbr.rel (%p238_p3) target bundleno = 771 (0x303), region = 40 }
   0xa   : > { %318 = vst.msk [vmem:[#allocation2] sm:$0xff] (!%p238_p3), %vm317_vm0, %v1812_v0  ;;  %319 = vst.msk [vmem:[#allocation2 + $0x8] sm:$0xff] (!%p238_p3), %vm317_vm0, %v1812_v0  ;;  %s1813_s29 = smov (!%p238_p3), 32   ;;  %s1814_s30 = smov (!%p238_p3), 16   ;;  %vm332_vm3 = vcmask (!%p238_p3), 261248   ;;  %vm342_vm4 = vcmask (!%p238_p3), 392448  }
   0xb   : > { %489 = vst [vmem:[#allocation3] sm:$0xff] (!%p238_p3), %v1812_v0  ;;  %490 = vst [vmem:[#allocation3 + $0x8] sm:$0xff] (!%p238_p3), %v1812_v0  ;;  %s1815_s10 = smov (!%p238_p3), 48   ;;  %s1816_s11 = smov (!%p238_p3), 64   ;;  %vm334_vm5 = vcmask (!%p238_p3), 259200   ;;  %vm344_vm6 = vcmask (!%p238_p3), 391424  }
   0xc   : > { %491 = vst [vmem:[#allocation3 + $0x10] sm:$0xff] (!%p238_p3), %v1812_v0  ;;  %492 = vst [vmem:[#allocation3 + $0x18] sm:$0xff] (!%p238_p3), %v1812_v0  ;;  %s1817_s12 = smov (!%p238_p3), 80   ;;  %s1818_s13 = smov (!%p238_p3), 96   ;;  %vm352_vm7 = vcmask (!%p238_p3), 523648   ;;  %vm363_vm8 = vcmask (!%p238_p3), 654848  }
   0xd   : > { %493 = vst [vmem:[#allocation3 + $0x20] sm:$0xff] (!%p238_p3), %v1812_v0  ;;  %494 = vst [vmem:[#allocation3 + $0x28] sm:$0xff] (!%p238_p3), %v1812_v0  ;;  %vm361_vm9 = vcmask (!%p238_p3), 654849   ;;  %vm373_vm10 = vcmask (!%p238_p3), 786048   ;;  %vm371_vm11 = vcmask (!%p238_p3), 786050   ;;  %vm383_vm12 = vcmask (!%p238_p3), 917248  }
   0xe   : > { %495 = vst [vmem:[#allocation3 + $0x30] sm:$0xff] (!%p238_p3), %v1812_v0  ;;  %496 = vst [vmem:[#allocation3 + $0x38] sm:$0xff] (!%p238_p3), %v1812_v0  ;;  %vm381_vm13 = vcmask (!%p238_p3), 917251   ;;  %vm497_vm14 = vcmask (!%p238_p3), 523264   ;;  %vm534_vm15 = vcmask (!%p238_p3), 1044480  }
   0xf   : > { %499 = vst [vmem:[#allocation3 + $0x48] sm:$0xff] (!%p238_p3), %v1812_v0  ;;  %500 = vst [vmem:[#allocation3 + $0x50] sm:$0xff] (!%p238_p3), %v1812_v0 }
  0x10   : > { %501 = vst [vmem:[#allocation3 + $0x58] sm:$0xff] %v1812_v0  ;;  %502 = vst [vmem:[#allocation3 + $0x60] sm:$0xff] %v1812_v0  ;;  %s2195_s18 = smov (!%p285_p5, %s1794_s18), 1  ;;  %s2197_s19 = smov (!%p290_p6, %s1798_s19), 5 }
  0x11   : > { %503 = vst [vmem:[#allocation3 + $0x68] sm:$0xff] %v1812_v0  ;;  %504 = vst [vmem:[#allocation3 + $0x70] sm:$0xff] %v1812_v0  ;;  %s1321_s25 = sshll.u32 %s2195_s18, 4  ;;  %s1722_s6 = smul.u32 112, %s2197_s19 }
  0x12   : > { %505 = vst [vmem:[#allocation3 + $0x78] sm:$0xff] %v1812_v0  ;;  %506 = vst [vmem:[#allocation3 + $0x80] sm:$0xff] %v1812_v0  ;;  %s289_s28 = scalar_lea.vmem %s2178_s0, %s1321_s25  ;;  %s1723_s14 = smul.u32 1088, %s2197_s19 }
  0x13   : > { %v315_v1 = vld [vmem:[%s289_s28] sm:$0xff]  ;;  %v316_v2 = vld [vmem:[%s289_s28 + $0x8] sm:$0xff]  ;;  %s1922_s9 = scalar_lea.vmem %s2179_s1, %s1722_s6  ;;  %498 = vst.msk [vmem:[#allocation3 + $0x40] sm:$0xff] %vm497_vm14, %v1812_v0  ;;  %507 = vst.msk [vmem:[#allocation3 + $0x88] sm:$0xff] %vm497_vm14, %v1812_v0  ;;  %s297_s27 = scalar_lea.vmem %s2180_s2, %s2197_s19 }
  0x14   : > { %336 = vrot.lane.b32.xlu1 %v315_v1, %s1813_s29  ;;  %326 = vrot.lane.b32.xlu0 %v315_v1, %s1814_s30  ;;  %321 = vst.msk [vmem:[#allocation2 + $0x3] sm:$0xff] %vm320_vm1, %v315_v1  ;;  %v387_v3 = vld [vmem:[%s1922_s9] sm:$0xff]  ;;  %v388_v4 = vld [vmem:[%s1922_s9 + $0x8] sm:$0xff]  ;;  %s1950_s17 = scalar_lea.vmem %s2181_s3, %s1723_s14  ;;  %s1724_s6 = smul.u32 12, %s2195_s18 }
  0x15   : > { %323 = vst.msk [vmem:[#allocation2 + $0xb] sm:$0x1f] %vm322_vm2, %v316_v2  ;;  %v389_v5 = vld [vmem:[%s1922_s9 + $0x10] sm:$0xff]  ;;  %v1550_v6 = vpack.c.bf16 %v388_v4, %v387_v3  ;;  %v390_v7 = vld [vmem:[%s1922_s9 + $0x18] sm:$0xff]  ;;  %v391_v9 = vld [vmem:[%s1922_s9 + $0x20] sm:$0xff]  ;;  %vm578_vm2 = vcmask 1040384  }
  0x16   : > { %v1554_v8 = vpack.c.bf16 %v390_v7, %v389_v5  ;;  %v392_v10 = vld [vmem:[%s1922_s9 + $0x28] sm:$0xff]  ;;  %v393_v12 = vld [vmem:[%s1922_s9 + $0x30] sm:$0xff]  ;;  %v394_v13 = vld [vmem:[%s1922_s9 + $0x38] sm:$0xff]  ;;  %s1311_s7 = sshll.u32 %s2197_s19, 1 }
  0x17   : > { %1551 = vmatprep.subr.bf16.mxu0 %v1550_v6  ;;  %v1558_v11 = vpack.c.bf16 %v392_v10, %v391_v9  ;;  %v1562_v14 = vpack.c.bf16 %v394_v13, %v393_v12  ;;  %v395_v15 = vld [vmem:[%s1922_s9 + $0x40] sm:$0xff]  ;;  %v396_v16 = vld [vmem:[%s1922_s9 + $0x48] sm:$0xff]  ;;  %v397_v18 = vld [vmem:[%s1922_s9 + $0x50] sm:$0xff]  ;;  %s312_s8 = sadd.s32 %s1724_s6, %s1311_s7 }
  0x18   : > { %338 = vrot.lane.b32.xlu1 %v316_v2, %s1813_s29  ;;  %328 = vrot.lane.b32.xlu0 %v316_v2, %s1814_s30  ;;  %v1566_v17 = vpack.c.bf16 %v396_v16, %v395_v15  ;;  %v398_v19 = vld [vmem:[%s1922_s9 + $0x58] sm:$0xff]  ;;  %v399_v21 = vld [vmem:[%s1922_s9 + $0x60] sm:$0xff]  ;;  %s305_s30 = scalar_lea.vmem %s2182_s4, %s2197_s19 }
  0x19   : > { %1553 = vmatpush3.bf16.msra.mxu0 %v1550_v6  ;;  %v1570_v20 = vpack.c.bf16 %v398_v19, %v397_v18  ;;  %v400_v22 = vld [vmem:[%s1922_s9 + $0x68] sm:$0xff]  ;;  %v664_v38 = vld [vmem:[%s1950_s17 + $0x80] sm:$0xff]  ;;  %v666_v43 = vld [vmem:[%s1950_s17 + $0x90] sm:$0xff]  ;;  %s1312_s9 = sshll.u32 %s312_s8, 3 }
  0x1a   : > { %1555 = vmatprep.subr.bf16.mxu0 %v1554_v8  ;;  %v1574_v23 = vpack.c.bf16 %v400_v22, %v399_v21  ;;  %v665_v39 = vld [vmem:[%s1950_s17 + $0x88] sm:$0xff]  ;;  %v648_v40 = vld [vmem:[%s1950_s17] sm:$0xff]  ;;  %v667_v44 = vld [vmem:[%s1950_s17 + $0x98] sm:$0xff] }
  0x1b   : > { %v1578_v41 = vpack.c.bf16 %v665_v39, %v664_v38  ;;  %v649_v42 = vld [vmem:[%s1950_s17 + $0x8] sm:$0xff]  ;;  %v1582_v46 = vpack.c.bf16 %v667_v44, %v666_v43  ;;  %v696_v47 = vld [vmem:[%s1950_s17 + $0x180] sm:$0xff]  ;;  %v650_v49 = vld [vmem:[%s1950_s17 + $0x10] sm:$0xff] }
  0x1c   : > { %348 = vrot.lane.b32.xlu1 %v316_v2, %s1815_s10  ;;  %346 = vrot.lane.b32.xlu0 %v315_v1, %s1815_s10  ;;  %v1580_v45 = vpack.c.bf16 %v649_v42, %v648_v40  ;;  %v697_v48 = vld [vmem:[%s1950_s17 + $0x188] sm:$0xff]  ;;  %v651_v51 = vld [vmem:[%s1950_s17 + $0x18] sm:$0xff] }
  0x1d   : > { %1557 = vmatpush3.bf16.msra.mxu0 %v1554_v8  ;;  %1579 = vmatprep.subr.bf16.mxu1 %v1578_v41  ;;  %v1610_v50 = vpack.c.bf16 %v697_v48, %v696_v47  ;;  %v680_v52 = vld [vmem:[%s1950_s17 + $0x100] sm:$0xff]  ;;  %v681_v53 = vld [vmem:[%s1950_s17 + $0x108] sm:$0xff]  ;;  %v1584_v54 = vpack.c.bf16 %v651_v51, %v650_v49  ;;  %v698_v58 = vld [vmem:[%s1950_s17 + $0x190] sm:$0xff] }
  0x1e   : > { %1559 = vmatprep.subr.bf16.mxu0 %v1558_v11  ;;  %1581 = vmatpush3.bf16.msra.mxu1 %v1580_v45  ;;  %v1612_v55 = vpack.c.bf16 %v681_v53, %v680_v52  ;;  %v668_v56 = vld [vmem:[%s1950_s17 + $0xa0] sm:$0xff]  ;;  %v669_v57 = vld [vmem:[%s1950_s17 + $0xa8] sm:$0xff]  ;;  %v699_v60 = vld [vmem:[%s1950_s17 + $0x198] sm:$0xff] }
  0x1f   : > { %1583 = vmatprep.subr.bf16.mxu1 %v1582_v46  ;;  %v1586_v59 = vpack.c.bf16 %v669_v57, %v668_v56  ;;  %v652_v61 = vld [vmem:[%s1950_s17 + $0x20] sm:$0xff]  ;;  %v653_v62 = vld [vmem:[%s1950_s17 + $0x28] sm:$0xff]  ;;  %v1614_v63 = vpack.c.bf16 %v699_v60, %v698_v58  ;;  %v682_v0 = vld [vmem:[%s1950_s17 + $0x110] sm:$0xff] }
  0x20   : > { %357 = vrot.lane.b32.xlu1 %v316_v2, %s1816_s11  ;;  %355 = vrot.lane.b32.xlu0 %v315_v1, %s1816_s11  ;;  %v671_v4 = vld [vmem:[%s1950_s17 + $0xb8] sm:$0xff]  ;;  %v700_v5 = vld [vmem:[%s1950_s17 + $0x1a0] sm:$0xff]  ;;  %v1588_v7 = vpack.c.bf16 %v653_v62, %v652_v61 }
  0x21   : > { %1561 = vmatpush3.bf16.msra.mxu0 %v1558_v11  ;;  %v701_v6 = vld [vmem:[%s1950_s17 + $0x1a8] sm:$0xff]  ;;  %v654_v9 = vld [vmem:[%s1950_s17 + $0x30] sm:$0xff]  ;;  %v684_v10 = vld [vmem:[%s1950_s17 + $0x120] sm:$0xff] }
  0x22   : > { %1563 = vmatprep.subr.bf16.mxu0 %v1562_v14  ;;  %1585 = vmatpush3.bf16.msra.mxu1 %v1584_v54  ;;  %v1618_v8 = vpack.c.bf16 %v701_v6, %v700_v5  ;;  %v655_v12 = vld [vmem:[%s1950_s17 + $0x38] sm:$0xff]  ;;  %v685_v13 = vld [vmem:[%s1950_s17 + $0x128] sm:$0xff]  ;;  %v676_v40 = vld [vmem:[%s1950_s17 + $0xe0] sm:$0xff] }
  0x23   : > { %1587 = vmatprep.subr.bf16.mxu1 %v1586_v59  ;;  %v1620_v15 = vpack.c.bf16 %v685_v13, %v684_v10  ;;  %v673_v16 = vld [vmem:[%s1950_s17 + $0xc8] sm:$0xff]  ;;  %v703_v18 = vld [vmem:[%s1950_s17 + $0x1b8] sm:$0xff]  ;;  %v1592_v22 = vpack.c.bf16 %v655_v12, %v654_v9  ;;  %v706_v42 = vld [vmem:[%s1950_s17 + $0x1d0] sm:$0xff] }
  0x24   : > { %367 = vrot.lane.b32.xlu1 %v316_v2, %s1817_s12  ;;  %365 = vrot.lane.b32.xlu0 %v315_v1, %s1817_s12  ;;  %v687_v21 = vld [vmem:[%s1950_s17 + $0x138] sm:$0xff]  ;;  %v677_v41 = vld [vmem:[%s1950_s17 + $0xe8] sm:$0xff]  ;;  %s314_s12 = scalar_lea.vmem %s2183_s5, %s1312_s9 }
  0x25   : > { %1565 = vmatpush3.bf16.msra.mxu0 %v1562_v14  ;;  %v672_v14 = vld [vmem:[%s1950_s17 + $0xc0] sm:$0xff]  ;;  %v1602_v43 = vpack.c.bf16 %v677_v41, %v676_v40  ;;  %v707_v44 = vld [vmem:[%s1950_s17 + $0x1d8] sm:$0xff]  ;;  %v661_v46 = vld [vmem:[%s1950_s17 + $0x68] sm:$0xff] }
  0x26   : > { %1567 = vmatprep.subr.bf16.mxu0 %v1566_v17  ;;  %1589 = vmatpush3.bf16.msra.mxu1 %v1588_v7  ;;  %v660_v45 = vld [vmem:[%s1950_s17 + $0x60] sm:$0xff]  ;;  %v1630_v47 = vpack.c.bf16 %v707_v44, %v706_v42  ;;  %v690_v49 = vld [vmem:[%s1950_s17 + $0x150] sm:$0xff]  ;;  %v679_v53 = vld [vmem:[%s1950_s17 + $0xf8] sm:$0xff] }
  0x27   : > { %v1604_v48 = vpack.c.bf16 %v661_v46, %v660_v45  ;;  %v678_v52 = vld [vmem:[%s1950_s17 + $0xf0] sm:$0xff]  ;;  %v708_v54 = vld [vmem:[%s1950_s17 + $0x1e0] sm:$0xff]  ;;  %v709_v56 = vld [vmem:[%s1950_s17 + $0x1e8] sm:$0xff] }
  0x28   : > { %377 = vrot.lane.b32.xlu1 %v316_v2, %s1818_s13  ;;  %375 = vrot.lane.b32.xlu0 %v315_v1, %s1818_s13  ;;  %v683_v1 = vld [vmem:[%s1950_s17 + $0x118] sm:$0xff]  ;;  %v670_v2 = vld [vmem:[%s1950_s17 + $0xb0] sm:$0xff]  ;;  %v1634_v59 = vpack.c.bf16 %v709_v56, %v708_v54 }
  0x29   : > { %1569 = vmatpush3.bf16.msra.mxu0 %v1566_v17  ;;  %v1616_v3 = vpack.c.bf16 %v683_v1, %v682_v0  ;;  %v1590_v11 = vpack.c.bf16 %v671_v4, %v670_v2  ;;  %v702_v17 = vld [vmem:[%s1950_s17 + $0x1b0] sm:$0xff]  ;;  %v663_v58 = vld [vmem:[%s1950_s17 + $0x78] sm:$0xff]  ;;  %v692_v61 = vld [vmem:[%s1950_s17 + $0x160] sm:$0xff] }
  0x2a   : > { %1571 = vmatprep.subr.bf16.mxu0 %v1570_v20  ;;  %v1622_v19 = vpack.c.bf16 %v703_v18, %v702_v17  ;;  %v662_v57 = vld [vmem:[%s1950_s17 + $0x70] sm:$0xff]  ;;  %v693_v62 = vld [vmem:[%s1950_s17 + $0x168] sm:$0xff]  ;;  %v728_v4 = vld [vmem:[%s1950_s17 + $0x280] sm:$0xff] }
  0x2b   : > { %1591 = vmatprep.subr.bf16.mxu1 %v1590_v11  ;;  %v1608_v60 = vpack.c.bf16 %v663_v58, %v662_v57  ;;  %v1636_v0 = vpack.c.bf16 %v693_v62, %v692_v61  ;;  %v710_v2 = vld [vmem:[%s1950_s17 + $0x1f0] sm:$0xff]  ;;  %v695_v10 = vld [vmem:[%s1950_s17 + $0x178] sm:$0xff]  ;;  %v712_v42 = vld [vmem:[%s1950_s17 + $0x200] sm:$0xff] }
  0x2c   : > { %1593 = vmatpush3.bf16.msra.mxu1 %v1592_v22  ;;  %v694_v9 = vld [vmem:[%s1950_s17 + $0x170] sm:$0xff]  ;;  %v731_v45 = vld [vmem:[%s1950_s17 + $0x298] sm:$0xff]  ;;  %v732_v56 = vld [vmem:[%s1950_s17 + $0x2a0] sm:$0xff] }
  0x2d   : > { %1573 = vmatpush3.bf16.msra.mxu0 %v1570_v20  ;;  %v686_v20 = vld [vmem:[%s1950_s17 + $0x130] sm:$0xff]  ;;  %v1640_v13 = vpack.c.bf16 %v695_v10, %v694_v9  ;;  %v733_v57 = vld [vmem:[%s1950_s17 + $0x2a8] sm:$0xff]  ;;  %v716_v62 = vld [vmem:[%s1950_s17 + $0x220] sm:$0xff] }
  0x2e   : > { %1575 = vmatprep.subr.bf16.mxu0 %v1574_v23  ;;  %v730_v44 = vld [vmem:[%s1950_s17 + $0x290] sm:$0xff]  ;;  %v735_v9 = vld [vmem:[%s1950_s17 + $0x2b8] sm:$0xff]  ;;  %v764_v10 = vld [vmem:[%s1950_s17 + $0x3a0] sm:$0xff] }
  0x2f   : > { %v714_v46 = vld [vmem:[%s1950_s17 + $0x210] sm:$0xff] }
  0x30   : > { %v762_v58 = vld [vmem:[%s1950_s17 + $0x390] sm:$0xff] }
  0x31   : > { %1577 = vmatpush3.bf16.msra.mxu0 %v1574_v23  ;;  %v704_v23 = vld [vmem:[%s1950_s17 + $0x1c0] sm:$0xff] }
  0x32   : > { %1611 = vmatprep.subr.bf16.mxu0 %v1610_v50  ;;  %v691_v50 = vld [vmem:[%s1950_s17 + $0x158] sm:$0xff] }
  0x33   : > { %v1632_v51 = vpack.c.bf16 %v691_v50, %v690_v49  ;;  %v744_v49 = vld [vmem:[%s1950_s17 + $0x300] sm:$0xff]  ;;  %v745_v50 = vld [vmem:[%s1950_s17 + $0x308] sm:$0xff] }
  0x34   : > { %v1676_v61 = vpack.c.bf16 %v745_v50, %v744_v49  ;;  %v723_v49 = vld [vmem:[%s1950_s17 + $0x258] sm:$0xff] }
  0x86   : > { %v337_v24 = vpop.permute.xlu1 %336  ;;  %v327_v25 = vpop.permute.xlu0 %326 }
  0x87   : > { %333 = vst.msk [vmem:[#allocation2 + $0x2] sm:$0xff] %vm332_vm3, %v327_v25  ;;  %v656_v25 = vld [vmem:[%s1950_s17 + $0x40] sm:$0xff]  ;;  %vm556_vm3 = vcmask 1042432  }
  0x88   : > { %343 = vst.msk [vmem:[#allocation2 + $0x1] sm:$0xff] %vm342_vm4, %v337_v24  ;;  %v1594_v24 = vpack.c.bf16 %v673_v16, %v672_v14  ;;  %vm531_vm4 = vcmask 523270  }
  0x8a   : > { %v339_v26 = vpop.permute.xlu1 %338  ;;  %v329_v27 = vpop.permute.xlu0 %328  ;;  %1595 = vmatprep.subr.bf16.mxu1 %v1594_v24 }
  0x8b   : > { %335 = vst.msk [vmem:[#allocation2 + $0xa] sm:$0x3f] %vm334_vm5, %v329_v27  ;;  %v705_v27 = vld [vmem:[%s1950_s17 + $0x1c8] sm:$0xff]  ;;  %vm575_vm5 = vcmask 523266  }
  0x8c   : > { %345 = vst.msk [vmem:[#allocation2 + $0x9] sm:$0x7f] %vm344_vm6, %v339_v26  ;;  %v657_v26 = vld [vmem:[%s1950_s17 + $0x48] sm:$0xff]  ;;  %vm553_vm6 = vcmask 523268  }
  0x8e   : > { %v349_v28 = vpop.permute.xlu1 %348  ;;  %v347_v29 = vpop.permute.xlu0 %346 }
  0x8f   : > { %354 = vst.msk [vmem:[#allocation2 + $0x8] sm:$0xff] %vm352_vm7, %v349_v28  ;;  %353 = vst.msk [vmem:[#allocation2] sm:$0xff] %vm352_vm7, %v347_v29  ;;  %v1624_v28 = vpack.c.bf16 %v687_v21, %v686_v20  ;;  %v674_v29 = vld [vmem:[%s1950_s17 + $0xd0] sm:$0xff]  ;;  %vm525_vm7 = vcmask 1045504  }
  0x92   : > { %v358_v30 = vpop.permute.xlu1 %357  ;;  %v356_v31 = vpop.permute.xlu0 %355 }
  0x93   : > { %364 = vst.msk [vmem:[#allocation2 + $0x7] sm:$0xff] %vm363_vm8, %v358_v30  ;;  %v675_v30 = vld [vmem:[%s1950_s17 + $0xd8] sm:$0xff]  ;;  %vm569_vm8 = vcmask 1041408  }
  0x94   : > { %362 = vst.msk [vmem:[#allocation2 - $0x1] sm:$0xfe] %vm361_vm9, %v356_v31  ;;  %v1626_v31 = vpack.c.bf16 %v705_v27, %v704_v23  ;;  %vm547_vm9 = vcmask 1043456  }
  0x96   : > { %v368_v32 = vpop.permute.xlu1 %367  ;;  %v366_v33 = vpop.permute.xlu0 %365 }
  0x97   : > { %374 = vst.msk [vmem:[#allocation2 + $0x6] sm:$0xff] %vm373_vm10, %v368_v32  ;;  %v688_v32 = vld [vmem:[%s1950_s17 + $0x140] sm:$0xff]  ;;  %vm601_vm10 = vcmask 521216  }
  0x98   : > { %372 = vst.msk [vmem:[#allocation2 - $0x2] sm:$0xfc] %vm371_vm11, %v366_v33  ;;  %v689_v33 = vld [vmem:[%s1950_s17 + $0x148] sm:$0xff]  ;;  %vm621_vm11 = vcmask 517120  }
  0x99   : > { %v1628_v38 = vpack.c.bf16 %v689_v33, %v688_v32 }
  0x9a   : > { %v378_v34 = vpop.permute.xlu1 %377  ;;  %v376_v35 = vpop.permute.xlu0 %375 }
  0x9b   : > { %384 = vst.msk [vmem:[#allocation2 + $0x5] sm:$0xff] %vm383_vm12, %v378_v34  ;;  %v1596_v34 = vpack.c.bf16 %v657_v26, %v656_v25  ;;  %vm611_vm12 = vcmask 519168  }
  0x9c   : > { %382 = vst.msk [vmem:[#allocation2 - $0x3] sm:$0xf8] %vm381_vm13, %v376_v35  ;;  %v1598_v35 = vpack.c.bf16 %v675_v30, %v674_v29  ;;  %v760_v30 = vld [vmem:[%s1950_s17 + $0x380] sm:$0xff]  ;;  %vm544_vm13 = vcmask 1048069  }
  0x9d   : > { %1597 = vmatpush3.bf16.msra.mxu1 %v1596_v34 }
  0x9e   : > { %1599 = vmatprep.subr.bf16.mxu1 %v1598_v35 }
  0xa2   : > { %v386_v37 = vld [vmem:[#allocation2 + $0x8] sm:$0xff] }
  0xa3   : > { %v385_v36 = vld [vmem:[#allocation2] sm:$0xff] }
  0xa4   : > { %1528 = vmatprep.mubr.msk.f32.mxu0 %vm317_vm0, %v385_v36  ;;  %v658_v36 = vld [vmem:[%s1950_s17 + $0x50] sm:$0xff] }
  0xa5   : > { %1529 = vmatmul.mubr.msk.f32.vlgmr.msra.gmra.mrb[0].mxu0 %vm317_vm0, %v386_v37  ;;  %v659_v37 = vld [vmem:[%s1950_s17 + $0x58] sm:$0xff]  ;;  %vm511_vm0 = vcmask 1046528  }
  0xa6   : > { %1613 = vmatpush3.bf16.msra.mxu0 %v1612_v55  ;;  %v1600_v39 = vpack.c.bf16 %v659_v37, %v658_v36  ;;  %v1606_v55 = vpack.c.bf16 %v679_v53, %v678_v52 }
  0xa7   : > { %1615 = vmatprep.subr.bf16.mxu0 %v1614_v63  ;;  %v1313_v63 = vld [vmem:[%s297_s27] ss:$0 sm:$0xff] }
  0xa8   : > { %1601 = vmatpush3.bf16.msra.mxu1 %v1600_v39 }
  0xa9   : > { %1603 = vmatprep.subr.bf16.mxu1 %v1602_v43  ;;  %v713_v43 = vld [vmem:[%s1950_s17 + $0x208] sm:$0xff] }
  0xaa   : > { %1617 = vmatpush3.bf16.msra.mxu0 %v1616_v3  ;;  %v711_v3 = vld [vmem:[%s1950_s17 + $0x1f8] sm:$0xff] }
  0xab   : > { %1619 = vmatprep.subr.bf16.mxu0 %v1618_v8  ;;  %v1638_v7 = vpack.c.bf16 %v711_v3, %v710_v2  ;;  %v729_v8 = vld [vmem:[%s1950_s17 + $0x288] sm:$0xff] }
  0xac   : > { %1605 = vmatpush3.bf16.msra.mxu1 %v1604_v48  ;;  %v1642_v12 = vpack.c.bf16 %v729_v8, %v728_v4  ;;  %v715_v48 = vld [vmem:[%s1950_s17 + $0x218] sm:$0xff]  ;;  %v734_v8 = vld [vmem:[%s1950_s17 + $0x2b0] sm:$0xff] }
  0xad   : > { %1607 = vmatprep.subr.bf16.mxu1 %v1606_v55  ;;  %v1646_v55 = vpack.c.bf16 %v731_v45, %v730_v44  ;;  %v769_v44 = vld [vmem:[%s1950_s17 + $0x3c8] sm:$0xff] }
  0xae   : > { %1621 = vmatpush3.bf16.msra.mxu0 %v1620_v15 }
  0xaf   : > { %1623 = vmatprep.subr.bf16.mxu0 %v1622_v19 }
  0xb0   : > { %1609 = vmatpush3.bf16.msra.mxu1 %v1608_v60  ;;  %v1648_v60 = vpack.c.bf16 %v715_v48, %v714_v46  ;;  %v722_v48 = vld [vmem:[%s1950_s17 + $0x250] sm:$0xff] }
  0xb1   : > { %1643 = vmatprep.subr.bf16.mxu1 %v1642_v12 }
  0xb2   : > { %1625 = vmatpush3.bf16.msra.mxu0 %v1624_v28 }
  0xb3   : > { %1627 = vmatprep.subr.bf16.mxu0 %v1626_v31  ;;  %v761_v31 = vld [vmem:[%s1950_s17 + $0x388] sm:$0xff] }
  0xb4   : > { %v1674_v36 = vpack.c.bf16 %v761_v31, %v760_v30 }
  0xb6   : > { %1629 = vmatpush3.bf16.msra.mxu0 %v1628_v38 }
  0xb7   : > { %1631 = vmatprep.subr.bf16.mxu0 %v1630_v47  ;;  %v1644_v47 = vpack.c.bf16 %v713_v43, %v712_v42  ;;  %v739_v42 = vld [vmem:[%s1950_s17 + $0x2d8] sm:$0xff]  ;;  %v768_v43 = vld [vmem:[%s1950_s17 + $0x3c0] sm:$0xff] }
  0xba   : > { %1633 = vmatpush3.bf16.msra.mxu0 %v1632_v51 }
  0xbb   : > { %1635 = vmatprep.subr.bf16.mxu0 %v1634_v59  ;;  %v763_v59 = vld [vmem:[%s1950_s17 + $0x398] sm:$0xff] }
  0xbe   : > { %1637 = vmatpush3.bf16.msra.mxu0 %v1636_v0  ;;  %v746_v0 = vld [vmem:[%s1950_s17 + $0x310] sm:$0xff] }
  0xbf   : > { %1639 = vmatprep.subr.bf16.mxu0 %v1638_v7  ;;  %v747_v7 = vld [vmem:[%s1950_s17 + $0x318] sm:$0xff] }
  0xc2   : > { %1641 = vmatpush3.bf16.msra.mxu0 %v1640_v13  ;;  %v1680_v13 = vpack.c.bf16 %v747_v7, %v746_v0  ;;  %v754_v0 = vld [vmem:[%s1950_s17 + $0x350] sm:$0xff] }
  0xc3   : > { %1675 = vmatprep.subr.bf16.mxu0 %v1674_v36 }
 0x178   : > { %v1530_v1 = vpop.f32.mrb[0].mxu0 }
 0x179   : > { %v2019_v5 = vadd.f32 %v1530_v1, %v1313_v63  ;;  %v480_v6 = vpop.f32.mrb[1].mxu0 }
 0x17a   : > { %v481_v11 = vadd.f32 %v1313_v63, %v480_v6  ;;  %v717_v63 = vld [vmem:[%s1950_s17 + $0x228] sm:$0xff]  ;;  %v1678_v6 = vpack.c.bf16 %v763_v59, %v762_v58  ;;  %v1664_v58 = vpack.c.bf16 %v723_v49, %v722_v48 }
 0x17b   : > { %v536_v14 = vrot.slane %v2019_v5, 3  ;;  %v513_v15 = vrot.slane %v2019_v5, 1  ;;  %v580_v16 = vrot.slane %v2019_v5, 7  ;;  %v558_v17 = vrot.slane %v2019_v5, 5  ;;  %592 = vst.msk [vmem:[#allocation3 + $0x68] sm:$0xff] %vm497_vm14, %v2019_v5  ;;  %629 = vst.msk [vmem:[#allocation3 + $0x40] sm:$0xff] %vm497_vm14, %v2019_v5 }
 0x17c   : > { %v535_v18 = vrot.slane %v481_v11, 3  ;;  %v512_v19 = vrot.slane %v481_v11, 1  ;;  %v579_v20 = vrot.slane %v481_v11, 7  ;;  %v557_v21 = vrot.slane %v481_v11, 5  ;;  %508 = vst.msk [vmem:[#allocation3 + $0x48] sm:$0xff] %vm497_vm14, %v481_v11  ;;  %591 = vst.msk [vmem:[#allocation3 + $0x20] sm:$0xff] %vm497_vm14, %v481_v11 }
 0x17d   : > { %v526_v22 = vrot.slane %v481_v11, 2  ;;  %v570_v23 = vrot.slane %v481_v11, 6  ;;  %v548_v24 = vrot.slane %v481_v11, 4  ;;  %v527_v25 = vrot.slane %v2019_v5, 2  ;;  %v765_v11 = vld [vmem:[%s1950_s17 + $0x3a8] sm:$0xff] }
 0x17e   : > { %538 = vrot.lane.b32.xlu0 %v535_v18, %s1816_s11  ;;  %515 = vrot.lane.b32.xlu1 %v512_v19, %s1816_s11  ;;  %v537_v26 = vsel %vm534_vm15, %v535_v18, %v536_v14  ;;  %v514_v27 = vsel %vm511_vm0, %v512_v19, %v513_v15  ;;  %v581_v28 = vsel %vm578_vm2, %v579_v20, %v580_v16  ;;  %v571_v29 = vrot.slane %v2019_v5, 6 }
 0x17f   : > { %v559_v32 = vsel %vm556_vm3, %v557_v21, %v558_v17  ;;  %532 = vst.msk [vmem:[#allocation3 + $0x8] sm:$0xc0] %vm531_vm4, %v526_v22  ;;  %v528_v33 = vsel %vm525_vm7, %v526_v22, %v527_v25  ;;  %v549_v34 = vrot.slane %v2019_v5, 4  ;;  %vm521_vm15 = vcmask 1048071   ;;  %v749_v22 = vld [vmem:[%s1950_s17 + $0x328] sm:$0xff] }
 0x180   : > { %576 = vst.msk [vmem:[#allocation3 + $0x18] sm:$0xfc] %vm575_vm5, %v570_v23  ;;  %v572_v35 = vsel %vm569_vm8, %v570_v23, %v571_v29  ;;  %vm588_vm0 = vcmask 1048065   ;;  %vm566_vm2 = vcmask 1048067   ;;  %vm523_vm3 = vcmask 1048064  }
 0x181   : > { %554 = vst.msk [vmem:[#allocation3 + $0x10] sm:$0xf0] %vm553_vm6, %v548_v24  ;;  %v550_v37 = vsel %vm547_vm9, %v548_v24, %v549_v34  ;;  %v1650_v5 = vpack.c.bf16 %v733_v57, %v732_v56  ;;  %vm607_vm4 = vcmask 1044992   ;;  %vm597_vm5 = vcmask 1047040   ;;  %v736_v24 = vld [vmem:[%s1950_s17 + $0x2c0] sm:$0xff]  ;;  %v770_v56 = vld [vmem:[%s1950_s17 + $0x3d0] sm:$0xff] }
 0x182   : > { %602 = vst.msk [vmem:[#allocation3 + $0x70] sm:$0x3f] %vm601_vm10, %v527_v25  ;;  %582 = vrot.lane.b32.xlu0 %v579_v20, %s1816_s11  ;;  %560 = vrot.lane.b32.xlu1 %v557_v21, %s1816_s11  ;;  %v1652_v12 = vpack.c.bf16 %v717_v63, %v716_v62  ;;  %v1654_v21 = vpack.c.bf16 %v735_v9, %v734_v8  ;;  %v737_v25 = vld [vmem:[%s1950_s17 + $0x2c8] sm:$0xff]  ;;  %vm627_vm6 = vcmask 1040896   ;;  %vm617_vm7 = vcmask 1042944   ;;  %v771_v57 = vld [vmem:[%s1950_s17 + $0x3d8] sm:$0xff] }
 0x183   : > { %533 = vst.msk [vmem:[#allocation3 + $0x50] sm:$0xff] %vm497_vm14, %v528_v33  ;;  %600 = vst.msk [vmem:[#allocation3 + $0x28] sm:$0xff] %vm497_vm14, %v528_v33  ;;  %v1682_v23 = vpack.c.bf16 %v765_v11, %v764_v10  ;;  %v750_v33 = vld [vmem:[%s1950_s17 + $0x330] sm:$0xff]  ;;  %v1694_v63 = vpack.c.bf16 %v771_v57, %v770_v56  ;;  %v727_v9 = vld [vmem:[%s1950_s17 + $0x278] sm:$0xff] }
 0x184   : > { %622 = vst.msk [vmem:[#allocation3 + $0x80] sm:$0x3] %vm621_vm11, %v571_v29  ;;  %v721_v29 = vld [vmem:[%s1950_s17 + $0x248] sm:$0xff]  ;;  %v726_v8 = vld [vmem:[%s1950_s17 + $0x270] sm:$0xff] }
 0x185   : > { %577 = vst.msk [vmem:[#allocation3 + $0x60] sm:$0xff] %vm497_vm14, %v572_v35  ;;  %620 = vst.msk [vmem:[#allocation3 + $0x38] sm:$0xff] %vm497_vm14, %v572_v35 }
 0x186   : > { %612 = vst.msk [vmem:[#allocation3 + $0x78] sm:$0xf] %vm611_vm12, %v549_v34  ;;  %540 = vrot.lane.b32.xlu0 %v537_v26, %s1816_s11  ;;  %517 = vrot.lane.b32.xlu1 %v514_v27, %s1816_s11  ;;  %v766_v26 = vld [vmem:[%s1950_s17 + $0x3b0] sm:$0xff]  ;;  %v767_v27 = vld [vmem:[%s1950_s17 + $0x3b8] sm:$0xff] }
 0x187   : > { %555 = vst.msk [vmem:[#allocation3 + $0x58] sm:$0xff] %vm497_vm14, %v550_v37  ;;  %610 = vst.msk [vmem:[#allocation3 + $0x30] sm:$0xff] %vm497_vm14, %v550_v37  ;;  %v751_v34 = vld [vmem:[%s1950_s17 + $0x338] sm:$0xff] }
 0x18a   : > { %584 = vrot.lane.b32.xlu0 %v581_v28, %s1816_s11  ;;  %562 = vrot.lane.b32.xlu1 %v559_v32, %s1816_s11  ;;  %v720_v28 = vld [vmem:[%s1950_s17 + $0x240] sm:$0xff] }
 0x18b   : > { %v1660_v46 = vpack.c.bf16 %v721_v29, %v720_v28 }
 0x18e   : > { %603 = vrot.lane.b32.xlu0 %v536_v14, %s1816_s11  ;;  %593 = vrot.lane.b32.xlu1 %v513_v15, %s1816_s11  ;;  %v718_v14 = vld [vmem:[%s1950_s17 + $0x230] sm:$0xff]  ;;  %v719_v15 = vld [vmem:[%s1950_s17 + $0x238] sm:$0xff] }
 0x18f   : > { %v1656_v31 = vpack.c.bf16 %v719_v15, %v718_v14  ;;  %v774_v14 = vld [vmem:[%s1950_s17 + $0x3f0] sm:$0xff]  ;;  %v775_v15 = vld [vmem:[%s1950_s17 + $0x3f8] sm:$0xff] }
 0x192   : > { %623 = vrot.lane.b32.xlu0 %v580_v16, %s1816_s11  ;;  %613 = vrot.lane.b32.xlu1 %v558_v17, %s1816_s11  ;;  %v748_v16 = vld [vmem:[%s1950_s17 + $0x320] sm:$0xff] }
 0x193   : > { %v1684_v32 = vpack.c.bf16 %v749_v22, %v748_v16  ;;  %v776_v16 = vld [vmem:[%s1950_s17 + $0x400] sm:$0xff]  ;;  %v758_v22 = vld [vmem:[%s1950_s17 + $0x370] sm:$0xff] }
 0x1f0   : > { %v539_v38 = vpop.permute.xlu0 %538  ;;  %v516_v39 = vpop.permute.xlu1 %515 }
 0x1f1   : > { %545 = vst.msk [vmem:[#allocation3 + $0x8] sm:$0xe0] %vm544_vm13, %v539_v38 }
 0x1f2   : > { %522 = vst.msk [vmem:[#allocation3] sm:$0x80] %vm521_vm15, %v516_v39  ;;  %v1658_v39 = vpack.c.bf16 %v737_v25, %v736_v24  ;;  %v778_v24 = vld [vmem:[%s1950_s17 + $0x410] sm:$0xff]  ;;  %v779_v25 = vld [vmem:[%s1950_s17 + $0x418] sm:$0xff] }
 0x1f3   : > { %v1710_v28 = vpack.c.bf16 %v779_v25, %v778_v24 }
 0x1f4   : > { %v583_v40 = vpop.permute.xlu0 %582  ;;  %v561_v41 = vpop.permute.xlu1 %560 }
 0x1f5   : > { %589 = vst.msk [vmem:[#allocation3 + $0x18] sm:$0xfe] %vm588_vm0, %v583_v40  ;;  %v738_v40 = vld [vmem:[%s1950_s17 + $0x2d0] sm:$0xff] }
 0x1f6   : > { %567 = vst.msk [vmem:[#allocation3 + $0x10] sm:$0xf8] %vm566_vm2, %v561_v41  ;;  %v1686_v41 = vpack.c.bf16 %v767_v27, %v766_v26  ;;  %v1662_v50 = vpack.c.bf16 %v739_v42, %v738_v40 }
 0x1f8   : > { %v541_v51 = vpop.permute.xlu0 %540  ;;  %v518_v52 = vpop.permute.xlu1 %517  ;;  %v631_v53 = vld [vmem:[#allocation3 + $0x8] sm:$0xff] }
 0x1f9   : > { %v630_v54 = vld [vmem:[#allocation3] sm:$0xff]  ;;  %546 = vst.msk [vmem:[#allocation3 + $0x50] sm:$0xff] %vm523_vm3, %v541_v51  ;;  %606 = vst.msk [vmem:[#allocation3 + $0x28] sm:$0xff] %vm523_vm3, %v541_v51  ;;  %861 = vmatprep.mubr.f32.mxu1 %v631_v53  ;;  %v1690_v51 = vpack.c.bf16 %v769_v44, %v768_v43  ;;  %v753_v53 = vld [vmem:[%s1950_s17 + $0x348] sm:$0xff] }
 0x1fa   : > { %524 = vst.msk [vmem:[#allocation3 + $0x48] sm:$0xff] %vm523_vm3, %v518_v52  ;;  %596 = vst.msk [vmem:[#allocation3 + $0x20] sm:$0xff] %vm523_vm3, %v518_v52  ;;  %862 = vmatmul.mubr.f32.vlgmr.msra.gmra.mrb[0].mxu1 %v630_v54  ;;  %v752_v52 = vld [vmem:[%s1950_s17 + $0x340] sm:$0xff] }
 0x1fb   : > { %1645 = vmatpush3.bf16.msra.mxu1 %v1644_v47  ;;  %v1688_v47 = vpack.c.bf16 %v751_v34, %v750_v33  ;;  %v740_v54 = vld [vmem:[%s1950_s17 + $0x2e0] sm:$0xff]  ;;  %v1692_v59 = vpack.c.bf16 %v753_v53, %v752_v52  ;;  %v638_v34 = vld [vmem:[#allocation3 + $0x40] sm:$0xff] }
 0x1fc   : > { %v585_v1 = vpop.permute.xlu0 %584  ;;  %v563_v2 = vpop.permute.xlu1 %562  ;;  %v633_v3 = vld [vmem:[#allocation3 + $0x18] sm:$0xff]  ;;  %1647 = vmatprep.subr.bf16.mxu1 %v1646_v55 }
 0x1fd   : > { %v632_v4 = vld [vmem:[#allocation3 + $0x10] sm:$0xff]  ;;  %590 = vst.msk [vmem:[#allocation3 + $0x60] sm:$0xff] %vm523_vm3, %v585_v1  ;;  %626 = vst.msk [vmem:[#allocation3 + $0x38] sm:$0xff] %vm523_vm3, %v585_v1  ;;  %936 = vmatprep.mubr.f32.mxu0 %v633_v3  ;;  %v741_v55 = vld [vmem:[%s1950_s17 + $0x2e8] sm:$0xff] }
 0x1fe   : > { %568 = vst.msk [vmem:[#allocation3 + $0x58] sm:$0xff] %vm523_vm3, %v563_v2  ;;  %616 = vst.msk [vmem:[#allocation3 + $0x30] sm:$0xff] %vm523_vm3, %v563_v2  ;;  %937 = vmatmul.mubr.f32.vlgmr.msra.gmra.mrb[2].mxu0 %v632_v4  ;;  %v1666_v62 = vpack.c.bf16 %v741_v55, %v740_v54  ;;  %v755_v1 = vld [vmem:[%s1950_s17 + $0x358] sm:$0xff]  ;;  %v742_v2 = vld [vmem:[%s1950_s17 + $0x2f0] sm:$0xff] }
 0x1ff   : > { %1649 = vmatpush3.bf16.msra.mxu1 %v1648_v60  ;;  %1677 = vmatpush3.bf16.msra.mxu0 %v1676_v61  ;;  %v724_v60 = vld [vmem:[%s1950_s17 + $0x260] sm:$0xff]  ;;  %v725_v61 = vld [vmem:[%s1950_s17 + $0x268] sm:$0xff]  ;;  %v743_v3 = vld [vmem:[%s1950_s17 + $0x2f8] sm:$0xff]  ;;  %v1696_v7 = vpack.c.bf16 %v755_v1, %v754_v0 }
 0x200   : > { %v604_v17 = vpop.permute.xlu0 %603  ;;  %v594_v18 = vpop.permute.xlu1 %593  ;;  %v640_v19 = vld [vmem:[#allocation3 + $0x50] sm:$0xff]  ;;  %1651 = vmatprep.subr.bf16.mxu1 %v1650_v5  ;;  %1679 = vmatprep.subr.bf16.mxu0 %v1678_v6  ;;  %v635_v30 = vld [vmem:[#allocation3 + $0x28] sm:$0xff]  ;;  %v773_v5 = vld [vmem:[%s1950_s17 + $0x3e8] sm:$0xff]  ;;  %v1668_v6 = vpack.c.bf16 %v725_v61, %v724_v60  ;;  %v1670_v10 = vpack.c.bf16 %v743_v3, %v742_v2 }
 0x201   : > { %v639_v20 = vld [vmem:[#allocation3 + $0x48] sm:$0xff]  ;;  %608 = vst.msk [vmem:[#allocation3 + $0x70] sm:$0x1f] %vm607_vm4, %v604_v17  ;;  %866 = vmatprep.mubr.f32.mxu1 %v640_v19  ;;  %v772_v4 = vld [vmem:[%s1950_s17 + $0x3e0] sm:$0xff]  ;;  %v777_v17 = vld [vmem:[%s1950_s17 + $0x408] sm:$0xff] }
 0x202   : > { %598 = vst.msk [vmem:[#allocation3 + $0x68] sm:$0x7f] %vm597_vm5, %v594_v18  ;;  %867 = vmatmul.mubr.f32.gmra.mrb[2].mxu1 %v639_v20  ;;  %v1698_v11 = vpack.c.bf16 %v773_v5, %v772_v4  ;;  %v1672_v18 = vpack.c.bf16 %v727_v9, %v726_v8  ;;  %v1702_v20 = vpack.c.bf16 %v775_v15, %v774_v14  ;;  %v634_v27 = vld [vmem:[#allocation3 + $0x20] sm:$0xff] }
 0x203   : > { %1653 = vmatpush3.bf16.msra.mxu1 %v1652_v12  ;;  %1681 = vmatpush3.bf16.msra.mxu0 %v1680_v13  ;;  %v756_v12 = vld [vmem:[%s1950_s17 + $0x360] sm:$0xff]  ;;  %v757_v13 = vld [vmem:[%s1950_s17 + $0x368] sm:$0xff] }
 0x204   : > { %1011 = vmatprep.mubr.f32.mxu1 %v635_v30  ;;  %v624_v35 = vpop.permute.xlu0 %623  ;;  %v614_v36 = vpop.permute.xlu1 %613  ;;  %v642_v37 = vld [vmem:[#allocation3 + $0x60] sm:$0xff]  ;;  %1655 = vmatprep.subr.bf16.mxu1 %v1654_v21  ;;  %v637_v45 = vld [vmem:[#allocation3 + $0x38] sm:$0xff]  ;;  %v1700_v19 = vpack.c.bf16 %v757_v13, %v756_v12  ;;  %v1706_v21 = vpack.c.bf16 %v777_v17, %v776_v16  ;;  %v780_v30 = vld [vmem:[%s1950_s17 + $0x420] sm:$0xff] }
 0x205   : > { %v641_v38 = vld [vmem:[#allocation3 + $0x58] sm:$0xff]  ;;  %628 = vst.msk [vmem:[#allocation3 + $0x80] sm:$0x1] %vm627_vm6, %v624_v35  ;;  %941 = vmatprep.mubr.f32.mxu0 %v642_v37  ;;  %1683 = vmatprep.subr.bf16.mxu0 %v1682_v23  ;;  %v759_v23 = vld [vmem:[%s1950_s17 + $0x378] sm:$0xff]  ;;  %v636_v33 = vld [vmem:[#allocation3 + $0x30] sm:$0xff] }
 0x206   : > { %618 = vst.msk [vmem:[#allocation3 + $0x78] sm:$0x7] %vm617_vm7, %v614_v36  ;;  %942 = vmatmul.mubr.f32.gmra.mrb[4].mxu0 %v641_v38  ;;  %v1704_v26 = vpack.c.bf16 %v759_v23, %v758_v22  ;;  %v782_v37 = vld [vmem:[%s1950_s17 + $0x430] sm:$0xff]  ;;  %v783_v38 = vld [vmem:[%s1950_s17 + $0x438] sm:$0xff] }
 0x207   : > { %1657 = vmatpush3.bf16.msra.mxu1 %v1656_v31  ;;  %1685 = vmatpush3.bf16.msra.mxu0 %v1684_v32  ;;  %v781_v31 = vld [vmem:[%s1950_s17 + $0x428] sm:$0xff]  ;;  %v1718_v40 = vpack.c.bf16 %v783_v38, %v782_v37 }
 0x208   : > { %1086 = vmatprep.mubr.f32.mxu0 %v637_v45  ;;  %1659 = vmatprep.subr.bf16.mxu1 %v1658_v39  ;;  %v644_v29 = vld [vmem:[#allocation3 + $0x70] sm:$0xff]  ;;  %v1714_v35 = vpack.c.bf16 %v781_v31, %v780_v30 }
 0x209   : > { %1687 = vmatprep.subr.bf16.mxu0 %v1686_v41  ;;  %v643_v32 = vld [vmem:[#allocation3 + $0x68] sm:$0xff]  ;;  %v1316_v45 = vld [vmem:[%s305_s30] ss:$0 sm:$0xff] }
 0x20a   : > { %v647_v41 = vld [vmem:[#allocation3 + $0x88] sm:$0xff] }
 0x20b   : > { %1661 = vmatpush3.bf16.msra.mxu1 %v1660_v46  ;;  %1689 = vmatpush3.bf16.msra.mxu0 %v1688_v47 }
 0x20c   : > { %1663 = vmatprep.subr.bf16.mxu1 %v1662_v50  ;;  %1691 = vmatprep.subr.bf16.mxu0 %v1690_v51  ;;  %v646_v36 = vld [vmem:[#allocation3 + $0x80] sm:$0xff] }
 0x20d   : > { %v645_v39 = vld [vmem:[#allocation3 + $0x78] sm:$0xff] }
 0x20f   : > { %1665 = vmatpush3.bf16.msra.mxu1 %v1664_v58  ;;  %1693 = vmatpush3.bf16.msra.mxu0 %v1692_v59 }
 0x210   : > { %1667 = vmatprep.subr.bf16.mxu1 %v1666_v62  ;;  %1695 = vmatprep.subr.bf16.mxu0 %v1694_v63 }
 0x213   : > { %1669 = vmatpush3.bf16.msra.mxu1 %v1668_v6  ;;  %1697 = vmatpush3.bf16.msra.mxu0 %v1696_v7 }
 0x214   : > { %1671 = vmatprep.subr.bf16.mxu1 %v1670_v10  ;;  %1699 = vmatprep.subr.bf16.mxu0 %v1698_v11 }
 0x217   : > { %1673 = vmatpush3.bf16.msra.mxu1 %v1672_v18  ;;  %1701 = vmatpush3.bf16.msra.mxu0 %v1700_v19 }
 0x218   : > { %1703 = vmatprep.subr.bf16.mxu0 %v1702_v20  ;;  %1707 = vmatprep.subr.bf16.mxu1 %v1706_v21 }
 0x21a   : > { %1012 = vmatmul.mubr.f32.vlgmr.msra.gmra.mrb[4].mxu1 %v634_v27 }
 0x21b   : > { %1016 = vmatprep.mubr.f32.mxu1 %v644_v29  ;;  %1705 = vmatpush3.bf16.msra.mxu0 %v1704_v26 }
 0x21c   : > { %1709 = vmatpush3.bf16.msra.mxu1 %v1706_v21 }
 0x21d   : > { %1711 = vmatprep.subr.bf16.mxu1 %v1710_v28 }
 0x21e   : > { %1017 = vmatmul.mubr.f32.gmra.mrb[6].mxu1 %v643_v32  ;;  %1087 = vmatmul.mubr.f32.vlgmr.msra.gmra.mrb[6].mxu0 %v636_v33 }
 0x21f   : > { %1091 = vmatprep.mubr.f32.mxu0 %v646_v36  ;;  %1547 = vmatprep.mubr.msk.f32.mxu1 %vm497_vm14, %v638_v34 }
 0x220   : > { %1713 = vmatpush3.bf16.msra.mxu1 %v1710_v28 }
 0x221   : > { %1715 = vmatprep.subr.bf16.mxu1 %v1714_v35 }
 0x222   : > { %1092 = vmatmul.mubr.f32.gmra.mrb[8].mxu0 %v645_v39 }
 0x224   : > { %1717 = vmatpush3.bf16.msra.mxu1 %v1714_v35 }
 0x225   : > { %1719 = vmatprep.subr.bf16.mxu1 %v1718_v40 }
 0x228   : > { %1721 = vmatpush3.bf16.msra.mxu1 %v1718_v40 }
 0x22b   : > { %1548 = vmatmul.mubr.msk.f32.vlgmr.msra.gmra.mrb[8].mxu1 %vm497_vm14, %v647_v41 }
 0x2cd   : > { %v1370_v42 = vpop.f32.mrb[0].mxu1 }
 0x2ce   : > { %v1371_v43 = vpop.f32.mrb[1].mxu1 }
 0x2cf   : > { %v1372_v44 = vadd.f32 %v1371_v43, %v1370_v42 }
 0x2d1   : > { %v1408_v46 = vpop.f32.mrb[2].mxu0  ;;  %v864_v48 = vadd.f32 %v1372_v44, %v1316_v45 }
 0x2d2   : > { %v1409_v47 = vpop.f32.mrb[3].mxu0 }
 0x2d3   : > { %v1410_v49 = vadd.f32 %v1409_v47, %v1408_v46 }
 0x2d5   : > { %v939_v50 = vadd.f32 %v1410_v49, %v864_v48  ;;  %v1373_v51 = vpop.f32.mrb[2].mxu1 }
 0x2d6   : > { %v1374_v52 = vpop.f32.mrb[3].mxu1 }
 0x2d7   : > { %v1375_v53 = vadd.f32 %v1374_v52, %v1373_v51 }
 0x2d9   : > { %v1411_v54 = vpop.f32.mrb[4].mxu0  ;;  %v869_v56 = vadd.f32 %v1375_v53, %v1316_v45 }
 0x2da   : > { %v1412_v55 = vpop.f32.mrb[5].mxu0 }
 0x2db   : > { %v1413_v57 = vadd.f32 %v1412_v55, %v1411_v54 }
 0x2dd   : > { %v944_v58 = vadd.f32 %v1413_v57, %v869_v56 }
 0x2ed   : > { %v1446_v59 = vpop.f32.mrb[4].mxu1 }
 0x2ee   : > { %v1447_v60 = vpop.f32.mrb[5].mxu1 }
 0x2ef   : > { %v1448_v61 = vadd.f32 %v1447_v60, %v1446_v59 }
 0x2f1   : > { %v1014_v62 = vadd.f32 %v1448_v61, %v939_v50  ;;  %v1449_v63 = vpop.f32.mrb[6].mxu1  ;;  %v1484_v0 = vpop.f32.mrb[6].mxu0 }
 0x2f2   : > { %v1450_v1 = vpop.f32.mrb[7].mxu1  ;;  %v1485_v2 = vpop.f32.mrb[7].mxu0 }
 0x2f3   : > { %v1451_v3 = vadd.f32 %v1450_v1, %v1449_v63  ;;  %v1486_v4 = vadd.f32 %v1485_v2, %v1484_v0 }
 0x2f5   : > { %v1019_v5 = vadd.f32 %v1451_v3, %v944_v58  ;;  %v1487_v6 = vpop.f32.mrb[8].mxu0  ;;  %v1089_v7 = vadd.f32 %v1486_v4, %v1014_v62 }
 0x2f6   : > { %v1488_v8 = vpop.f32.mrb[9].mxu0 }
 0x2f7   : > { %v1489_v9 = vadd.f32 %v1488_v8, %v1487_v6 }
 0x2f9   : > { %v1094_v10 = vadd.f32 %v1489_v9, %v1019_v5 }
 0x2fe   : > { %v1549_v11 = vpop.f32.mrb[8].mxu1 }
 0x2ff   : > { %v1169_v12 = vadd.f32 %v1549_v11, %v1094_v10  ;;  %v1163_v13 = vpop.f32.mrb[9].mxu1 }
 0x300   : > { %v1164_v14 = vadd.f32 %v1163_v13, %v1089_v7 }
 0x301   : > { %1173 = vst.msk [vmem:[%s314_s12 + $0x8] sm:$0xff] %vm320_vm1, %v1169_v12 }
 0x302   : > { %1172 = vst.msk [vmem:[%s314_s12] sm:$0xff] %vm320_vm1, %v1164_v14 }
 0x303 PF: > { %s15_s22 = sadd.s32 1, %s1810_s22   ;;  %s2184_s18 = smov %s1802_s20 }
 0x304   : > { %p12_p7 = scmp.ge.s32.totalorder %s15_s22, 14   ;;  %s2185_s19 = smov %s1806_s21 }
 0x305   : > { %s2186_s20 = smov %s2189_s23  ;;  %s2187_s21 = smov %s2193_s24 }
 0x306   :  { %14 = sbr.rel (!%p12_p7) target bundleno = 3 (0x3), region = 82 }

// kernel: model_apply.5
= control target key start
LH: loop header
LB: loop body
LE: loop exit
PB: predicated region body
PF: predicated region fallthrough
CT: control target
= control target key end

     0   :  { %s3002_s21 = smov 0   ;;  %s3004_s22 = smov 0   ;;  %s3290_s0 = inlined_call_operand.vmem [shape: f32[2,16,14], index: 0, kind: input, shape index: {}]   ;;  %s3291_s1 = inlined_call_operand.vmem [shape: f32[2,6,16,16], index: 1, kind: input, shape index: {}]   ;;  %s3292_s2 = inlined_call_operand.vmem [shape: f32[2,6,16,16], index: 2, kind: input, shape index: {}]   ;;  %s3293_s3 = inlined_call_operand.vmem [shape: f32[16,32], index: 3, kind: input, shape index: {}]   ;;  %s3294_s4 = inlined_call_operand.vmem [shape: f32[14,32], index: 4, kind: input, shape index: {}]   ;;  %s3295_s5 = inlined_call_operand.vmem [shape: f32[1,32], index: 5, kind: input, shape index: {}]   ;;  %s3296_s6 = inlined_call_operand.vmem [shape: f32[3,32,96], index: 6, kind: input, shape index: {}]   ;;  %s3297_s7 = inlined_call_operand.vmem [shape: f32[3,1,96], index: 7, kind: input, shape index: {}]   ;;  %s3298_s8 = inlined_call_operand.vmem [shape: f32[3,32,64], index: 8, kind: input, shape index: {}]   ;;  %s3299_s9 = inlined_call_operand.vmem [shape: f32[3,1,64], index: 9, kind: input, shape index: {}]   ;;  %s3300_s10 = inlined_call_operand.vmem [shape: f32[3,4,32,32], index: 10, kind: input, shape index: {}]   ;;  %s3301_s11 = inlined_call_operand.vmem [shape: f32[3,14,1,32], index: 11, kind: input, shape index: {}]   ;;  %s3302_s12 = inlined_call_operand.vmem [shape: f32[32,32], index: 12, kind: input, shape index: {}]   ;;  %s3303_s13 = inlined_call_operand.vmem [shape: f32[1,32], index: 13, kind: input, shape index: {}]   ;;  %s3304_s14 = inlined_call_operand.vmem [shape: f32[32,3], index: 14, kind: input, shape index: {}]   ;;  %s3305_s15 = inlined_call_operand.vmem [shape: f32[1,3], index: 15, kind: input, shape index: {}]   ;;  %s3306_s16 = inlined_call_operand.vmem [shape: f32[2,16,3], index: 16, kind: output, shape index: {}]  }
   0x1   :  { %3313 = sst [smem:[#allocation8_spill]] %s3290_s0  ;;  %s3006_s23 = smov 0  }
   0x2   :  { %3314 = sst [smem:[#allocation9_spill]] %s3291_s1  ;;  %s3008_s24 = smov 0  }
   0x3   :  { %3315 = sst [smem:[#allocation10_spill]] %s3292_s2  ;;  %s3010_s25 = smov 0  }
   0x4   :  { %3316 = sst [smem:[#allocation11_spill]] %s3293_s3 }
   0x5   :  { %3317 = sst [smem:[#allocation12_spill]] %s3302_s12 }
   0x6   :  { %3318 = sst [smem:[#allocation13_spill]] %s3303_s13 }
   0x7   :  { %3319 = sst [smem:[#allocation14_spill]] %s3304_s14 }
   0x8   :  { %3320 = sst [smem:[#allocation15_spill]] %s3305_s15 }
   0x9 LB: > { %3321 = sst [smem:[#allocation3_spill]] %s2904_s23  ;;  %s35_s26 = sadd.s32 1, %s2904_s23  ;;  %s2912_s25 = sphi %s3010_s25, %s26_s25   ;;  %s2908_s24 = sphi %s3008_s24, %s3340_s24   ;;  %s2904_s23 = sphi %s3006_s23, %s3339_s23   ;;  %s2900_s22 = sphi %s3004_s22, %s3338_s22   ;;  %s2896_s21 = sphi %s3002_s21, %s3337_s21  }
   0xa   : > { %3322 = sst [smem:[#allocation4_spill]] %s2908_s24  ;;  %s38_s27 = sadd.s32 1, %s2908_s24 }
   0xb   : > { %3323 = sst [smem:[#allocation5_spill]] %s2912_s25  ;;  %p36_p0 = scmp.ge.s32.totalorder %s35_s26, 3 }
   0xc   : > { %p2389_p1 = scmp.ge.s32.totalorder %s2912_s25, 1  ;;  %p565_p2 = scmp.lt.s32.totalorder %s2912_s25, 7 }
   0xd   : > { %s3342_s26 = smov (%p36_p0, %s35_s26), 0  ;;  %s3344_s27 = smov (!%p36_p0, %s38_s27), %s2908_s24 }
   0xe   : > { %3324 = sst [smem:[#allocation6_spill]] %s3342_s26  ;;  %p566_p3 = pnand %p2389_p1, %p565_p2 }
   0xf   : > { %p40_p4 = scmp.ge.s32.totalorder %s3344_s27, 2  ;;  %p660_p5 = scmp.lt.s32.totalorder (!%p566_p3), %s2900_s22, 1 }
  0x10   : > { %569 = sbr.rel (%p566_p3) target bundleno = 2946 (0xb82), region = 84  ;;  %s2392_s28 = sshll.u32 (!%p566_p3), %s2896_s21, 1 }
  0x11   : > { %s3346_s27 = smov (%p40_p4, %s3344_s27), 0  ;;  %p668_p6 = scmp.lt.s32.totalorder (!%p566_p3), %s2392_s28, 5 }
  0x12   : > { %3325 = sst [smem:[#allocation7_spill]] %s3346_s27  ;;  %p687_p7 = scmp.lt.s32.totalorder (!%p566_p3), %s2896_s21, 2 }
  0x13   : > { %s3326_s18 = sld [smem:[#allocation8_spill]] (!%p566_p3)  ;;  %s3327_s1 = sld [smem:[#allocation9_spill]] (!%p566_p3) }
  0x14   : > { %s3328_s2 = sld [smem:[#allocation10_spill]] (!%p566_p3)  ;;  %p2406_p8 = scmp.ne.s32.totalorder (!%p566_p3), %s2896_s21, 0 }
  0x17   : > { %s3348_s22 = smov (!%p660_p5, %s2900_s22), 1  ;;  %s3350_s28 = smov (!%p668_p6, %s2392_s28), 5 }
  0x18   : > { %s2485_s29 = sshll.u32 %s3348_s22, 4  ;;  %s2767_s30 = smul.u32 12, %s3348_s22  ;;  %v723_v0 = vld [vmem:[%s3294_s4] sm:$0xff] (!%p2406_p8)  ;;  %v724_v1 = vld [vmem:[%s3294_s4 + $0x8] sm:$0x3f] (!%p2406_p8)  ;;  %vm739_vm0 = vcmask (!%p2406_p8), 1045504  }
  0x19   : > { %s664_s19 = scalar_lea.vmem %s3326_s18, %s2485_s29  ;;  %s2393_s20 = sshll.u32 %s3350_s28, 1  ;;  %v2681_v3 = vpack.c.bf16 (!%p2406_p8), %v724_v1, %v723_v0  ;;  %vm2914_vm1 = vmmov (!%p2406_p8), 1   ;;  %vm732_vm3 = vcmask (!%p2406_p8), 113664   ;;  %v2407_v5 = vld [vmem:[%s3295_s5] ss:$0 sm:$0xff] (!%p2406_p8)  ;;  %vm820_vm4 = vcmask (!%p2406_p8), 261120  }
  0x1a   : > { %s672_s26 = sadd.s32 %s2767_s30, %s2393_s20  ;;  %s3042_s23 = scalar_lea.vmem %s3306_s16, %s2485_s29  ;;  %v721_v2 = vld [vmem:[%s664_s19] sm:$0xff] (!%p2406_p8)  ;;  %vm2682_vm2 = vmpackc.low (!%p2406_p8), %vm739_vm0, %vm2914_vm1  ;;  %v722_v4 = vld [vmem:[%s664_s19 + $0x8] sm:$0xff] (!%p2406_p8) }
  0x1b   : > { %s2394_s25 = sshll.u32 %s672_s26, 3  ;;  %2562 = vmatprep.mubr.msk.f32.mxu0 (!%p2406_p8), %vm732_vm3, %v721_v2  ;;  %2683 = vmatprep.subr.msk.bf16.mxu0 (!%p2406_p8), %vm2682_vm2, %v2681_v3 }
  0x1c   : > { %s3047_s14 = scalar_lea.vmem %s3327_s1, %s2394_s25  ;;  %s3052_s22 = scalar_lea.vmem %s3328_s2, %s2394_s25  ;;  %2686 = vmatpush3.bf16.msk.msra.mxu0 (!%p2406_p8), %vm2682_vm2, %v2681_v3 }
  0x1d   : > { %s3055_s0 = scalar_select %p687_p7, %s2896_s21, 2 }
  0x1e   : > { %720 = sbr.rel (%p2406_p8) target bundleno = 258 (0x102), region = 88 }
  0x1f   : > { %s2486_s24 = sshll.u32 %s3055_s0, 5  ;;  %s702_s18 = scalar_lea.vmem %s3299_s9, %s3055_s0  ;;  %2563 = vmatmul.mubr.msk.f32.vlgmr.msra.gmra.mrb[0].mxu0 (!%p2406_p8), %vm732_vm3, %v722_v4 }
  0x20   : > { %s3065_s29 = scalar_lea.vmem %s3296_s6, %s2486_s24  ;;  %s3070_s25 = scalar_lea.vmem %s3298_s8, %s2486_s24 }
  0x21   : > { %s2488_s20 = sshll.u32 %s3055_s0, 7  ;;  %s2768_s26 = smul.u32 14, %s3055_s0 }
  0x22   : > { %s3080_s27 = scalar_lea.vmem %s3300_s10, %s2488_s20 }
  0x23   : > { %s3086_s15 = scalar_lea.vmem %s3301_s11, %s2768_s26 }
  0xf2   : > { %v2564_v6 = vpop.f32.mrb[0].mxu0 }
  0xf3   : > { %v815_v7 = vadd.f32 %v2564_v6, %v2407_v5  ;;  %v809_v8 = vpop.f32.mrb[1].mxu0 }
  0xf4   : > { %v810_v9 = vadd.f32 %v2407_v5, %v809_v8 }
  0xf5   : > { %2812 = vtanh.f32 %v815_v7 }
  0xf6   : > { %2814 = vtanh.f32 %v810_v9 }
  0xff   : > { %v2813_v10 = vpop.eup %2812 }
 0x100   : > { %v2815_v11 = vpop.eup %2814  ;;  %822 = vst.msk [vmem:[#allocation2 + $0x8] sm:$0xff] %vm820_vm4, %v2813_v10 }
 0x101   : > { %821 = vst.msk [vmem:[#allocation2] sm:$0xff] %vm820_vm4, %v2815_v11 }
 0x102 PF: > { %v827_v12 = vld [vmem:[%s3065_s29] sm:$0xff]  ;;  %v828_v13 = vld [vmem:[%s3065_s29 + $0x8] sm:$0xff]  ;;  %v829_v14 = vld [vmem:[%s3065_s29 + $0x10] sm:$0xff]  ;;  %vm838_vm5 = vcmask 261120   ;;  %vm924_vm6 = vcmask 130048   ;;  %vm1097_vm7 = vcmask 785920  }
 0x103   : > { %v2687_v15 = vpack.c.bf16 %v828_v13, %v827_v12  ;;  %v830_v16 = vld [vmem:[%s3065_s29 + $0x18] sm:$0xff]  ;;  %v922_v20 = vld [vmem:[%s3047_s14] sm:$0xff]  ;;  %s3329_s29 = scalar_lea.vmem %s3297_s7, %s3055_s0  ;;  %s2915_s17 = smov 96   ;;  %v923_v33 = vld [vmem:[%s3047_s14 + $0x8] sm:$0xff] }
 0x104   : > { %v2691_v18 = vpack.c.bf16 %v830_v16, %v829_v14  ;;  %2580 = vmatprep.mubr.msk.f32.mxu1 %vm924_vm6, %v922_v20  ;;  %v2411_v21 = vld [vmem:[%s3329_s29] ss:$0 sm:$0xff]  ;;  %v1112_v39 = vld [vmem:[%s3080_s27 + $0x8] sm:$0xff]  ;;  %s2916_s20 = smov 64   ;;  %v1113_v45 = vld [vmem:[%s3080_s27 + $0x10] sm:$0xff]  ;;  %s3330_s24 = sld [smem:[#allocation11_spill]] }
 0x105   : > { %2688 = vmatprep.subr.bf16.mxu0 %v2687_v15  ;;  %v1006_v35 = vld [vmem:[%s3052_s22] sm:$0xff]  ;;  %v1114_v46 = vld [vmem:[%s3080_s27 + $0x18] sm:$0xff]  ;;  %v1007_v52 = vld [vmem:[%s3052_s22 + $0x8] sm:$0xff]  ;;  %p2476_p9 = scmp.ne.s32.totalorder %s2896_s21, 2 }
 0x106   : > { %2690 = vmatpush3.bf16.msra.mxu0 %v2687_v15  ;;  %v1111_v38 = vld [vmem:[%s3080_s27] sm:$0xff]  ;;  %v2707_v47 = vpack.c.bf16 %v1114_v46, %v1113_v45  ;;  %v2422_v63 = vld [vmem:[%s3080_s27 + $0x28] sm:$0xff]  ;;  %v2423_v1 = vld [vmem:[%s3080_s27 + $0x30] sm:$0xff]  ;;  %s3332_s0 = sld [smem:[#allocation12_spill]] (!%p2476_p9)  ;;  %vm2208_vm8 = vcmask (!%p2476_p9), 23552  }
 0x107   : > { %2692 = vmatprep.subr.bf16.mxu0 %v2691_v18  ;;  %v3106_v19 = vld [vmem:[#allocation2 + $0x8] sm:$0xff]  ;;  %v2703_v40 = vpack.c.bf16 %v1112_v39, %v1111_v38  ;;  %v2421_v62 = vld [vmem:[%s3080_s27 + $0x20] sm:$0xff]  ;;  %v2424_v2 = vld [vmem:[%s3080_s27 + $0x38] sm:$0xff] }
 0x108   : > { %v3102_v17 = vld [vmem:[#allocation2] sm:$0xff]  ;;  %v2711_v0 = vpack.c.bf16 %v2422_v63, %v2421_v62  ;;  %v2715_v3 = vpack.c.bf16 %v2424_v2, %v2423_v1  ;;  %v1455_v63 = vld [vmem:[%s3070_s25 + $0x8] sm:$0xff]  ;;  %v1456_v1 = vld [vmem:[%s3070_s25 + $0x10] sm:$0xff] }
 0x109   : > { %2573 = vmatprep.mubr.msk.f32.mxu0 %vm838_vm5, %v3102_v17  ;;  %v2418_v12 = vld [vmem:[%s3086_s15] ss:$0 sm:$0xff]  ;;  %v1457_v2 = vld [vmem:[%s3070_s25 + $0x18] sm:$0xff] }
 0x10a   : > { %2694 = vmatpush3.bf16.msra.mxu0 %v2691_v18  ;;  %s3331_s3 = smov %s3330_s24  ;;  %v826_v53 = vld [vmem:[%s3330_s24 + $0x8] sm:$0xff]  ;;  %v1454_v62 = vld [vmem:[%s3070_s25] sm:$0xff] }
 0x10b   : > { %2704 = vmatprep.subr.bf16.mxu0 %v2703_v40  ;;  %v825_v54 = vld [vmem:[%s3331_s3] sm:$0xff]  ;;  %v1304_v55 = vadd.f32 %v826_v53, %v3106_v19 }
 0x10c   : > { %v1303_v56 = vadd.f32 %v825_v54, %v3102_v17 }
 0x10d   : > { %2574 = vmatmul.mubr.msk.f32.vlgmr.msra.gmra.mrb[0].mxu0 %vm838_vm5, %v3106_v19 }
 0x10e   : > { %2706 = vmatpush3.bf16.msra.mxu0 %v2703_v40 }
 0x10f   : > { %2708 = vmatprep.subr.bf16.mxu0 %v2707_v47 }
 0x112   : > { %2710 = vmatpush3.bf16.msra.mxu0 %v2707_v47 }
 0x1e0   : > { %v2575_v22 = vpop.f32.mrb[0].mxu0 }
 0x1e1   : > { %v917_v23 = vadd.f32 %v2575_v22, %v2411_v21  ;;  %v911_v24 = vpop.f32.mrb[1].mxu0 }
 0x1e2   : > { %v912_v25 = vadd.f32 %v2411_v21, %v911_v24 }
 0x1e3   : > { %2826 = vtanh.f32 %v917_v23  ;;  %v2426_v23 = vld [vmem:[%s3086_s15 + $0x1] ss:$0 sm:$0xff] }
 0x1e4   : > { %2828 = vtanh.f32 %v912_v25 }
 0x1ed   : > { %v2827_v26 = vpop.eup %2826 }
 0x1ee   : > { %v2829_v27 = vpop.eup %2828  ;;  %v1099_v28 = vsel %vm1097_vm7, %v2827_v26, 0.0 }
 0x1ef   : > { %v2816_v29 = vpack.i.bf16 %v2827_v26, %v2829_v27  ;;  %v2695_v30 = vpack.c.bf16 %v2827_v26, %v2829_v27  ;;  %v1098_v31 = vsel %vm1097_vm7, %v2829_v27, 0.0 }
 0x1f0   : > { %v1100_v32 = vadd.f32 %v1099_v28, %v1098_v31 }
 0x1f1   : > { %2817 = vrot.lane.b32.xlu0 %v2816_v29, %s2915_s17  ;;  %2696 = vmatprep.subr.bf16.mxu1 %v2695_v30 }
 0x1f2   : > { %2698 = vmatpush3.bf16.msra.mxu1 %v2695_v30  ;;  %v1101_v34 = vrot.slane %v1100_v32, 4 }
 0x1f4   : > { %v1102_v36 = vadd.f32 %v1101_v34, %v1100_v32 }
 0x1f5   : > { %2581 = vmatmul.mubr.msk.f32.vlgmr.msra.gmra.mrb[0].mxu1 %vm924_vm6, %v923_v33 }
 0x1f6   : > { %v1103_v37 = vrot.slane %v1102_v36, 2  ;;  %2587 = vmatprep.mubr.msk.f32.mxu1 %vm924_vm6, %v1006_v35 }
 0x1f8   : > { %v1104_v41 = vadd.f32 %v1103_v37, %v1102_v36 }
 0x1fa   : > { %v1105_v42 = vrot.slane %v1104_v41, 1 }
 0x1fc   : > { %v1106_v43 = vadd.f32 %v1105_v42, %v1104_v41 }
 0x1fe   : > { %v1108_v44 = vmul.f32 0.0625, %v1106_v43 }
 0x200   : > { %1306 = vrot.lane.b32.xlu0 %v1108_v44, %s2916_s20 }
 0x263   : > { %v2818_v48 = vpop.permute.xlu0 %2817 }
 0x264   : > { %v2820_v49 = vunpack.i.h.bf16 %v2818_v48  ;;  %v2819_v50 = vunpack.i.l.bf16 %v2818_v48 }
 0x266   : > { %v2699_v51 = vpack.c.bf16 %v2820_v49, %v2819_v50 }
 0x268   : > { %2700 = vmatprep.subr.bf16.mxu1 %v2699_v51 }
 0x269   : > { %2702 = vmatpush3.bf16.msra.mxu1 %v2699_v51 }
 0x26a   : > { %2712 = vmatprep.subr.bf16.mxu1 %v2711_v0 }
 0x26c   : > { %2588 = vmatmul.mubr.msk.f32.vlgmr.msra.gmra.mrb[2].mxu1 %vm924_vm6, %v1007_v52 }
 0x26d   : > { %2714 = vmatpush3.bf16.msra.mxu1 %v2711_v0  ;;  %v2719_v0 = vpack.c.bf16 %v1455_v63, %v1454_v62 }
 0x26e   : > { %2716 = vmatprep.subr.bf16.mxu1 %v2715_v3 }
 0x26f   : > { %2720 = vmatprep.subr.bf16.mxu0 %v2719_v0 }
 0x271   : > { %2718 = vmatpush3.bf16.msra.mxu1 %v2715_v3  ;;  %v2723_v3 = vpack.c.bf16 %v1457_v2, %v1456_v1  ;;  %v2453_v1 = vld [vmem:[%s3080_s27 + $0x48] sm:$0xff] }
 0x272   : > { %v1307_v57 = vpop.permute.xlu0 %1306 }
 0x273   : > { %v1310_v58 = vadd.f32 %v1307_v57, %v1304_v55  ;;  %v1309_v59 = vadd.f32 %v1307_v57, %v1303_v56 }
 0x275   : > { %v1318_v60 = vsel %vm838_vm5, %v1310_v58, 0.0  ;;  %v1315_v61 = vsel %vm838_vm5, %v1309_v59, 0.0 }
 0x276   : > { %1319 = vadd.xlane.f32.xlu0 %v1318_v60  ;;  %1316 = vadd.xlane.f32.xlu1 %v1315_v61 }
 0x2c8   : > { %v2582_v4 = vpop.f32.mrb[0].mxu1 }
 0x2c9   : > { %v1110_v5 = vadd.f32 %v2582_v4, %v3106_v19  ;;  %v997_v6 = vpop.f32.mrb[1].mxu1 }
 0x2ca   : > { %v1109_v7 = vadd.f32 %v997_v6, %v3102_v17 }
 0x2cc   : > { %2598 = vmatprep.mubr.msk.f32.mxu0 %vm838_vm5, %v1109_v7 }
 0x2cd   : > { %2599 = vmatmul.mubr.msk.f32.vlgmr.msra.gmra.mrb[2].mxu0 %vm838_vm5, %v1110_v5 }
 0x2ce   : > { %2722 = vmatpush3.bf16.msra.mxu0 %v2719_v0  ;;  %v2452_v0 = vld [vmem:[%s3080_s27 + $0x40] sm:$0xff] }
 0x2cf   : > { %2724 = vmatprep.subr.bf16.mxu0 %v2723_v3 }
 0x2d2   : > { %2726 = vmatpush3.bf16.msra.mxu0 %v2723_v3  ;;  %v2735_v3 = vpack.c.bf16 %v2453_v1, %v2452_v0 }
 0x2d4   : > { %2736 = vmatprep.subr.bf16.mxu0 %v2735_v3 }
 0x303   : > { %v1317_v28 = vpop.xlane.xlu1 %1316  ;;  %v1320_v30 = vpop.xlane.xlu0 %1319 }
 0x304   : > { %v1322_v29 = vmul.f32 0.03125, %v1317_v28  ;;  %v1323_v32 = vmul.f32 0.03125, %v1320_v30  ;;  %v2431_v30 = vld [vmem:[%s3086_s15 + $0x8] ss:$0 sm:$0xff] }
 0x306   : > { %v3154_v33 = vsub.f32 %v1309_v59, %v1322_v29  ;;  %v3157_v36 = vsub.f32 %v1310_v58, %v1323_v32 }
 0x308   : > { %v1326_v38 = vmul.f32 %v3154_v33, %v3154_v33  ;;  %v1327_v40 = vmul.f32 %v3157_v36, %v3157_v36 }
 0x30a   : > { %v1328_v39 = vsel %vm838_vm5, %v1326_v38, 0.0  ;;  %v1331_v41 = vsel %vm838_vm5, %v1327_v40, 0.0  ;;  %v2436_v40 = vld [vmem:[%s3086_s15 + $0x5] ss:$0 sm:$0xff] }
 0x33f   : > { %v2589_v8 = vpop.f32.mrb[2].mxu1 }
 0x340   : > { %v1088_v9 = vpop.f32.mrb[3].mxu1  ;;  %v1206_v11 = vadd.f32 %v2589_v8, %v3106_v19 }
 0x341   : > { %v1205_v10 = vadd.f32 %v1088_v9, %v3102_v17 }
 0x343   : > { %2609 = vmatprep.mubr.msk.f32.mxu1 %vm838_vm5, %v1205_v10 }
 0x344   : > { %2610 = vmatmul.mubr.msk.f32.vlgmr.msra.gmra.mrb[4].mxu1 %vm838_vm5, %v1206_v11 }
 0x3a0   : > { %v2600_v13 = vpop.f32.mrb[2].mxu0 }
 0x3a1   : > { %v1200_v14 = vadd.f32 %v2600_v13, %v2418_v12  ;;  %v1194_v15 = vpop.f32.mrb[3].mxu0 }
 0x3a2   : > { %v1195_v16 = vadd.f32 %v2418_v12, %v1194_v15 }
 0x3a3   : > { %2830 = vtanh.f32 %v1200_v14 }
 0x3a4   : > { %2832 = vtanh.f32 %v1195_v16 }
 0x3ad   : > { %v2831_v18 = vpop.eup %2830 }
 0x3ae   : > { %v2833_v20 = vpop.eup %2832  ;;  %v1365_v21 = vsel %vm838_vm5, %v2831_v18, 0.0 }
 0x3af   : > { %1366 = vadd.xlane.f32.xlu1 %v1365_v21  ;;  %v1362_v22 = vsel %vm838_vm5, %v2833_v20, 0.0 }
 0x3b3   : > { %1363 = vadd.xlane.f32.xlu1 %v1362_v22 }
 0x417   : > { %v2611_v24 = vpop.f32.mrb[4].mxu1 }
 0x418   : > { %v1292_v25 = vpop.f32.mrb[5].mxu1  ;;  %v1298_v26 = vadd.f32 %v2611_v24, %v2426_v23 }
 0x419   : > { %v1293_v27 = vadd.f32 %v2426_v23, %v1292_v25 }
 0x41b   : > { %2834 = vtanh.f32 %v1293_v27 }
 0x41c   : > { %2836 = vtanh.f32 %v1298_v26 }
 0x425   : > { %v2835_v31 = vpop.eup %2834 }
 0x426   : > { %v1410_v34 = vsel %vm838_vm5, %v2835_v31, 0.0  ;;  %v2837_v35 = vpop.eup %2836 }
 0x427   : > { %1411 = vadd.xlane.f32.xlu1 %v1410_v34  ;;  %v1413_v37 = vsel %vm838_vm5, %v2837_v35, 0.0 }
 0x42b   : > { %1414 = vadd.xlane.f32.xlu1 %v1413_v37 }
 0x42f   : > { %1329 = vadd.xlane.f32.xlu1 %v1328_v39  ;;  %v2432_v39 = vld [vmem:[%s3086_s15 + $0x9] ss:$0 sm:$0xff] }
 0x433   : > { %1332 = vadd.xlane.f32.xlu1 %v1331_v41  ;;  %v2439_v41 = vld [vmem:[%s3086_s15 + $0x6] ss:$0 sm:$0xff] }
 0x43c   : > { %v1367_v42 = vpop.xlane.xlu1 %1366 }
 0x43d   : > { %v1369_v43 = vmul.f32 0.03125, %v1367_v42 }
 0x43f   : > { %v3166_v44 = vsub.f32 %v2831_v18, %v1369_v43 }
 0x440   : > { %v1364_v45 = vpop.xlane.xlu1 %1363 }
 0x441   : > { %v1368_v46 = vmul.f32 0.03125, %v1364_v45  ;;  %v1373_v47 = vmul.f32 %v3166_v44, %v3166_v44 }
 0x443   : > { %v1370_v48 = vsub.f32 %v2833_v20, %v1368_v46  ;;  %v1377_v49 = vsel %vm838_vm5, %v1373_v47, 0.0  ;;  %v2440_v46 = vld [vmem:[%s3086_s15 + $0x7] ss:$0 sm:$0xff] }
 0x444   : > { %1378 = vadd.xlane.f32.xlu1 %v1377_v49 }
 0x445   : > { %v1372_v50 = vmul.f32 %v1370_v48, %v1370_v48 }
 0x447   : > { %v1374_v51 = vsel %vm838_vm5, %v1372_v50, 0.0 }
 0x448   : > { %1375 = vadd.xlane.f32.xlu1 %v1374_v51 }
 0x4b4   : > { %v1412_v52 = vpop.xlane.xlu1 %1411 }
 0x4b5   : > { %v1416_v53 = vmul.f32 0.03125, %v1412_v52 }
 0x4b7   : > { %v1418_v54 = vsub.f32 %v2835_v31, %v1416_v53  ;;  %v2435_v31 = vld [vmem:[%s3086_s15 + $0x4] ss:$0 sm:$0xff] }
 0x4b8   : > { %v1415_v55 = vpop.xlane.xlu1 %1414 }
 0x4b9   : > { %v1417_v56 = vmul.f32 0.03125, %v1415_v55  ;;  %v1420_v57 = vmul.f32 %v1418_v54, %v1418_v54 }
 0x4bb   : > { %v3172_v58 = vsub.f32 %v2837_v35, %v1417_v56  ;;  %v1422_v59 = vsel %vm838_vm5, %v1420_v57, 0.0 }
 0x4bc   : > { %1423 = vadd.xlane.f32.xlu1 %v1422_v59  ;;  %v1330_v4 = vpop.xlane.xlu1 %1329  ;;  %v2444_v59 = vld [vmem:[%s3047_s14 + $0x10] sm:$0xff] }
 0x4bd   : > { %v1421_v60 = vmul.f32 %v3172_v58, %v3172_v58  ;;  %v1334_v9 = vmul.f32 0.03125, %v1330_v4  ;;  %2627 = vmatprep.mubr.msk.f32.mxu1 %vm924_vm6, %v2444_v59 }
 0x4bf   : > { %v1425_v61 = vsel %vm838_vm5, %v1421_v60, 0.0  ;;  %v1336_v12 = vadd.f32 1e-05, %v1334_v9  ;;  %v2454_v9 = vld [vmem:[%s3080_s27 + $0x50] sm:$0xff] }
 0x4c0   : > { %1426 = vadd.xlane.f32.xlu0 %v1425_v61  ;;  %v1333_v5 = vpop.xlane.xlu1 %1332 }
 0x4c1   : > { %v1335_v13 = vmul.f32 0.03125, %v1333_v5 }
 0x4c3   : > { %v1337_v15 = vadd.f32 1e-05, %v1335_v13  ;;  %v2460_v13 = vld [vmem:[%s3080_s27 + $0x60] sm:$0xff] }
 0x4d1   : > { %v1379_v6 = vpop.xlane.xlu1 %1378 }
 0x4d2   : > { %v1381_v10 = vmul.f32 0.03125, %v1379_v6 }
 0x4d4   : > { %v1383_v14 = vadd.f32 1e-05, %v1381_v10  ;;  %v2455_v10 = vld [vmem:[%s3080_s27 + $0x58] sm:$0xff] }
 0x4d5   : > { %v1376_v7 = vpop.xlane.xlu1 %1375 }
 0x4d6   : > { %v1380_v8 = vmul.f32 0.03125, %v1376_v7  ;;  %v2445_v7 = vld [vmem:[%s3047_s14 + $0x18] sm:$0xff]  ;;  %s3334_s14 = sld [smem:[#allocation13_spill]] (!%p2476_p9) }
 0x4d8   : > { %v1382_v11 = vadd.f32 1e-05, %v1380_v8  ;;  %v2448_v8 = vld [vmem:[%s3052_s22 + $0x10] sm:$0xff] }
 0x4da   : > { %2838 = vrsqrt.f32 %v1382_v11  ;;  %v2739_v11 = vpack.c.bf16 %v2455_v10, %v2454_v9 }
 0x4db   : > { %2840 = vrsqrt.f32 %v1336_v12 }
 0x4dc   : > { %2842 = vrsqrt.f32 %v1383_v14  ;;  %v2461_v14 = vld [vmem:[%s3080_s27 + $0x68] sm:$0xff] }
 0x4dd   : > { %2844 = vrsqrt.f32 %v1337_v15 }
 0x4e4   : > { %v2839_v22 = vpop.eup %2838 }
 0x4e5   : > { %v2841_v24 = vpop.eup %2840  ;;  %v1386_v26 = vmul.f32 %v2839_v22, %v1370_v48  ;;  %v2462_v22 = vld [vmem:[%s3080_s27 + $0x70] sm:$0xff] }
 0x4e6   : > { %v2843_v27 = vpop.eup %2842  ;;  %v1340_v28 = vmul.f32 %v2841_v24, %v3154_v33 }
 0x4e7   : > { %v2845_v29 = vpop.eup %2844  ;;  %v1387_v32 = vmul.f32 %v2843_v27, %v3166_v44  ;;  %v1394_v34 = vmul.f32 %v2435_v31, %v1386_v26 }
 0x4e8   : > { %v1341_v35 = vmul.f32 %v2845_v29, %v3157_v36  ;;  %v1348_v37 = vmul.f32 %v2431_v30, %v1340_v28 }
 0x4e9   : > { %v1395_v42 = vmul.f32 %v2435_v31, %v1387_v32  ;;  %v1402_v45 = vadd.f32 %v2436_v40, %v1394_v34  ;;  %v2457_v34 = vld [vmem:[%s3086_s15 + $0x2] ss:$0 sm:$0xff] }
 0x4ea   : > { %v1349_v47 = vmul.f32 %v2431_v30, %v1341_v35  ;;  %v1356_v33 = vadd.f32 %v2432_v39, %v1348_v37 }
 0x4eb   : > { %v1403_v50 = vadd.f32 %v2436_v40, %v1395_v42 }
 0x4ec   : > { %v1404_v51 = vadd.f32 %v1402_v45, %v1356_v33  ;;  %v1357_v52 = vadd.f32 %v2432_v39, %v1349_v47  ;;  %v2465_v45 = vld [vmem:[%s3086_s15 + $0x3] ss:$0 sm:$0xff] }
 0x549   : > { %v1424_v16 = vpop.xlane.xlu1 %1423 }
 0x54a   : > { %v1428_v18 = vmul.f32 0.03125, %v1424_v16 }
 0x54c   : > { %v1430_v20 = vadd.f32 1e-05, %v1428_v18 }
 0x54d   : > { %v1427_v21 = vpop.xlane.xlu0 %1426 }
 0x54e   : > { %2846 = vrsqrt.f32 %v1430_v20  ;;  %v1429_v23 = vmul.f32 0.03125, %v1427_v21  ;;  %v2743_v20 = vpack.c.bf16 %v2461_v14, %v2460_v13  ;;  %v2449_v21 = vld [vmem:[%s3052_s22 + $0x18] sm:$0xff] }
 0x550   : > { %v1431_v25 = vadd.f32 1e-05, %v1429_v23  ;;  %v2463_v23 = vld [vmem:[%s3080_s27 + $0x78] sm:$0xff]  ;;  %s3335_s27 = sld [smem:[#allocation15_spill]] (!%p2476_p9) }
 0x551   : > { %v2747_v24 = vpack.c.bf16 %v2463_v23, %v2462_v22 }
 0x552   : > { %2848 = vrsqrt.f32 %v1431_v25 }
 0x558   : > { %v2847_v38 = vpop.eup %2846 }
 0x559   : > { %v1434_v43 = vmul.f32 %v2847_v38, %v1418_v54  ;;  %v1405_v54 = vadd.f32 %v1403_v50, %v1357_v52 }
 0x55b   : > { %v1442_v48 = vmul.f32 %v2439_v41, %v1434_v43 }
 0x55c   : > { %v2849_v49 = vpop.eup %2848 }
 0x55d   : > { %v1435_v44 = vmul.f32 %v2849_v49, %v3172_v58  ;;  %v1450_v36 = vadd.f32 %v2440_v46, %v1442_v48  ;;  %v2441_v58 = vld [vmem:[%s702_s18] ss:$0 sm:$0xff] }
 0x55f   : > { %v1443_v53 = vmul.f32 %v2439_v41, %v1435_v44  ;;  %v1452_v55 = vadd.f32 %v1450_v36, %v1404_v51 }
 0x561   : > { %v1451_v56 = vadd.f32 %v2440_v46, %v1443_v53  ;;  %2620 = vmatprep.mubr.msk.f32.mxu0 %vm838_vm5, %v1452_v55 }
 0x563   : > { %v1453_v57 = vadd.f32 %v1451_v56, %v1405_v54 }
 0x565   : > { %2621 = vmatmul.mubr.msk.f32.vlgmr.msra.gmra.mrb[4].mxu0 %vm838_vm5, %v1453_v57 }
 0x566   : > { %2738 = vmatpush3.bf16.msra.mxu0 %v2735_v3 }
 0x567   : > { %2740 = vmatprep.subr.bf16.mxu0 %v2739_v11 }
 0x56a   : > { %2742 = vmatpush3.bf16.msra.mxu0 %v2739_v11 }
 0x638   : > { %v2622_v60 = vpop.f32.mrb[4].mxu0 }
 0x639   : > { %v1543_v61 = vadd.f32 %v2622_v60, %v2441_v58  ;;  %v1537_v62 = vpop.f32.mrb[5].mxu0 }
 0x63a   : > { %v1538_v63 = vadd.f32 %v2441_v58, %v1537_v62 }
 0x63b   : > { %2850 = vtanh.f32 %v1543_v61 }
 0x63c   : > { %2852 = vtanh.f32 %v1538_v63 }
 0x645   : > { %v2851_v2 = vpop.eup %2850 }
 0x646   : > { %v2853_v4 = vpop.eup %2852 }
 0x647   : > { %v2821_v5 = vpack.i.bf16 %v2851_v2, %v2853_v4  ;;  %v2727_v6 = vpack.c.bf16 %v2851_v2, %v2853_v4 }
 0x649   : > { %2822 = vrot.lane.b32.xlu1 %v2821_v5, %s2915_s17  ;;  %2728 = vmatprep.subr.bf16.mxu1 %v2727_v6  ;;  %s3333_s17 = sld [smem:[#allocation14_spill]] (!%p2476_p9) }
 0x64a   : > { %2730 = vmatpush3.bf16.msra.mxu1 %v2727_v6 }
 0x64d   : > { %2628 = vmatmul.mubr.msk.f32.vlgmr.msra.gmra.mrb[6].mxu1 %vm924_vm6, %v2445_v7 }
 0x64e   : > { %2634 = vmatprep.mubr.msk.f32.mxu1 %vm924_vm6, %v2448_v8 }
 0x6bb   : > { %v2823_v12 = vpop.permute.xlu1 %2822 }
 0x6bc   : > { %v2825_v15 = vunpack.i.h.bf16 %v2823_v12  ;;  %v2824_v16 = vunpack.i.l.bf16 %v2823_v12 }
 0x6be   : > { %v2731_v18 = vpack.c.bf16 %v2825_v15, %v2824_v16 }
 0x6c0   : > { %2732 = vmatprep.subr.bf16.mxu1 %v2731_v18 }
 0x6c1   : > { %2734 = vmatpush3.bf16.msra.mxu1 %v2731_v18 }
 0x6c2   : > { %2744 = vmatprep.subr.bf16.mxu1 %v2743_v20 }
 0x6c4   : > { %2635 = vmatmul.mubr.msk.f32.vlgmr.msra.gmra.mrb[8].mxu1 %vm924_vm6, %v2449_v21 }
 0x6c5   : > { %2746 = vmatpush3.bf16.msra.mxu1 %v2743_v20 }
 0x6c6   : > { %2748 = vmatprep.subr.bf16.mxu1 %v2747_v24 }
 0x6c9   : > { %2750 = vmatpush3.bf16.msra.mxu1 %v2747_v24 }
 0x720   : > { %v2629_v25 = vpop.f32.mrb[6].mxu1 }
 0x721   : > { %v1623_v26 = vpop.f32.mrb[7].mxu1  ;;  %v1725_v28 = vadd.f32 %v2629_v25, %v1453_v57  ;;  %v2470_v25 = vld [vmem:[%s3086_s15 + $0xa] ss:$0 sm:$0xff] }
 0x722   : > { %v1724_v27 = vadd.f32 %v1623_v26, %v1452_v55  ;;  %v2474_v26 = vld [vmem:[%s3086_s15 + $0xc] ss:$0 sm:$0xff] }
 0x724   : > { %2645 = vmatprep.mubr.msk.f32.mxu0 %vm838_vm5, %v1724_v27 }
 0x725   : > { %2646 = vmatmul.mubr.msk.f32.vlgmr.msra.gmra.mrb[6].mxu0 %vm838_vm5, %v1725_v28 }
 0x797   : > { %v2636_v29 = vpop.f32.mrb[8].mxu1 }
 0x798   : > { %v1715_v30 = vpop.f32.mrb[9].mxu1  ;;  %v1823_v32 = vadd.f32 %v2636_v29, %v1453_v57 }
 0x799   : > { %v1822_v31 = vadd.f32 %v1715_v30, %v1452_v55  ;;  %v2475_v30 = vld [vmem:[%s3086_s15 + $0xd] ss:$0 sm:$0xff] }
 0x79b   : > { %2656 = vmatprep.mubr.msk.f32.mxu1 %vm838_vm5, %v1822_v31 }
 0x79c   : > { %2657 = vmatmul.mubr.msk.f32.vlgmr.msra.gmra.mrb[10].mxu1 %vm838_vm5, %v1823_v32 }
 0x7f8   : > { %v2647_v35 = vpop.f32.mrb[6].mxu0 }
 0x7f9   : > { %v1817_v37 = vadd.f32 %v2647_v35, %v2457_v34  ;;  %v1811_v38 = vpop.f32.mrb[7].mxu0 }
 0x7fa   : > { %v1812_v39 = vadd.f32 %v2457_v34, %v1811_v38  ;;  %v2471_v34 = vld [vmem:[%s3086_s15 + $0xb] ss:$0 sm:$0xff] }
 0x7fb   : > { %2854 = vtanh.f32 %v1817_v37 }
 0x7fc   : > { %2856 = vtanh.f32 %v1812_v39 }
 0x805   : > { %v2855_v40 = vpop.eup %2854 }
 0x806   : > { %v1927_v41 = vsel %vm838_vm5, %v2855_v40, 0.0  ;;  %v2857_v42 = vpop.eup %2856 }
 0x807   : > { %1928 = vadd.xlane.f32.xlu0 %v1927_v41  ;;  %v1924_v43 = vsel %vm838_vm5, %v2857_v42, 0.0 }
 0x80b   : > { %1925 = vadd.xlane.f32.xlu0 %v1924_v43 }
 0x86f   : > { %v2658_v46 = vpop.f32.mrb[10].mxu1 }
 0x870   : > { %v1909_v47 = vpop.f32.mrb[11].mxu1  ;;  %v1915_v33 = vadd.f32 %v2658_v46, %v2465_v45 }
 0x871   : > { %v1910_v48 = vadd.f32 %v2465_v45, %v1909_v47 }
 0x873   : > { %2858 = vtanh.f32 %v1910_v48  ;;  %v2023_v48 = vld [vmem:[%s3332_s0 + $0x8] sm:$0xff] (!%p2476_p9) }
 0x874   : > { %2860 = vtanh.f32 %v1915_v33  ;;  %v2022_v33 = vld [vmem:[%s3332_s0] sm:$0xff] (!%p2476_p9) }
 0x87d   : > { %v2859_v49 = vpop.eup %2858 }
 0x87e   : > { %v1970_v44 = vsel %vm838_vm5, %v2859_v49, 0.0  ;;  %v2861_v50 = vpop.eup %2860 }
 0x87f   : > { %1971 = vadd.xlane.f32.xlu0 %v1970_v44  ;;  %v1973_v51 = vsel %vm838_vm5, %v2861_v50, 0.0 }
 0x883   : > { %1974 = vadd.xlane.f32.xlu0 %v1973_v51  ;;  %v2117_v51 = vld [vmem:[%s3333_s17 + $0x8] sm:$0xff] (!%p2476_p9) }
 0x894   : > { %v1929_v36 = vpop.xlane.xlu0 %1928 }
 0x895   : > { %v1931_v52 = vmul.f32 0.03125, %v1929_v36  ;;  %v2118_v36 = vld [vmem:[%s3333_s17 + $0x10] sm:$0xff] (!%p2476_p9) }
 0x897   : > { %v1933_v53 = vsub.f32 %v2855_v40, %v1931_v52 }
 0x898   : > { %v1926_v55 = vpop.xlane.xlu0 %1925 }
 0x899   : > { %v1930_v56 = vmul.f32 0.03125, %v1926_v55  ;;  %v1935_v54 = vmul.f32 %v1933_v53, %v1933_v53 }
 0x89b   : > { %v1932_v57 = vsub.f32 %v2857_v42, %v1930_v56  ;;  %v1939_v59 = vsel %vm838_vm5, %v1935_v54, 0.0  ;;  %v2477_v56 = vld [vmem:[%s3334_s14] ss:$0 sm:$0xff] (!%p2476_p9) }
 0x89c   : > { %1940 = vadd.xlane.f32.xlu0 %v1939_v59 }
 0x89d   : > { %v1934_v58 = vmul.f32 %v1932_v57, %v1932_v57 }
 0x89f   : > { %v1936_v60 = vsel %vm838_vm5, %v1934_v58, 0.0 }
 0x8a0   : > { %1937 = vadd.xlane.f32.xlu1 %v1936_v60 }
 0x90c   : > { %v1972_v61 = vpop.xlane.xlu0 %1971 }
 0x90d   : > { %v1976_v62 = vmul.f32 0.03125, %v1972_v61 }
 0x90f   : > { %v1978_v63 = vsub.f32 %v2859_v49, %v1976_v62  ;;  %v2025_v49 = vld [vmem:[%s3332_s0 + $0x18] sm:$0xff] (!%p2476_p9)  ;;  %v2480_v62 = vld [vmem:[%s3335_s27] ss:$0 sm:$0xff] (!%p2476_p9) }
 0x910   : > { %v1975_v0 = vpop.xlane.xlu0 %1974 }
 0x911   : > { %v1977_v1 = vmul.f32 0.03125, %v1975_v0  ;;  %v1980_v2 = vmul.f32 %v1978_v63, %v1978_v63 }
 0x913   : > { %v1979_v3 = vsub.f32 %v2861_v50, %v1977_v1  ;;  %v1982_v4 = vsel %vm838_vm5, %v1980_v2, 0.0  ;;  %v2116_v50 = vld [vmem:[%s3333_s17] sm:$0xff] (!%p2476_p9) }
 0x914   : > { %1983 = vadd.xlane.f32.xlu0 %v1982_v4  ;;  %v2759_v52 = vpack.c.bf16 (!%p2476_p9), %v2117_v51, %v2116_v50 }
 0x915   : > { %v1981_v5 = vmul.f32 %v1979_v3, %v1979_v3 }
 0x916   : > { %2760 = vmatprep.subr.bf16.mxu1 (!%p2476_p9), %v2759_v52 }
 0x917   : > { %v1985_v6 = vsel %vm838_vm5, %v1981_v5, 0.0  ;;  %2762 = vmatpush3.bf16.msra.mxu1 (!%p2476_p9), %v2759_v52 }
 0x918   : > { %1986 = vadd.xlane.f32.xlu0 %v1985_v6 }
 0x929   : > { %v1941_v9 = vpop.xlane.xlu0 %1940 }
 0x92a   : > { %v1943_v10 = vmul.f32 0.03125, %v1941_v9 }
 0x92c   : > { %v1945_v12 = vadd.f32 1e-05, %v1943_v10 }
 0x92d   : > { %v1938_v7 = vpop.xlane.xlu1 %1937 }
 0x92e   : > { %v1942_v8 = vmul.f32 0.03125, %v1938_v7 }
 0x930   : > { %v1944_v11 = vadd.f32 1e-05, %v1942_v8 }
 0x932   : > { %2862 = vrsqrt.f32 %v1944_v11 }
 0x933   : > { %2864 = vrsqrt.f32 %v1945_v12 }
 0x93c   : > { %v2863_v21 = vpop.eup %2862 }
 0x93d   : > { %v1948_v22 = vmul.f32 %v2863_v21, %v1932_v57  ;;  %v2865_v23 = vpop.eup %2864 }
 0x93e   : > { %v1949_v27 = vmul.f32 %v2865_v23, %v1933_v53  ;;  %v2119_v53 = vld [vmem:[%s3333_s17 + $0x18] sm:$0xff] (!%p2476_p9) }
 0x93f   : > { %v1956_v28 = vmul.f32 %v2470_v25, %v1948_v22  ;;  %v2763_v55 = vpack.c.bf16 (!%p2476_p9), %v2119_v53, %v2118_v36 }
 0x940   : > { %v1957_v35 = vmul.f32 %v2470_v25, %v1949_v27 }
 0x941   : > { %v1964_v37 = vadd.f32 %v2471_v34, %v1956_v28  ;;  %2764 = vmatprep.subr.bf16.mxu1 (!%p2476_p9), %v2763_v55 }
 0x942   : > { %v1965_v42 = vadd.f32 %v2471_v34, %v1957_v35  ;;  %2766 = vmatpush3.bf16.msra.mxu1 (!%p2476_p9), %v2763_v55 }
 0x9a1   : > { %v1984_v13 = vpop.xlane.xlu0 %1983 }
 0x9a2   : > { %v1988_v14 = vmul.f32 0.03125, %v1984_v13 }
 0x9a4   : > { %v1990_v15 = vadd.f32 1e-05, %v1988_v14 }
 0x9a5   : > { %v1987_v16 = vpop.xlane.xlu0 %1986 }
 0x9a6   : > { %2866 = vrsqrt.f32 %v1990_v15  ;;  %v1989_v18 = vmul.f32 0.03125, %v1987_v16 }
 0x9a8   : > { %v1991_v20 = vadd.f32 1e-05, %v1989_v18 }
 0x9aa   : > { %2868 = vrsqrt.f32 %v1991_v20 }
 0x9b0   : > { %v2867_v24 = vpop.eup %2866 }
 0x9b1   : > { %v1994_v29 = vmul.f32 %v2867_v24, %v1978_v63 }
 0x9b3   : > { %v2002_v31 = vmul.f32 %v2474_v26, %v1994_v29 }
 0x9b4   : > { %v2869_v32 = vpop.eup %2868 }
 0x9b5   : > { %v2010_v38 = vadd.f32 %v2475_v30, %v2002_v31  ;;  %v1995_v39 = vmul.f32 %v2869_v32, %v1979_v3 }
 0x9b7   : > { %v2012_v40 = vadd.f32 %v2010_v38, %v1964_v37  ;;  %v2003_v41 = vmul.f32 %v2474_v26, %v1995_v39 }
 0x9b9   : > { %v2014_v43 = vadd.f32 %v2012_v40, %v3102_v17  ;;  %v2011_v45 = vadd.f32 %v2475_v30, %v2003_v41  ;;  %2021 = sbr.rel (%p2476_p9) target bundleno = 2946 (0xb82), region = 92  ;;  %v2024_v17 = vld [vmem:[%s3332_s0 + $0x10] sm:$0xff] (!%p2476_p9) }
 0x9ba   : > { %v2755_v44 = vpack.c.bf16 (!%p2476_p9), %v2025_v49, %v2024_v17 }
 0x9bb   : > { %2016 = vst.msk [vmem:[#allocation2] sm:$0xff] %vm838_vm5, %v2014_v43  ;;  %v2013_v46 = vadd.f32 %v2011_v45, %v1965_v42  ;;  %2667 = vmatprep.mubr.msk.f32.mxu0 (!%p2476_p9), %vm838_vm5, %v2014_v43 }
 0x9bd   : > { %v2015_v47 = vadd.f32 %v2013_v46, %v3106_v19  ;;  %v2751_v19 = vpack.c.bf16 (!%p2476_p9), %v2023_v48, %v2022_v33 }
 0x9bf   : > { %2017 = vst.msk [vmem:[#allocation2 + $0x8] sm:$0xff] %vm838_vm5, %v2015_v47  ;;  %2752 = vmatprep.subr.bf16.mxu0 (!%p2476_p9), %v2751_v19 }
 0x9c0   : > { %2754 = vmatpush3.bf16.msra.mxu0 %v2751_v19 }
 0x9c1   : > { %2756 = vmatprep.subr.bf16.mxu0 %v2755_v44 }
 0x9c4   : > { %2758 = vmatpush3.bf16.msra.mxu0 %v2755_v44 }
 0x9c7   : > { %2668 = vmatmul.mubr.msk.f32.vlgmr.msra.gmra.mrb[0].mxu0 %vm838_vm5, %v2015_v47 }
 0xa9a   : > { %v2669_v54 = vpop.f32.mrb[0].mxu0 }
 0xa9b   : > { %v2111_v57 = vadd.f32 %v2669_v54, %v2477_v56  ;;  %v2105_v59 = vpop.f32.mrb[1].mxu0 }
 0xa9c   : > { %v2106_v58 = vadd.f32 %v2477_v56, %v2105_v59 }
 0xa9e   : > { %2870 = vtanh.f32 %v2106_v58 }
 0xa9f   : > { %2872 = vtanh.f32 %v2111_v57 }
 0xaa8   : > { %v2871_v60 = vpop.eup %2870 }
 0xaa9   : > { %v2873_v61 = vpop.eup %2872  ;;  %2678 = vmatprep.mubr.msk.f32.mxu1 %vm838_vm5, %v2871_v60 }
 0xaaa   : > { %2679 = vmatmul.mubr.msk.f32.vlgmr.msra.gmra.mrb[0].mxu1 %vm838_vm5, %v2873_v61 }
 0xb7d   : > { %v2680_v63 = vpop.f32.mrb[0].mxu1 }
 0xb7e   : > { %v2205_v0 = vadd.f32 %v2680_v63, %v2480_v62  ;;  %v2199_v1 = vpop.f32.mrb[1].mxu1 }
 0xb7f   : > { %v2200_v2 = vadd.f32 %v2480_v62, %v2199_v1 }
 0xb80   : > { %2210 = vst.msk [vmem:[%s3042_s23 + $0x8] sm:$0xff] %vm2208_vm8, %v2205_v0 }
 0xb81   : > { %2209 = vst.msk [vmem:[%s3042_s23] sm:$0xff] %vm2208_vm8, %v2200_v2 }
 0xb82 PF: > { %s3336_s15 = sld [smem:[#allocation5_spill]]  ;;  %s3337_s21 = sld [smem:[#allocation3_spill]] }
 0xb83   : > { %s3338_s22 = sld [smem:[#allocation4_spill]]  ;;  %s3339_s23 = sld [smem:[#allocation6_spill]] }
 0xb84   : > { %s3340_s24 = sld [smem:[#allocation7_spill]] }
 0xb88   : > { %s26_s25 = sadd.s32 1, %s3336_s15  }
 0xb89   : > { %p23_p10 = scmp.ge.s32.totalorder %s26_s25, 8  }
 0xb8b   :  { %25 = sbr.rel (!%p23_p10) target bundleno = 9 (0x9), region = 164 }

</bundles_post_ra>
